<compile_context>
chip_gen: v6e
topology: v6e:2x2x1
jax: 0.10.0
libtpu: 0.0.40
codegen_flags: <defaults>
</compile_context>

<pallas_src>
import functools

import jax
import jax.numpy as jnp
from jax import lax
from jax.experimental import pallas as pl
from jax.experimental.pallas import tpu as pltpu

C_MID = 128         # stand-in backbone mid channels (fills a 128-deep MXU pass)
EMBED = 1280        # EfficientNet-B1 embedding width
MLP_H = 128         # mlp_hidden_dim
PAD_K = 32          # 9 * Cin = 27 padded up to a multiple of 32
EMBED_CHUNK = 256   # EMBED blocking for the pointwise matmul (1280 = 5 * 256)
TILE_M_CAP = 1024   # max spatial rows per grid step


def _round_up(x, m):
    return ((x + m - 1) // m) * m


def _cdiv(a, b):
    return (a + b - 1) // b


def _pick_tile_m(spatial):
    """Largest useful row tile <= TILE_M_CAP; padding handled by in-kernel mask."""
    if spatial <= TILE_M_CAP:
        return _round_up(spatial, 8)
    n_tiles = _cdiv(spatial, TILE_M_CAP)
    return _round_up(_cdiv(spatial, n_tiles), 8)


def _backbone_kernel(patches_ref, w_conv_ref, b_conv_ref,
                     w_point_ref, b_point_ref,
                     out_ref, acc_ref, *,
                     tiles_per_split, spatial, needs_mask):
    t = pl.program_id(2)

    @pl.when(t == 0)
    def _init():
        acc_ref[...] = jnp.zeros_like(acc_ref)

    # --- stand-in backbone on one spatial tile (bf16 operands, f32 accumulate) ---
    patches = patches_ref[0]                                   # (TILE_M, PAD_K) bf16
    tile_m = patches.shape[0]

    feat = jnp.dot(patches, w_conv_ref[...],
                   preferred_element_type=jnp.float32)
    feat = jnp.maximum(feat + b_conv_ref[...], 0.0)            # (TILE_M, C_MID) f32
    feat_bf = feat.astype(jnp.bfloat16)

    if needs_mask:
        # Padded spatial rows would contribute ReLU(bias) garbage -> mask them.
        base = (pl.program_id(1) * tiles_per_split + t) * tile_m
        rows = lax.broadcasted_iota(jnp.int32, (tile_m, 1), 0)
        row_ok = (rows + base) < spatial                       # (TILE_M, 1) bool

    # Pointwise conv + bias + ReLU + running spatial sum, blocked over EMBED so the
    # (TILE_M, 1280) f32 activation never materializes.  The per-step reduction is
    # sublane-preserving (8-row groups, VALU only); the 8->1 reduce is deferred.
    for c in range(EMBED // EMBED_CHUNK):
        lo = c * EMBED_CHUNK
        h = jnp.dot(feat_bf, w_point_ref[:, lo:lo + EMBED_CHUNK],
                    preferred_element_type=jnp.float32)
        h = jnp.maximum(h + b_point_ref[:, lo:lo + EMBED_CHUNK], 0.0)
        if needs_mask:
            h = jnp.where(row_ok, h, 0.0)
        part = h.reshape(tile_m // 8, 8, EMBED_CHUNK).sum(axis=0)   # (8, CHUNK)
        acc_ref[:, lo:lo + EMBED_CHUNK] += part

    # Emit this split's pooled partial sum; GAP mean + MLP head run in the wrapper.
    @pl.when(t == pl.num_programs(2) - 1)
    def _finalize():
        out_ref[...] = acc_ref[...].reshape(1, 1, 8, EMBED)


def init_params(key, c_in=3, c_mid=C_MID, embed_dim=EMBED,
                mlp_hidden_dim=MLP_H, out_channels=1):
    ks = jax.random.split(key, 8)
    s = 0.02
    return {
        "w_conv": jax.random.normal(ks[0], (9 * c_in, c_mid), jnp.float32) * s,
        "b_conv": jax.random.normal(ks[1], (c_mid,), jnp.float32) * s,
        "w_point": jax.random.normal(ks[2], (c_mid, embed_dim), jnp.float32) * s,
        "b_point": jax.random.normal(ks[3], (embed_dim,), jnp.float32) * s,
        "w_mlp": jax.random.normal(ks[4], (embed_dim, mlp_hidden_dim), jnp.float32) * s,
        "b_mlp": jax.random.normal(ks[5], (mlp_hidden_dim,), jnp.float32) * s,
        "w_cls": jax.random.normal(ks[6], (mlp_hidden_dim, out_channels), jnp.float32) * s,
        "b_cls": jax.random.normal(ks[7], (out_channels,), jnp.float32) * s,
    }


@jax.jit
def cnn_model_forward(image_nchw, params):
    """image_nchw: (B, C_in, H, W) float32 -> logits (B, out_channels)."""
    B, Cin, H, W = image_nchw.shape
    spatial = H * W

    # NCHW -> NHWC, "same" pad for the 3x3 conv, im2col to (B, H*W, 9*Cin) bf16.
    x = jnp.transpose(image_nchw, (0, 2, 3, 1)).astype(jnp.float32)
    xp = jnp.pad(x, ((0, 0), (1, 1), (1, 1), (0, 0)))
    cols = [xp[:, ky:ky + H, kx:kx + W, :].reshape(B, spatial, Cin)
            for ky in range(3) for kx in range(3)]
    patches = jnp.concatenate(cols, axis=-1).astype(jnp.bfloat16)
    patches = jnp.pad(patches, ((0, 0), (0, 0), (0, PAD_K - 9 * Cin)))

    # Spatial tiling: cdiv tile count, optional 2-way split of the reduction so
    # both v7x TensorCores get work even at batch=1, zero-pad + in-kernel mask.
    tile_m = _pick_tile_m(spatial)
    num_tiles = _cdiv(spatial, tile_m)
    nsplit = 2 if num_tiles >= 2 else 1
    tps = _cdiv(num_tiles, nsplit)                  # tiles per split
    s_pad = nsplit * tps * tile_m
    if s_pad > spatial:
        patches = jnp.pad(patches, ((0, 0), (0, s_pad - spatial), (0, 0)))
    needs_mask = s_pad != spatial

    # bf16 matmul operands (f32 accumulation in-kernel) + MXU-friendly padding.
    w_conv = jnp.pad(params["w_conv"],
                     ((0, PAD_K - 9 * Cin), (0, 0))).astype(jnp.bfloat16)
    b_conv = params["b_conv"].reshape(1, -1).astype(jnp.float32)
    w_point = params["w_point"].astype(jnp.bfloat16)
    b_point = params["b_point"].reshape(1, -1).astype(jnp.float32)

    grid = (B, nsplit, tps)
    in_specs = [
        pl.BlockSpec((1, tile_m, PAD_K), lambda b, s, t: (b, s * tps + t, 0)),
        pl.BlockSpec(w_conv.shape, lambda b, s, t: (0, 0)),    # weights stay
        pl.BlockSpec(b_conv.shape, lambda b, s, t: (0, 0)),    # VMEM-resident
        pl.BlockSpec(w_point.shape, lambda b, s, t: (0, 0)),
        pl.BlockSpec(b_point.shape, lambda b, s, t: (0, 0)),
    ]
    out_specs = pl.BlockSpec((1, 1, 8, EMBED), lambda b, s, t: (b, s, 0, 0))

    flops = 2 * B * s_pad * (PAD_K * C_MID + C_MID * EMBED)
    bytes_accessed = (patches.size * 2 + (w_conv.size + w_point.size) * 2
                      + (b_conv.size + b_point.size) * 4
                      + B * nsplit * 8 * EMBED * 4)

    kernel = functools.partial(_backbone_kernel, tiles_per_split=tps,
                               spatial=spatial, needs_mask=needs_mask)
    pooled = pl.pallas_call(
        kernel,
        out_shape=jax.ShapeDtypeStruct((B, nsplit, 8, EMBED), jnp.float32),
        grid_spec=pltpu.PrefetchScalarGridSpec(
            num_scalar_prefetch=0,
            grid=grid,
            in_specs=in_specs,
            out_specs=out_specs,
            scratch_shapes=[pltpu.VMEM((8, EMBED), jnp.float32)],
        ),
        compiler_params=pltpu.CompilerParams(
            dimension_semantics=("parallel", "parallel", "arbitrary"),
            vmem_limit_bytes=32 * 1024 * 1024,
            allow_input_fusion=[True, False, False, False, False],
        ),
        cost_estimate=pl.CostEstimate(
            flops=flops, transcendentals=0, bytes_accessed=bytes_accessed),
    )(patches, w_conv, b_conv, w_point, b_point)

    # GAP mean (combine split + sublane partial sums), then the MLP head as one
    # batched dense matmul in XLA; eval-mode Dropout == identity.
    emb = pooled.sum(axis=(1, 2)) * (1.0 / spatial)                  # (B, EMBED)
    m = emb @ params["w_mlp"] + params["b_mlp"]
    m = jnp.where(m > 0.0, m, jnp.expm1(jnp.minimum(m, 0.0)))        # ELU(alpha=1)
    logits = m @ params["w_cls"] + params["b_cls"]
    return logits


if __name__ == "__main__":
    key = jax.random.PRNGKey(0)
    k_img, k_params = jax.random.split(key)

    # Small deterministic input: batch=2, 3-channel 16x16 image (NCHW like PyTorch).
    image = jax.random.normal(k_img, (2, 3, 16, 16), jnp.float32)
    params = init_params(k_params)

    logits = cnn_model_forward(image, params)
    jax.block_until_ready(logits)
    assert logits.shape == (2, 1) and logits.dtype == jnp.float32
    assert bool(jnp.all(jnp.isfinite(logits)))
    print("KERNEL_OK")
</pallas_src>

<mosaic_0001>
module attributes {stable_mosaic.version = 11 : i64} {
  func.func @_backbone_kernel(%arg0: i32, %arg1: i32, %arg2: i32, %arg3: memref<1x256x32xbf16, #tpu.memory_space<vmem>>, %arg4: memref<32x128xbf16, #tpu.memory_space<vmem>>, %arg5: memref<1x128xf32, #tpu.memory_space<vmem>>, %arg6: memref<128x1280xbf16, #tpu.memory_space<vmem>>, %arg7: memref<1x1280xf32, #tpu.memory_space<vmem>>, %arg8: memref<1x1x8x1280xf32, #tpu.memory_space<vmem>>, %arg9: memref<8x1280xf32, #tpu.memory_space<vmem>>) attributes {dimension_semantics = [#tpu.dimension_semantics<parallel>, #tpu.dimension_semantics<parallel>, #tpu.dimension_semantics<arbitrary>], iteration_bounds = array<i64: 2, 1, 1>, scalar_prefetch = 0 : i64, scratch_operands = 1 : i64, tpu.core_type = #tpu.core_type<tc>, window_params = [{transform_indices = @transform_0, window_bounds = array<i64: 1, 256, 32>}, {pipeline_mode = #tpu.pipeline_mode<synchronous>, transform_indices = @transform_1, window_bounds = array<i64: 32, 128>}, {pipeline_mode = #tpu.pipeline_mode<synchronous>, transform_indices = @transform_2, window_bounds = array<i64: 1, 128>}, {pipeline_mode = #tpu.pipeline_mode<synchronous>, transform_indices = @transform_3, window_bounds = array<i64: 128, 1280>}, {pipeline_mode = #tpu.pipeline_mode<synchronous>, transform_indices = @transform_4, window_bounds = array<i64: 1, 1280>}, {transform_indices = @transform_5, window_bounds = array<i64: 1, 1, 8, 1280>}]} {
    %c0_i32 = arith.constant 0 : i32
    %0 = arith.cmpi eq, %arg2, %c0_i32 : i32
    %1 = arith.extui %0 : i1 to i32
    %c0_i32_0 = arith.constant 0 : i32
    %2 = arith.cmpi ne, %1, %c0_i32_0 : i32
    scf.if %2 {
      %cst_61 = arith.constant 0.000000e+00 : f32
      %76 = vector.broadcast %cst_61 : f32 to vector<8x1280xf32>
      %c0_62 = arith.constant 0 : index
      %c0_63 = arith.constant 0 : index
      %77 = vector.load %arg9[%c0_62, %c0_63] : memref<8x1280xf32, #tpu.memory_space<vmem>>, vector<8x1280xf32>
      tpu.vector_store %arg9[%c0_62, %c0_63], %76 {strides = array<i32>} : memref<8x1280xf32, #tpu.memory_space<vmem>>, vector<8x1280xf32>,
    } else {
    }
    %c0 = arith.constant 0 : index
    %c0_1 = arith.constant 0 : index
    %c0_2 = arith.constant 0 : index
    %3 = vector.load %arg3[%c0, %c0_1, %c0_2] : memref<1x256x32xbf16, #tpu.memory_space<vmem>>, vector<1x256x32xbf16>
    %4 = vector.shape_cast %3 : vector<1x256x32xbf16> to vector<256x32xbf16>
    %c0_3 = arith.constant 0 : index
    %c0_4 = arith.constant 0 : index
    %5 = vector.load %arg4[%c0_3, %c0_4] : memref<32x128xbf16, #tpu.memory_space<vmem>>, vector<32x128xbf16>
    %cst = arith.constant dense<0.000000e+00> : vector<256x128xf32>
    %6 = tpu.matmul %4, %5, %cst {dimension_numbers = #tpu.dot_dimension_numbers<[1], [0], [0], [1], [0, 0, 1, 1], [], []>} : vector<256x32xbf16>, vector<32x128xbf16>, vector<256x128xf32> -> vector<256x128xf32>
    %c0_5 = arith.constant 0 : index
    %c0_6 = arith.constant 0 : index
    %7 = vector.load %arg5[%c0_5, %c0_6] : memref<1x128xf32, #tpu.memory_space<vmem>>, vector<1x128xf32>
    %8 = vector.broadcast %7 : vector<1x128xf32> to vector<256x128xf32>
    %9 = arith.addf %6, %8 : vector<256x128xf32>
    %cst_7 = arith.constant 0.000000e+00 : f32
    %10 = vector.broadcast %cst_7 : f32 to vector<256x128xf32>
    %11 = arith.maximumf %9, %10 : vector<256x128xf32>
    %12 = arith.truncf %11 : vector<256x128xf32> to vector<256x128xbf16>
    %c0_8 = arith.constant 0 : index
    %c0_9 = arith.constant 0 : index
    %13 = vector.load %arg6[%c0_8, %c0_9] : memref<128x1280xbf16, #tpu.memory_space<vmem>>, vector<128x256xbf16>
    %cst_10 = arith.constant dense<0.000000e+00> : vector<256x256xf32>
    %14 = tpu.matmul %12, %13, %cst_10 {dimension_numbers = #tpu.dot_dimension_numbers<[1], [0], [0], [1], [0, 0, 1, 1], [], []>} : vector<256x128xbf16>, vector<128x256xbf16>, vector<256x256xf32> -> vector<256x256xf32>
    %c0_11 = arith.constant 0 : index
    %c0_12 = arith.constant 0 : index
    %15 = vector.load %arg7[%c0_11, %c0_12] : memref<1x1280xf32, #tpu.memory_space<vmem>>, vector<1x256xf32>
    %16 = vector.broadcast %15 : vector<1x256xf32> to vector<256x256xf32>
    %17 = arith.addf %14, %16 : vector<256x256xf32>
    %cst_13 = arith.constant 0.000000e+00 : f32
    %18 = vector.broadcast %cst_13 : f32 to vector<256x256xf32>
    %19 = arith.maximumf %17, %18 : vector<256x256xf32>
    %20 = vector.shape_cast %19 : vector<256x256xf32> to vector<32x8x256xf32>
    %cst_14 = arith.constant dense<0.000000e+00> : vector<8x256xf32>
    %21 = vector.multi_reduction <add>, %20, %cst_14 [0] : vector<32x8x256xf32> to vector<8x256xf32>
    %c0_15 = arith.constant 0 : index
    %c0_16 = arith.constant 0 : index
    %22 = vector.load %arg9[%c0_15, %c0_16] : memref<8x1280xf32, #tpu.memory_space<vmem>>, vector<8x256xf32>
    %23 = arith.addf %22, %21 : vector<8x256xf32>
    %c0_17 = arith.constant 0 : index
    %c0_18 = arith.constant 0 : index
    %24 = vector.load %arg9[%c0_17, %c0_18] : memref<8x1280xf32, #tpu.memory_space<vmem>>, vector<8x256xf32>
    tpu.vector_store %arg9[%c0_17, %c0_18], %23 {strides = array<i32>} : memref<8x1280xf32, #tpu.memory_space<vmem>>, vector<8x256xf32>,
    %c0_19 = arith.constant 0 : index
    %c256 = arith.constant 256 : index
    %25 = vector.load %arg6[%c0_19, %c256] : memref<128x1280xbf16, #tpu.memory_space<vmem>>, vector<128x256xbf16>
    %cst_20 = arith.constant dense<0.000000e+00> : vector<256x256xf32>
    %26 = tpu.matmul %12, %25, %cst_20 {dimension_numbers = #tpu.dot_dimension_numbers<[1], [0], [0], [1], [0, 0, 1, 1], [], []>} : vector<256x128xbf16>, vector<128x256xbf16>, vector<256x256xf32> -> vector<256x256xf32>
    %c0_21 = arith.constant 0 : index
    %c256_22 = arith.constant 256 : index
    %27 = vector.load %arg7[%c0_21, %c256_22] : memref<1x1280xf32, #tpu.memory_space<vmem>>, vector<1x256xf32>
    %28 = vector.broadcast %27 : vector<1x256xf32> to vector<256x256xf32>
    %29 = arith.addf %26, %28 : vector<256x256xf32>
    %cst_23 = arith.constant 0.000000e+00 : f32
    %30 = vector.broadcast %cst_23 : f32 to vector<256x256xf32>
    %31 = arith.maximumf %29, %30 : vector<256x256xf32>
    %32 = vector.shape_cast %31 : vector<256x256xf32> to vector<32x8x256xf32>
    %cst_24 = arith.constant dense<0.000000e+00> : vector<8x256xf32>
    %33 = vector.multi_reduction <add>, %32, %cst_24 [0] : vector<32x8x256xf32> to vector<8x256xf32>
    %c0_25 = arith.constant 0 : index
    %c256_26 = arith.constant 256 : index
    %34 = vector.load %arg9[%c0_25, %c256_26] : memref<8x1280xf32, #tpu.memory_space<vmem>>, vector<8x256xf32>
    %35 = arith.addf %34, %33 : vector<8x256xf32>
    %c0_27 = arith.constant 0 : index
    %c256_28 = arith.constant 256 : index
    %36 = vector.load %arg9[%c0_27, %c256_28] : memref<8x1280xf32, #tpu.memory_space<vmem>>, vector<8x256xf32>
    tpu.vector_store %arg9[%c0_27, %c256_28], %35 {strides = array<i32>} : memref<8x1280xf32, #tpu.memory_space<vmem>>, vector<8x256xf32>,
    %c0_29 = arith.constant 0 : index
    %c512 = arith.constant 512 : index
    %37 = vector.load %arg6[%c0_29, %c512] : memref<128x1280xbf16, #tpu.memory_space<vmem>>, vector<128x256xbf16>
    %cst_30 = arith.constant dense<0.000000e+00> : vector<256x256xf32>
    %38 = tpu.matmul %12, %37, %cst_30 {dimension_numbers = #tpu.dot_dimension_numbers<[1], [0], [0], [1], [0, 0, 1, 1], [], []>} : vector<256x128xbf16>, vector<128x256xbf16>, vector<256x256xf32> -> vector<256x256xf32>
    %c0_31 = arith.constant 0 : index
    %c512_32 = arith.constant 512 : index
    %39 = vector.load %arg7[%c0_31, %c512_32] : memref<1x1280xf32, #tpu.memory_space<vmem>>, vector<1x256xf32>
    %40 = vector.broadcast %39 : vector<1x256xf32> to vector<256x256xf32>
    %41 = arith.addf %38, %40 : vector<256x256xf32>
    %cst_33 = arith.constant 0.000000e+00 : f32
    %42 = vector.broadcast %cst_33 : f32 to vector<256x256xf32>
    %43 = arith.maximumf %41, %42 : vector<256x256xf32>
    %44 = vector.shape_cast %43 : vector<256x256xf32> to vector<32x8x256xf32>
    %cst_34 = arith.constant dense<0.000000e+00> : vector<8x256xf32>
    %45 = vector.multi_reduction <add>, %44, %cst_34 [0] : vector<32x8x256xf32> to vector<8x256xf32>
    %c0_35 = arith.constant 0 : index
    %c512_36 = arith.constant 512 : index
    %46 = vector.load %arg9[%c0_35, %c512_36] : memref<8x1280xf32, #tpu.memory_space<vmem>>, vector<8x256xf32>
    %47 = arith.addf %46, %45 : vector<8x256xf32>
    %c0_37 = arith.constant 0 : index
    %c512_38 = arith.constant 512 : index
    %48 = vector.load %arg9[%c0_37, %c512_38] : memref<8x1280xf32, #tpu.memory_space<vmem>>, vector<8x256xf32>
    tpu.vector_store %arg9[%c0_37, %c512_38], %47 {strides = array<i32>} : memref<8x1280xf32, #tpu.memory_space<vmem>>, vector<8x256xf32>,
    %c0_39 = arith.constant 0 : index
    %c768 = arith.constant 768 : index
    %49 = vector.load %arg6[%c0_39, %c768] : memref<128x1280xbf16, #tpu.memory_space<vmem>>, vector<128x256xbf16>
    %cst_40 = arith.constant dense<0.000000e+00> : vector<256x256xf32>
    %50 = tpu.matmul %12, %49, %cst_40 {dimension_numbers = #tpu.dot_dimension_numbers<[1], [0], [0], [1], [0, 0, 1, 1], [], []>} : vector<256x128xbf16>, vector<128x256xbf16>, vector<256x256xf32> -> vector<256x256xf32>
    %c0_41 = arith.constant 0 : index
    %c768_42 = arith.constant 768 : index
    %51 = vector.load %arg7[%c0_41, %c768_42] : memref<1x1280xf32, #tpu.memory_space<vmem>>, vector<1x256xf32>
    %52 = vector.broadcast %51 : vector<1x256xf32> to vector<256x256xf32>
    %53 = arith.addf %50, %52 : vector<256x256xf32>
    %cst_43 = arith.constant 0.000000e+00 : f32
    %54 = vector.broadcast %cst_43 : f32 to vector<256x256xf32>
    %55 = arith.maximumf %53, %54 : vector<256x256xf32>
    %56 = vector.shape_cast %55 : vector<256x256xf32> to vector<32x8x256xf32>
    %cst_44 = arith.constant dense<0.000000e+00> : vector<8x256xf32>
    %57 = vector.multi_reduction <add>, %56, %cst_44 [0] : vector<32x8x256xf32> to vector<8x256xf32>
    %c0_45 = arith.constant 0 : index
    %c768_46 = arith.constant 768 : index
    %58 = vector.load %arg9[%c0_45, %c768_46] : memref<8x1280xf32, #tpu.memory_space<vmem>>, vector<8x256xf32>
    %59 = arith.addf %58, %57 : vector<8x256xf32>
    %c0_47 = arith.constant 0 : index
    %c768_48 = arith.constant 768 : index
    %60 = vector.load %arg9[%c0_47, %c768_48] : memref<8x1280xf32, #tpu.memory_space<vmem>>, vector<8x256xf32>
    tpu.vector_store %arg9[%c0_47, %c768_48], %59 {strides = array<i32>} : memref<8x1280xf32, #tpu.memory_space<vmem>>, vector<8x256xf32>,
    %c0_49 = arith.constant 0 : index
    %c1024 = arith.constant 1024 : index
    %61 = vector.load %arg6[%c0_49, %c1024] : memref<128x1280xbf16, #tpu.memory_space<vmem>>, vector<128x256xbf16>
    %cst_50 = arith.constant dense<0.000000e+00> : vector<256x256xf32>
    %62 = tpu.matmul %12, %61, %cst_50 {dimension_numbers = #tpu.dot_dimension_numbers<[1], [0], [0], [1], [0, 0, 1, 1], [], []>} : vector<256x128xbf16>, vector<128x256xbf16>, vector<256x256xf32> -> vector<256x256xf32>
    %c0_51 = arith.constant 0 : index
    %c1024_52 = arith.constant 1024 : index
    %63 = vector.load %arg7[%c0_51, %c1024_52] : memref<1x1280xf32, #tpu.memory_space<vmem>>, vector<1x256xf32>
    %64 = vector.broadcast %63 : vector<1x256xf32> to vector<256x256xf32>
    %65 = arith.addf %62, %64 : vector<256x256xf32>
    %cst_53 = arith.constant 0.000000e+00 : f32
    %66 = vector.broadcast %cst_53 : f32 to vector<256x256xf32>
    %67 = arith.maximumf %65, %66 : vector<256x256xf32>
    %68 = vector.shape_cast %67 : vector<256x256xf32> to vector<32x8x256xf32>
    %cst_54 = arith.constant dense<0.000000e+00> : vector<8x256xf32>
    %69 = vector.multi_reduction <add>, %68, %cst_54 [0] : vector<32x8x256xf32> to vector<8x256xf32>
    %c0_55 = arith.constant 0 : index
    %c1024_56 = arith.constant 1024 : index
    %70 = vector.load %arg9[%c0_55, %c1024_56] : memref<8x1280xf32, #tpu.memory_space<vmem>>, vector<8x256xf32>
    %71 = arith.addf %70, %69 : vector<8x256xf32>
    %c0_57 = arith.constant 0 : index
    %c1024_58 = arith.constant 1024 : index
    %72 = vector.load %arg9[%c0_57, %c1024_58] : memref<8x1280xf32, #tpu.memory_space<vmem>>, vector<8x256xf32>
    tpu.vector_store %arg9[%c0_57, %c1024_58], %71 {strides = array<i32>} : memref<8x1280xf32, #tpu.memory_space<vmem>>, vector<8x256xf32>,
    %c0_i32_59 = arith.constant 0 : i32
    %73 = arith.cmpi eq, %arg2, %c0_i32_59 : i32
    %74 = arith.extui %73 : i1 to i32
    %c0_i32_60 = arith.constant 0 : i32
    %75 = arith.cmpi ne, %74, %c0_i32_60 : i32
    scf.if %75 {
      %c0_61 = arith.constant 0 : index
      %c0_62 = arith.constant 0 : index
      %76 = vector.load %arg9[%c0_61, %c0_62] : memref<8x1280xf32, #tpu.memory_space<vmem>>, vector<8x1280xf32>
      %77 = vector.shape_cast %76 : vector<8x1280xf32> to vector<1x1x8x1280xf32>
      %c0_63 = arith.constant 0 : index
      %c0_64 = arith.constant 0 : index
      %c0_65 = arith.constant 0 : index
      %c0_66 = arith.constant 0 : index
      %78 = vector.load %arg8[%c0_63, %c0_64, %c0_65, %c0_66] : memref<1x1x8x1280xf32, #tpu.memory_space<vmem>>, vector<1x1x8x1280xf32>
      tpu.vector_store %arg8[%c0_63, %c0_64, %c0_65, %c0_66], %77 {strides = array<i32>} : memref<1x1x8x1280xf32, #tpu.memory_space<vmem>>, vector<1x1x8x1280xf32>,
    } else {
    }
    return
  }
  func.func @transform_0(%arg0: i32, %arg1: i32, %arg2: i32) -> (i32, i32, i32) {
    %c1_i32 = arith.constant 1 : i32
    %0 = arith.muli %arg1, %c1_i32 : i32
    %1 = arith.addi %0, %arg2 : i32
    %c0_i32 = arith.constant 0 : i32
    %c0_i32_0 = arith.constant 0 : i32
    return %arg0, %1, %c0_i32 : i32, i32, i32
  }
  func.func @transform_1(%arg0: i32, %arg1: i32, %arg2: i32) -> (i32, i32) {
    %c0_i32 = arith.constant 0 : i32
    %c0_i32_0 = arith.constant 0 : i32
    %c0_i32_1 = arith.constant 0 : i32
    return %c0_i32, %c0_i32_0 : i32, i32
  }
  func.func @transform_2(%arg0: i32, %arg1: i32, %arg2: i32) -> (i32, i32) {
    %c0_i32 = arith.constant 0 : i32
    %c0_i32_0 = arith.constant 0 : i32
    %c0_i32_1 = arith.constant 0 : i32
    return %c0_i32, %c0_i32_0 : i32, i32
  }
  func.func @transform_3(%arg0: i32, %arg1: i32, %arg2: i32) -> (i32, i32) {
    %c0_i32 = arith.constant 0 : i32
    %c0_i32_0 = arith.constant 0 : i32
    %c0_i32_1 = arith.constant 0 : i32
    return %c0_i32, %c0_i32_0 : i32, i32
  }
  func.func @transform_4(%arg0: i32, %arg1: i32, %arg2: i32) -> (i32, i32) {
    %c0_i32 = arith.constant 0 : i32
    %c0_i32_0 = arith.constant 0 : i32
    %c0_i32_1 = arith.constant 0 : i32
    return %c0_i32, %c0_i32_0 : i32, i32
  }
  func.func @transform_5(%arg0: i32, %arg1: i32, %arg2: i32) -> (i32, i32, i32, i32) {
    %c0_i32 = arith.constant 0 : i32
    %c0_i32_0 = arith.constant 0 : i32
    %c0_i32_1 = arith.constant 0 : i32
    return %arg0, %arg1, %c0_i32, %c0_i32_0 : i32, i32, i32, i32
  }
}

</mosaic_0001>

<bundles_post_ra>
// kernel: cnn_model_forward.2
= control target key start
LH: loop header
LB: loop body
LE: loop exit
PB: predicated region body
PF: predicated region fallthrough
CT: control target
= control target key end

     0   :  { %s4163_s23 = smov 0   ;;  %s4165_s24 = smov 0   ;;  %s5820_s0 = inlined_call_operand.vmem [shape: bf16[32,128], index: 0, kind: input, shape index: {}]   ;;  %s5821_s1 = inlined_call_operand.vmem [shape: f32[1,128], index: 1, kind: input, shape index: {}]   ;;  %s5822_s2 = inlined_call_operand.vmem [shape: bf16[128,1280], index: 2, kind: input, shape index: {}]   ;;  %s5823_s3 = inlined_call_operand.vmem [shape: f32[1,1280], index: 3, kind: input, shape index: {}]   ;;  %s5824_s4 = inlined_call_operand.vmem [shape: bf16[2,256,27], index: 4, kind: input, shape index: {}]   ;;  %s5825_s5 = inlined_call_operand.<no memory space> [shape: bf16[], index: 5, kind: input, shape index: {}]   ;;  %s5826_s6 = inlined_call_operand.vmem [shape: f32[2,1,8,1280], index: 6, kind: output, shape index: {}]  }
   0x1   :  { %v11_v0 = vstv %s5825_s5  ;;  %s4167_s25 = smov 0  }
   0x2   :  { %v4161_v1 = vunpack.i.l.bf16 %v11_v0 }
   0x4   :  { %5833 = vst [vmem:[#allocation9_spill] sm:$0xff] %v4161_v1 }
   0x5 LB: > { %s40_s5 = sadd.s32 1, %s4115_s24  ;;  %p3709_p0 = scmp.ge.s32.totalorder %s4119_s25, 1  ;;  %s4111_s23 = sphi %s4163_s23, %s5842_s23   ;;  %s4119_s25 = sphi %s4167_s25, %s21_s25   ;;  %s4115_s24 = sphi %s4165_s24, %s5843_s24  }
   0x6   : > { %p42_p1 = scmp.ge.s32.totalorder %s40_s5, 2  ;;  %p225_p2 = scmp.lt.s32.totalorder %s4119_s25, 3 }
   0x8   : > { %s5845_s5 = smov (%p42_p1, %s40_s5), 0  ;;  %p226_p3 = pnand %p3709_p0, %p225_p2 }
   0xa   : > { %229 = sbr.rel (%p226_p3) target bundleno = 799 (0x31f), region = 40 }
   0xb   : > { %v5834_v1 = vld [vmem:[#allocation9_spill] sm:$0xff] }
   0xf   : > { %v3959_v2 = vld [vmem:[%s5820_s0 + $0x8] sm:$0xff]   ;;  %p264_p4 = scmp.lt.s32.totalorder %s4111_s23, 1  ;;  %v295_v3 = vlaneseq  ;;  %v3960_v4 = vld [vmem:[%s5820_s0] sm:$0xff]   ;;  %v3979_v6 = vld [vmem:[%s5822_s2 + $0x234] ss:$40 sps:$4 sm:$0xff]   ;;  %v4121_v26 = vmov 0.0  }
  0x10   : > { %3880 = vmatprep.subr.bf16.mxu0 %v3959_v2  ;;  %v4199_v7 = vld [vmem:[%s5822_s2 + $0x230] ss:$40 sps:$4 sm:$0xff]   ;;  %v4209_v8 = vld [vmem:[%s5822_s2 + $0x1e4] ss:$40 sps:$4 sm:$0xff]   ;;  %3916 = vmatprep.subr.bf16.mxu1 %v3979_v6  ;;  %v4221_v21 = vld [vmem:[%s5822_s2 + $0x1e0] ss:$40 sps:$4 sm:$0xff]  }
  0x11   : > { %s5847_s23 = smov (!%p264_p4, %s4111_s23), 1  ;;  %v4190_v5 = vand.u32 127, %v295_v3  ;;  %3881 = vmatpush3.bf16.msra.mxu0 %v3959_v2  ;;  %3924 = vmatpush1.bf16.msra.mxu1 %v4199_v7  ;;  %vm1167_vm1 = vcmask 261120   ;;  %v4259_v39 = vld [vmem:[%s5822_s2 + $0x194] ss:$40 sps:$4 sm:$0xff]  }
  0x12   : > { %3882 = vmatprep.subr.bf16.mxu0 %v3960_v4  ;;  %s3861_s8 = sshll.u32 %s5847_s23, 7  ;;  %3917 = vmatprep.subr.bf16.mxu1 %v4209_v8  ;;  %v4268_v44 = vld [vmem:[%s5822_s2 + $0x190] ss:$40 sps:$4 sm:$0xff]   ;;  %v4273_v49 = vld [vmem:[%s5822_s2 + $0x144] ss:$40 sps:$4 sm:$0xff]  }
  0x13   : > { %s4204_s13 = scalar_lea.vmem %s5824_s4, %s3861_s8  ;;  %vm298_vm0 = vcmp.lt.s32.totalorder %v4190_v5, 27  ;;  %v4281_v56 = vld [vmem:[%s5822_s2 + $0x140] ss:$40 sps:$4 sm:$0xff]   ;;  %v4301_v63 = vld [vmem:[%s5822_s2 + $0xf4] ss:$40 sps:$4 sm:$0xff]   ;;  %s3932_s8 = smul.u32 80, %s5847_s23 }
  0x14   : > { %v292_v9 = vld [vmem:[%s4204_s13] sm:$0xff]   ;;  %v3714_v10 = vld [vmem:[%s4204_s13 + $0x8] sm:$0xff]   ;;  %v3716_v11 = vld [vmem:[%s4204_s13 + $0x10] sm:$0xff]  }
  0x15   : > { %3883 = vmatpush3.bf16.msra.mxu0 %v3960_v4  ;;  %v293_v12 = vunpack.c.l.bf16 %v292_v9  ;;  %v315_v13 = vunpack.c.h.bf16 %v292_v9  ;;  %v338_v14 = vunpack.c.l.bf16 %v3714_v10  ;;  %v361_v15 = vunpack.c.h.bf16 %v3714_v10  ;;  %v3718_v16 = vld [vmem:[%s4204_s13 + $0x18] sm:$0xff]   ;;  %v3720_v31 = vld [vmem:[%s4204_s13 + $0x20] sm:$0xff]   ;;  %v3722_v32 = vld [vmem:[%s4204_s13 + $0x28] sm:$0xff]   ;;  %3925 = vmatpush1.bf16.msra.mxu1 %v4221_v21  ;;  %s5055_s10 = scalar_lea.vmem %s5826_s6, %s3932_s8 }
  0x16   : > { %v384_v17 = vunpack.c.l.bf16 %v3716_v11  ;;  %v407_v18 = vunpack.c.h.bf16 %v3716_v11  ;;  %v430_v19 = vunpack.c.l.bf16 %v3718_v16  ;;  %v453_v20 = vunpack.c.h.bf16 %v3718_v16  ;;  %1533 = vmatprep.subr.bf16.mxu0 %v3979_v6  ;;  %v3724_v33 = vld [vmem:[%s4204_s13 + $0x30] sm:$0xff]   ;;  %v3726_v38 = vld [vmem:[%s4204_s13 + $0x38] sm:$0xff]   ;;  %3918 = vmatprep.subr.bf16.mxu1 %v4259_v39  ;;  %v3728_v54 = vld [vmem:[%s4204_s13 + $0x40] sm:$0xff]  }
  0x17   : > { %v299_v22 = vsel %vm298_vm0, %v293_v12, %v5834_v1  ;;  %v321_v23 = vsel %vm298_vm0, %v315_v13, %v5834_v1  ;;  %v344_v24 = vsel %vm298_vm0, %v338_v14, %v5834_v1  ;;  %v367_v25 = vsel %vm298_vm0, %v361_v15, %v5834_v1  ;;  %v3730_v55 = vld [vmem:[%s4204_s13 + $0x48] sm:$0xff]   ;;  %v3732_v61 = vld [vmem:[%s4204_s13 + $0x50] sm:$0xff]   ;;  %v3734_v62 = vld [vmem:[%s4204_s13 + $0x58] sm:$0xff]  }
  0x18   : > { %v300_v27 = vpack.c.bf16 %v4121_v26, %v299_v22  ;;  %v323_v28 = vpack.c.bf16 %v4121_v26, %v321_v23  ;;  %v346_v29 = vpack.c.bf16 %v4121_v26, %v344_v24  ;;  %v369_v30 = vpack.c.bf16 %v4121_v26, %v367_v25 }
  0x19   : > { %v390_v34 = vsel %vm298_vm0, %v384_v17, %v5834_v1  ;;  %v413_v35 = vsel %vm298_vm0, %v407_v18, %v5834_v1  ;;  %v436_v36 = vsel %vm298_vm0, %v430_v19, %v5834_v1  ;;  %v459_v37 = vsel %vm298_vm0, %v453_v20, %v5834_v1  ;;  %3926 = vmatpush1.bf16.msra.mxu1 %v4268_v44 }
  0x1a   : > { %303 = vst [vmem:[#allocation8] sm:$0xf] %v300_v27  ;;  %326 = vst [vmem:[#allocation8 + $0x4] sm:$0xf] %v323_v28  ;;  %v392_v40 = vpack.c.bf16 %v4121_v26, %v390_v34  ;;  %v415_v41 = vpack.c.bf16 %v4121_v26, %v413_v35  ;;  %v438_v42 = vpack.c.bf16 %v4121_v26, %v436_v36  ;;  %v476_v45 = vunpack.c.l.bf16 %v3720_v31  ;;  %v3740_v36 = vld [vmem:[%s4204_s13 + $0x70] sm:$0xff]  }
  0x1b   : > { %349 = vst [vmem:[#allocation8 + $0x8] sm:$0xf] %v346_v29  ;;  %372 = vst [vmem:[#allocation8 + $0xc] sm:$0xf] %v369_v30  ;;  %v461_v43 = vpack.c.bf16 %v4121_v26, %v459_v37  ;;  %v499_v46 = vunpack.c.h.bf16 %v3720_v31  ;;  %v522_v47 = vunpack.c.l.bf16 %v3722_v32  ;;  %v545_v48 = vunpack.c.h.bf16 %v3722_v32  ;;  %3919 = vmatprep.subr.bf16.mxu1 %v4273_v49  ;;  %v3736_v29 = vld [vmem:[%s4204_s13 + $0x60] sm:$0xff]   ;;  %v3738_v30 = vld [vmem:[%s4204_s13 + $0x68] sm:$0xff]  }
  0x1c   : > { %395 = vst [vmem:[#allocation8 + $0x10] sm:$0xf] %v392_v40  ;;  %418 = vst [vmem:[#allocation8 + $0x14] sm:$0xf] %v415_v41  ;;  %v568_v50 = vunpack.c.l.bf16 %v3724_v33  ;;  %v591_v51 = vunpack.c.h.bf16 %v3724_v33  ;;  %v614_v52 = vunpack.c.l.bf16 %v3726_v38  ;;  %v637_v53 = vunpack.c.h.bf16 %v3726_v38  ;;  %v3742_v37 = vld [vmem:[%s4204_s13 + $0x78] sm:$0xff]  }
  0x1d   : > { %441 = vst [vmem:[#allocation8 + $0x18] sm:$0xf] %v438_v42  ;;  %464 = vst [vmem:[#allocation8 + $0x1c] sm:$0xf] %v461_v43  ;;  %v482_v57 = vsel %vm298_vm0, %v476_v45, %v5834_v1  ;;  %v505_v58 = vsel %vm298_vm0, %v499_v46, %v5834_v1  ;;  %v528_v59 = vsel %vm298_vm0, %v522_v47, %v5834_v1  ;;  %3927 = vmatpush1.bf16.msra.mxu1 %v4281_v56  ;;  %v4351_v43 = vld [vmem:[%s5822_s2 + $0xf0] ss:$40 sps:$4 sm:$0xff]  }
  0x1e   : > { %v551_v60 = vsel %vm298_vm0, %v545_v48, %v5834_v1  ;;  %v484_v0 = vpack.c.bf16 %v4121_v26, %v482_v57  ;;  %v507_v2 = vpack.c.bf16 %v4121_v26, %v505_v58  ;;  %v530_v4 = vpack.c.bf16 %v4121_v26, %v528_v59  ;;  %3920 = vmatprep.subr.bf16.mxu1 %v4301_v63 }
  0x1f   : > { %v553_v6 = vpack.c.bf16 %v4121_v26, %v551_v60  ;;  %v574_v9 = vsel %vm298_vm0, %v568_v50, %v5834_v1  ;;  %v597_v10 = vsel %vm298_vm0, %v591_v51, %v5834_v1  ;;  %v620_v11 = vsel %vm298_vm0, %v614_v52, %v5834_v1 }
  0x20   : > { %v643_v12 = vsel %vm298_vm0, %v637_v53, %v5834_v1  ;;  %487 = vst [vmem:[#allocation8 + $0x20] sm:$0xf] %v484_v0  ;;  %510 = vst [vmem:[#allocation8 + $0x24] sm:$0xf] %v507_v2  ;;  %v576_v13 = vpack.c.bf16 %v4121_v26, %v574_v9  ;;  %v599_v14 = vpack.c.bf16 %v4121_v26, %v597_v10  ;;  %v660_v18 = vunpack.c.l.bf16 %v3728_v54 }
  0x21   : > { %533 = vst [vmem:[#allocation8 + $0x28] sm:$0xf] %v530_v4  ;;  %556 = vst [vmem:[#allocation8 + $0x2c] sm:$0xf] %v553_v6  ;;  %v622_v15 = vpack.c.bf16 %v4121_v26, %v620_v11  ;;  %v645_v16 = vpack.c.bf16 %v4121_v26, %v643_v12  ;;  %v3961_v17 = vld [vmem:[#allocation8] sm:$0xff]   ;;  %v683_v19 = vunpack.c.h.bf16 %v3728_v54  ;;  %v706_v20 = vunpack.c.l.bf16 %v3730_v55  ;;  %3928 = vmatpush1.bf16.msra.mxu1 %v4351_v43 }
  0x22   : > { %v729_v22 = vunpack.c.h.bf16 %v3730_v55  ;;  %v3962_v23 = vld [vmem:[#allocation8 + $0x8] sm:$0xff]   ;;  %579 = vst [vmem:[#allocation8 + $0x30] sm:$0xf] %v576_v13  ;;  %602 = vst [vmem:[#allocation8 + $0x34] sm:$0xf] %v599_v14  ;;  %v752_v24 = vunpack.c.l.bf16 %v3732_v61  ;;  %v775_v25 = vunpack.c.h.bf16 %v3732_v61  ;;  %v798_v27 = vunpack.c.l.bf16 %v3734_v62  ;;  %3884 = vmatprep.mubr.msk.bf16.mxu0 %vm1167_vm1, %v3961_v17 }
  0x23   : > { %625 = vst [vmem:[#allocation8 + $0x38] sm:$0xf] %v622_v15  ;;  %648 = vst [vmem:[#allocation8 + $0x3c] sm:$0xf] %v645_v16  ;;  %v821_v28 = vunpack.c.h.bf16 %v3734_v62  ;;  %v3963_v31 = vld [vmem:[#allocation8 + $0x10] sm:$0xff]   ;;  %v666_v32 = vsel %vm298_vm0, %v660_v18, %v5834_v1  ;;  %v689_v33 = vsel %vm298_vm0, %v683_v19, %v5834_v1  ;;  %v712_v34 = vsel %vm298_vm0, %v706_v20, %v5834_v1 }
  0x24   : > { %v735_v35 = vsel %vm298_vm0, %v729_v22, %v5834_v1  ;;  %3885 = vmatmul.mubr.msk.bf16.vlgmr.msra.gmra.mxu0 %vm1167_vm1, %v3962_v23  ;;  %v668_v38 = vpack.c.bf16 %v4121_v26, %v666_v32  ;;  %v691_v40 = vpack.c.bf16 %v4121_v26, %v689_v33  ;;  %v714_v41 = vpack.c.bf16 %v4121_v26, %v712_v34  ;;  %v3964_v59 = vld [vmem:[#allocation8 + $0x18] sm:$0xff]  }
  0x25   : > { %v737_v42 = vpack.c.bf16 %v4121_v26, %v735_v35  ;;  %3888 = vmatprep.mubr.msk.bf16.mxu0 %vm1167_vm1, %v3963_v31  ;;  %v758_v45 = vsel %vm298_vm0, %v752_v24, %v5834_v1  ;;  %v781_v46 = vsel %vm298_vm0, %v775_v25, %v5834_v1  ;;  %v804_v47 = vsel %vm298_vm0, %v798_v27, %v5834_v1  ;;  %v3994_v25 = vld [vmem:[%s5822_s2 + $0xa4] ss:$40 sps:$4 sm:$0xff]   ;;  %v3992_v27 = vld [vmem:[%s5822_s2 + $0xa0] ss:$40 sps:$4 sm:$0xff]  }
  0x26   : > { %v827_v48 = vsel %vm298_vm0, %v821_v28, %v5834_v1  ;;  %671 = vst [vmem:[#allocation8 + $0x40] sm:$0xf] %v668_v38  ;;  %694 = vst [vmem:[#allocation8 + $0x44] sm:$0xf] %v691_v40  ;;  %v760_v50 = vpack.c.bf16 %v4121_v26, %v758_v45  ;;  %v783_v51 = vpack.c.bf16 %v4121_v26, %v781_v46  ;;  %1534 = vmatpush1.bf16.msra.mxu0 %v4199_v7  ;;  %v3997_v28 = vld [vmem:[%s5822_s2 + $0x54] ss:$40 sps:$4 sm:$0xff]  }
  0x27   : > { %717 = vst [vmem:[#allocation8 + $0x48] sm:$0xf] %v714_v41  ;;  %740 = vst [vmem:[#allocation8 + $0x4c] sm:$0xf] %v737_v42  ;;  %v806_v52 = vpack.c.bf16 %v4121_v26, %v804_v47  ;;  %v829_v53 = vpack.c.bf16 %v4121_v26, %v827_v48  ;;  %v844_v54 = vunpack.c.l.bf16 %v3736_v29  ;;  %v867_v55 = vunpack.c.h.bf16 %v3736_v29  ;;  %1535 = vmatprep.subr.bf16.mxu0 %v4209_v8  ;;  %v3965_v2 = vld [vmem:[#allocation8 + $0x20] sm:$0xff]  }
  0x28   : > { %v890_v57 = vunpack.c.l.bf16 %v3738_v30  ;;  %v913_v58 = vunpack.c.h.bf16 %v3738_v30  ;;  %763 = vst [vmem:[#allocation8 + $0x50] sm:$0xf] %v760_v50  ;;  %786 = vst [vmem:[#allocation8 + $0x54] sm:$0xf] %v783_v51  ;;  %v936_v60 = vunpack.c.l.bf16 %v3740_v36  ;;  %v959_v61 = vunpack.c.h.bf16 %v3740_v36  ;;  %v3966_v5 = vld [vmem:[#allocation8 + $0x28] sm:$0xff]   ;;  %3921 = vmatprep.subr.bf16.mxu1 %v3994_v25 }
  0x29   : > { %809 = vst [vmem:[#allocation8 + $0x58] sm:$0xf] %v806_v52  ;;  %832 = vst [vmem:[#allocation8 + $0x5c] sm:$0xf] %v829_v53  ;;  %v982_v62 = vunpack.c.l.bf16 %v3742_v37  ;;  %v1005_v0 = vunpack.c.h.bf16 %v3742_v37  ;;  %v850_v7 = vsel %vm298_vm0, %v844_v54, %v5834_v1  ;;  %v873_v8 = vsel %vm298_vm0, %v867_v55, %v5834_v1  ;;  %3929 = vmatpush1.bf16.msra.mxu1 %v3992_v27  ;;  %v3995_v29 = vld [vmem:[%s5822_s2 + $0x50] ss:$40 sps:$4 sm:$0xff]  }
  0x2a   : > { %v896_v4 = vsel %vm298_vm0, %v890_v57, %v5834_v1  ;;  %v919_v6 = vsel %vm298_vm0, %v913_v58, %v5834_v1  ;;  %v852_v9 = vpack.c.bf16 %v4121_v26, %v850_v7  ;;  %v875_v10 = vpack.c.bf16 %v4121_v26, %v873_v8  ;;  %1536 = vmatpush1.bf16.msra.mxu0 %v4221_v21  ;;  %v4000_v30 = vld [vmem:[%s5822_s2 + $0x4] ss:$40 sps:$4 sm:$0xff]   ;;  %v3998_v31 = vld [vmem:[%s5822_s2] ss:$40 sps:$4 sm:$0xff]  }
  0x2b   : > { %v898_v11 = vpack.c.bf16 %v4121_v26, %v896_v4  ;;  %v921_v12 = vpack.c.bf16 %v4121_v26, %v919_v6  ;;  %v942_v13 = vsel %vm298_vm0, %v936_v60, %v5834_v1  ;;  %v965_v14 = vsel %vm298_vm0, %v959_v61, %v5834_v1  ;;  %1537 = vmatprep.subr.bf16.mxu0 %v4259_v39  ;;  %v3967_v39 = vld [vmem:[#allocation8 + $0x30] sm:$0xff]   ;;  %v4009_v34 = vld [vmem:[%s5822_s2 + $0x244] ss:$40 sps:$4 sm:$0xff]   ;;  %v4454_v37 = vld [vmem:[%s5821_s1] ss:$0 sm:$0xff] }
  0x2c   : > { %v988_v15 = vsel %vm298_vm0, %v982_v62, %v5834_v1  ;;  %v1011_v16 = vsel %vm298_vm0, %v1005_v0, %v5834_v1  ;;  %3889 = vmatmul.mubr.msk.bf16.gmra.mxu0 %vm1167_vm1, %v3964_v59  ;;  %855 = vst [vmem:[#allocation8 + $0x60] sm:$0xf] %v852_v9  ;;  %878 = vst [vmem:[#allocation8 + $0x64] sm:$0xf] %v875_v10  ;;  %v944_v21 = vpack.c.bf16 %v4121_v26, %v942_v13  ;;  %v5827_v32 = vmov 0  }
  0x2d   : > { %901 = vst [vmem:[#allocation8 + $0x68] sm:$0xf] %v898_v11  ;;  %924 = vst [vmem:[#allocation8 + $0x6c] sm:$0xf] %v921_v12  ;;  %v967_v17 = vpack.c.bf16 %v4121_v26, %v965_v14  ;;  %v990_v18 = vpack.c.bf16 %v4121_v26, %v988_v15  ;;  %v1013_v19 = vpack.c.bf16 %v4121_v26, %v1011_v16  ;;  %3892 = vmatprep.mubr.msk.bf16.mxu0 %vm1167_vm1, %v3965_v2  ;;  %v3968_v26 = vld [vmem:[#allocation8 + $0x38] sm:$0xff]   ;;  %v3969_v20 = vld [vmem:[#allocation8 + $0x40] sm:$0xff]  }
  0x2e   : > { %947 = vst [vmem:[#allocation8 + $0x70] sm:$0xf] %v944_v21  ;;  %1538 = vmatpush1.bf16.msra.mxu0 %v4268_v44  ;;  %v3970_v44 = vld [vmem:[#allocation8 + $0x48] sm:$0xff]   ;;  %3922 = vmatprep.subr.bf16.mxu1 %v3997_v28  ;;  %v4003_v33 = vld [vmem:[%s5822_s2 + $0x23c] ss:$40 sps:$4 sm:$0xff]  }
  0x2f   : > { %970 = vst [vmem:[#allocation8 + $0x74] sm:$0xf] %v967_v17  ;;  %993 = vst [vmem:[#allocation8 + $0x78] sm:$0xf] %v990_v18  ;;  %1539 = vmatprep.subr.bf16.mxu0 %v4273_v49  ;;  %v3971_v22 = vld [vmem:[#allocation8 + $0x50] sm:$0xff]   ;;  %3930 = vmatpush1.bf16.msra.mxu1 %v3995_v29 }
  0x30   : > { %1016 = vst [vmem:[#allocation8 + $0x7c] sm:$0xf] %v1013_v19  ;;  %v3972_v49 = vld [vmem:[#allocation8 + $0x58] sm:$0xff]   ;;  %3923 = vmatprep.subr.bf16.mxu1 %v4000_v30  ;;  %1615 = vmatprep.mubr.bf16.mxu1 %v5827_v32  ;;  %v4006_v52 = vld [vmem:[%s5822_s2 + $0x1ec] ss:$40 sps:$4 sm:$0xff]  }
  0x31   : > { %v4001_v48 = vld [vmem:[%s5822_s2 + $0x238] ss:$40 sps:$4 sm:$0xff]   ;;  %v4004_v57 = vld [vmem:[%s5822_s2 + $0x1e8] ss:$40 sps:$4 sm:$0xff]   ;;  %v4012_v59 = vld [vmem:[%s5822_s2 + $0x19c] ss:$40 sps:$4 sm:$0xff]  }
  0x32   : > { %1540 = vmatpush1.bf16.msra.mxu0 %v4281_v56  ;;  %v4010_v0 = vld [vmem:[%s5822_s2 + $0x198] ss:$40 sps:$4 sm:$0xff]   ;;  %v4015_v4 = vld [vmem:[%s5822_s2 + $0x14c] ss:$40 sps:$4 sm:$0xff]   ;;  %v4013_v12 = vld [vmem:[%s5822_s2 + $0x148] ss:$40 sps:$4 sm:$0xff]  }
  0x33   : > { %1541 = vmatprep.subr.bf16.mxu0 %v4301_v63  ;;  %v3973_v56 = vld [vmem:[#allocation8 + $0x60] sm:$0xff]   ;;  %3931 = vmatpush1.bf16.msra.mxu1 %v3998_v31  ;;  %v4018_v16 = vld [vmem:[%s5822_s2 + $0xfc] ss:$40 sps:$4 sm:$0xff]  }
  0x34   : > { %3893 = vmatmul.mubr.msk.bf16.gmra.mxu0 %vm1167_vm1, %v3966_v5  ;;  %v3974_v63 = vld [vmem:[#allocation8 + $0x68] sm:$0xff]   ;;  %2399 = vmatprep.subr.bf16.mxu1 %v4009_v34  ;;  %v4007_v17 = vld [vmem:[%s5822_s2 + $0x240] ss:$40 sps:$4 sm:$0xff]  }
  0x35   : > { %3896 = vmatprep.mubr.msk.bf16.mxu0 %vm1167_vm1, %v3967_v39  ;;  %v4021_v5 = vld [vmem:[%s5822_s2 + $0x1f4] ss:$40 sps:$4 sm:$0xff]  }
  0x36   : > { %1542 = vmatpush1.bf16.msra.mxu0 %v4351_v43  ;;  %v3975_v23 = vld [vmem:[#allocation8 + $0x70] sm:$0xff]  }
  0x37   : > { %v3976_v24 = vld [vmem:[#allocation8 + $0x78] sm:$0xff]   ;;  %1543 = vmatprep.subr.bf16.mxu0 %v3994_v25 }
  0x3a   : > { %1544 = vmatpush1.bf16.msra.mxu0 %v3992_v27  ;;  %v4022_v27 = vld [vmem:[%s5822_s2 + $0xa8] ss:$40 sps:$4 sm:$0xff]  }
  0x3b   : > { %1545 = vmatprep.subr.bf16.mxu0 %v3997_v28 }
  0x3c   : > { %3897 = vmatmul.mubr.msk.bf16.gmra.mxu0 %vm1167_vm1, %v3968_v26  ;;  %v4016_v26 = vld [vmem:[%s5822_s2 + $0xf8] ss:$40 sps:$4 sm:$0xff]  }
  0x3d   : > { %3900 = vmatprep.mubr.msk.bf16.mxu0 %vm1167_vm1, %v3969_v20 }
  0x3e   : > { %1546 = vmatpush1.bf16.msra.mxu0 %v3995_v29 }
  0x3f   : > { %1547 = vmatprep.subr.bf16.mxu0 %v4000_v30  ;;  %v4027_v30 = vld [vmem:[%s5822_s2 + $0x5c] ss:$40 sps:$4 sm:$0xff]  }
  0x42   : > { %1548 = vmatpush1.bf16.msra.mxu0 %v3998_v31 }
  0x43   : > { %1966 = vmatprep.subr.bf16.mxu0 %v4003_v33  ;;  %v4031_v33 = vld [vmem:[%s5822_s2 + $0x1a0] ss:$40 sps:$4 sm:$0xff]  }
  0x44   : > { %3901 = vmatmul.mubr.msk.bf16.gmra.mxu0 %vm1167_vm1, %v3970_v44 }
  0x45   : > { %3904 = vmatprep.mubr.msk.bf16.mxu0 %vm1167_vm1, %v3971_v22  ;;  %v4024_v22 = vld [vmem:[%s5822_s2 + $0xac] ss:$40 sps:$4 sm:$0xff]  }
  0x4c   : > { %3905 = vmatmul.mubr.msk.bf16.gmra.mxu0 %vm1167_vm1, %v3972_v49 }
  0x4d   : > { %3908 = vmatprep.mubr.msk.bf16.mxu0 %vm1167_vm1, %v3973_v56  ;;  %v4019_v56 = vld [vmem:[%s5822_s2 + $0x1f0] ss:$40 sps:$4 sm:$0xff]  }
  0x54   : > { %3909 = vmatmul.mubr.msk.bf16.gmra.mxu0 %vm1167_vm1, %v3974_v63 }
  0x55   : > { %3912 = vmatprep.mubr.msk.bf16.mxu0 %vm1167_vm1, %v3975_v23 }
  0x5c   : > { %3913 = vmatmul.mubr.msk.bf16.gmra.mxu0 %vm1167_vm1, %v3976_v24  ;;  %v4033_v24 = vld [vmem:[%s5822_s2 + $0x1a4] ss:$40 sps:$4 sm:$0xff]  }
  0x5d   : > { %1565 = vmatprep.mubr.bf16.mxu0 %v5827_v32 }
  0xe4   : > { %v3886_v35 = vpop.f32.mrf.mxu0 }
  0xe5   : > { %v1259_v54 = vadd.f32 %v3886_v35, %v4454_v37 }
  0xe6   : > { %v1250_v36 = vpop.f32.mrf.mxu0 }
  0xe7   : > { %v1251_v40 = vadd.f32 %v4454_v37, %v1250_v36  ;;  %v1379_v61 = vmax.f32 %v1259_v54, 0.0  ;;  %v4039_v54 = vld [vmem:[%s5822_s2 + $0x104] ss:$40 sps:$4 sm:$0xff]  }
  0xe8   : > { %v3887_v38 = vpop.f32.mrf.mxu0 }
  0xe9   : > { %v1377_v45 = vmax.f32 %v1251_v40, 0.0  ;;  %v1262_v50 = vadd.f32 %v3887_v38, %v4454_v37 }
  0xea   : > { %v1253_v41 = vpop.f32.mrf.mxu0 }
  0xeb   : > { %v1254_v42 = vadd.f32 %v4454_v37, %v1253_v41  ;;  %v1380_v58 = vmax.f32 %v1262_v50, 0.0  ;;  %v4034_v50 = vld [vmem:[%s5822_s2 + $0x150] ss:$40 sps:$4 sm:$0xff]  }
  0xec   : > { %v3890_v43 = vpop.f32.mrf.mxu0 }
  0xed   : > { %v1378_v46 = vmax.f32 %v1254_v42, 0.0  ;;  %v4481_v2 = vpack.c.bf16 %v1380_v58, %v1379_v61  ;;  %v1275_v63 = vadd.f32 %v3890_v43, %v4454_v37  ;;  %v4028_v58 = vld [vmem:[%s5822_s2 + $0x8] ss:$40 sps:$4 sm:$0xff]   ;;  %v4051_v61 = vld [vmem:[%s5822_s2 + $0x24c] ss:$40 sps:$4 sm:$0xff]  }
  0xee   : > { %v1266_v47 = vpop.f32.mrf.mxu0 }
  0xef   : > { %v4462_v51 = vpack.c.bf16 %v1378_v46, %v1377_v45  ;;  %v1267_v9 = vadd.f32 %v4454_v37, %v1266_v47  ;;  %v1383_v34 = vmax.f32 %v1275_v63, 0.0  ;;  %v4025_v45 = vld [vmem:[%s5822_s2 + $0x58] ss:$40 sps:$4 sm:$0xff]   ;;  %v4036_v46 = vld [vmem:[%s5822_s2 + $0x154] ss:$40 sps:$4 sm:$0xff]  }
  0xf0   : > { %v3891_v53 = vpop.f32.mrf.mxu0 }
  0xf1   : > { %1566 = vmatmul.mubr.bf16.vlgmr.msra.gmra.mxu0 %v4462_v51  ;;  %v1381_v18 = vmax.f32 %v1267_v9, 0.0  ;;  %v1278_v20 = vadd.f32 %v3891_v53, %v4454_v37  ;;  %v4042_v9 = vld [vmem:[%s5822_s2 + $0xb4] ss:$40 sps:$4 sm:$0xff]  }
  0xf2   : > { %v1269_v55 = vpop.f32.mrf.mxu0  ;;  %1575 = vmatprep.mubr.bf16.mxu0 %v5827_v32  ;;  %1967 = vmatpush1.bf16.msra.mxu0 %v4001_v48  ;;  %v4030_v48 = vld [vmem:[%s5822_s2 + $0xc] ss:$40 sps:$4 sm:$0xff]  }
  0xf3   : > { %1968 = vmatprep.subr.bf16.mxu0 %v4006_v52  ;;  %v1270_v7 = vadd.f32 %v4454_v37, %v1269_v55  ;;  %v1384_v28 = vmax.f32 %v1278_v20, 0.0  ;;  %v4046_v20 = vld [vmem:[%s5822_s2 + $0x10] ss:$40 sps:$4 sm:$0xff]  }
  0xf4   : > { %v3894_v60 = vpop.f32.mrf.mxu0 }
  0xf5   : > { %v1291_v8 = vadd.f32 %v3894_v60, %v4454_v37  ;;  %v1382_v13 = vmax.f32 %v1270_v7, 0.0  ;;  %v4537_v40 = vpack.c.bf16 %v1384_v28, %v1383_v34  ;;  %v4037_v60 = vld [vmem:[%s5822_s2 + $0x100] ss:$40 sps:$4 sm:$0xff]  }
  0xf6   : > { %v4476_v62 = vpop.f32.mrf.mxu0  ;;  %1969 = vmatpush1.bf16.msra.mxu0 %v4004_v57 }
  0xf7   : > { %1970 = vmatprep.subr.bf16.mxu0 %v4012_v59  ;;  %v1387_v14 = vmax.f32 %v1291_v8, 0.0  ;;  %v4510_v44 = vpack.c.bf16 %v1382_v13, %v1381_v18  ;;  %v1283_v52 = vadd.f32 %v4454_v37, %v4476_v62 }
  0xf8   : > { %v3895_v6 = vpop.f32.mrf.mxu0 }
  0xf9   : > { %v1294_v10 = vadd.f32 %v3895_v6, %v4454_v37  ;;  %1576 = vmatmul.mubr.bf16.gmra.mxu0 %v4481_v2  ;;  %v1385_v62 = vmax.f32 %v1283_v52, 0.0 }
  0xfa   : > { %v1285_v11 = vpop.f32.mrf.mxu0  ;;  %1585 = vmatprep.mubr.bf16.mxu0 %v5827_v32  ;;  %1971 = vmatpush1.bf16.msra.mxu0 %v4010_v0 }
  0xfb   : > { %v1388_v15 = vmax.f32 %v1294_v10, 0.0  ;;  %1972 = vmatprep.subr.bf16.mxu0 %v4015_v4  ;;  %v1286_v41 = vadd.f32 %v4454_v37, %v1285_v11  ;;  %v4040_v11 = vld [vmem:[%s5822_s2 + $0xb0] ss:$40 sps:$4 sm:$0xff]  }
  0xfc   : > { %v3898_v21 = vpop.f32.mrf.mxu0 }
  0xfd   : > { %v4501_v19 = vpack.c.bf16 %v1388_v15, %v1387_v14  ;;  %v1307_v53 = vadd.f32 %v3898_v21, %v4454_v37  ;;  %v1386_v55 = vmax.f32 %v1286_v41, 0.0  ;;  %v4075_v41 = vld [vmem:[%s5822_s2 + $0x10c] ss:$40 sps:$4 sm:$0xff]  }
  0xfe   : > { %v1298_v39 = vpop.f32.mrf.mxu0  ;;  %1973 = vmatpush1.bf16.msra.mxu0 %v4013_v12  ;;  %v4045_v12 = vld [vmem:[%s5822_s2 + $0x64] ss:$40 sps:$4 sm:$0xff]  }
  0xff   : > { %1616 = vmatmul.mubr.bf16.vlgmr.msra.gmra.mxu1 %v4501_v19  ;;  %1974 = vmatprep.subr.bf16.mxu0 %v4018_v16  ;;  %v1299_v23 = vadd.f32 %v4454_v37, %v1298_v39  ;;  %v1391_v0 = vmax.f32 %v1307_v53, 0.0  ;;  %v4574_v7 = vpack.c.bf16 %v1386_v55, %v1385_v62  ;;  %v4043_v16 = vld [vmem:[%s5822_s2 + $0x60] ss:$40 sps:$4 sm:$0xff]  }
 0x100   : > { %v3899_v49 = vpop.f32.mrf.mxu0  ;;  %2400 = vmatpush1.bf16.msra.mxu1 %v4007_v17  ;;  %1625 = vmatprep.mubr.bf16.mxu1 %v5827_v32  ;;  %v4049_v39 = vld [vmem:[%s5822_s2 + $0x248] ss:$40 sps:$4 sm:$0xff]  }
 0x101   : > { %1586 = vmatmul.mubr.bf16.gmra.mxu0 %v4510_v44  ;;  %2401 = vmatprep.subr.bf16.mxu1 %v4021_v5  ;;  %v1389_v35 = vmax.f32 %v1299_v23, 0.0  ;;  %v1310_v42 = vadd.f32 %v3899_v49, %v4454_v37  ;;  %v4048_v5 = vld [vmem:[%s5822_s2 + $0x14] ss:$40 sps:$4 sm:$0xff]   ;;  %v4055_v23 = vld [vmem:[%s5822_s2 + $0x1f8] ss:$40 sps:$4 sm:$0xff]  }
 0x102   : > { %v1301_v25 = vpop.f32.mrf.mxu0  ;;  %1595 = vmatprep.mubr.bf16.mxu0 %v5827_v32  ;;  %1975 = vmatpush1.bf16.msra.mxu0 %v4016_v26  ;;  %v4054_v49 = vld [vmem:[%s5822_s2 + $0x254] ss:$40 sps:$4 sm:$0xff]  }
 0x103   : > { %v1302_v29 = vadd.f32 %v4454_v37, %v1301_v25  ;;  %1976 = vmatprep.subr.bf16.mxu0 %v4024_v22  ;;  %v1392_v57 = vmax.f32 %v1310_v42, 0.0  ;;  %v4057_v22 = vld [vmem:[%s5822_s2 + $0x1fc] ss:$40 sps:$4 sm:$0xff]   ;;  %v4063_v25 = vld [vmem:[%s5822_s2 + $0x1ac] ss:$40 sps:$4 sm:$0xff]  }
 0x104   : > { %v3902_v31 = vpop.f32.mrf.mxu0  ;;  %2402 = vmatpush1.bf16.msra.mxu1 %v4019_v56 }
 0x105   : > { %v1390_v36 = vmax.f32 %v1302_v29, 0.0  ;;  %2403 = vmatprep.subr.bf16.mxu1 %v4033_v24  ;;  %v4576_v8 = vpack.c.bf16 %v1392_v57, %v1391_v0  ;;  %v1323_v21 = vadd.f32 %v3902_v31, %v4454_v37  ;;  %v4081_v57 = vld [vmem:[%s5822_s2 + $0x6c] ss:$40 sps:$4 sm:$0xff]   ;;  %v4084_v0 = vld [vmem:[%s5822_s2 + $0x1c] ss:$40 sps:$4 sm:$0xff]  }
 0x106   : > { %v1314_v38 = vpop.f32.mrf.mxu0  ;;  %1977 = vmatpush1.bf16.msra.mxu0 %v4022_v27 }
 0x107   : > { %v4541_v43 = vpack.c.bf16 %v1390_v36, %v1389_v35  ;;  %1978 = vmatprep.subr.bf16.mxu0 %v4027_v30  ;;  %v1315_v4 = vadd.f32 %v4454_v37, %v1314_v38  ;;  %v1395_v56 = vmax.f32 %v1323_v21, 0.0  ;;  %v4061_v30 = vld [vmem:[%s5822_s2 + $0x1a8] ss:$40 sps:$4 sm:$0xff]   ;;  %v4067_v36 = vld [vmem:[%s5822_s2 + $0x158] ss:$40 sps:$4 sm:$0xff]  }
 0x108   : > { %v3903_v47 = vpop.f32.mrf.mxu0  ;;  %2404 = vmatpush1.bf16.msra.mxu1 %v4031_v33  ;;  %v4069_v33 = vld [vmem:[%s5822_s2 + $0x15c] ss:$40 sps:$4 sm:$0xff]  }
 0x109   : > { %1596 = vmatmul.mubr.bf16.gmra.mxu0 %v4537_v40  ;;  %1626 = vmatmul.mubr.bf16.gmra.mxu1 %v4541_v43  ;;  %v1393_v13 = vmax.f32 %v1315_v4, 0.0  ;;  %v1326_v17 = vadd.f32 %v3903_v47, %v4454_v37  ;;  %v4073_v47 = vld [vmem:[%s5822_s2 + $0x108] ss:$40 sps:$4 sm:$0xff]  }
 0x10a   : > { %1605 = vmatprep.mubr.bf16.mxu0 %v5827_v32  ;;  %1635 = vmatprep.mubr.bf16.mxu1 %v5827_v32  ;;  %v1317_v59 = vpop.f32.mrf.mxu0 }
 0x10b   : > { %1979 = vmatpush1.bf16.msra.mxu0 %v4025_v45  ;;  %2405 = vmatprep.subr.bf16.mxu1 %v4036_v46  ;;  %v1318_v6 = vadd.f32 %v4454_v37, %v1317_v59  ;;  %v1396_v63 = vmax.f32 %v1326_v17, 0.0 }
 0x10c   : > { %1980 = vmatprep.subr.bf16.mxu0 %v4030_v48  ;;  %2406 = vmatpush1.bf16.msra.mxu1 %v4034_v50  ;;  %v3906_v10 = vpop.f32.mrf.mxu0  ;;  %v4078_v50 = vld [vmem:[%s5822_s2 + $0xbc] ss:$40 sps:$4 sm:$0xff]  }
 0x10d   : > { %2407 = vmatprep.subr.bf16.mxu1 %v4039_v54  ;;  %v1394_v14 = vmax.f32 %v1318_v6, 0.0  ;;  %v4625_v27 = vpack.c.bf16 %v1396_v63, %v1395_v56  ;;  %v1339_v42 = vadd.f32 %v3906_v10, %v4454_v37  ;;  %v4076_v54 = vld [vmem:[%s5822_s2 + $0xb8] ss:$40 sps:$4 sm:$0xff]  }
 0x10e   : > { %v1330_v15 = vpop.f32.mrf.mxu0 }
 0x10f   : > { %1981 = vmatpush1.bf16.msra.mxu0 %v4028_v58  ;;  %v4598_v18 = vpack.c.bf16 %v1394_v14, %v1393_v13  ;;  %v1331_v28 = vadd.f32 %v4454_v37, %v1330_v15  ;;  %v1399_v52 = vmax.f32 %v1339_v42, 0.0  ;;  %v4091_v42 = vld [vmem:[%s5822_s2 + $0x70] ss:$40 sps:$4 sm:$0xff]  }
 0x110   : > { %2408 = vmatpush1.bf16.msra.mxu1 %v4037_v60  ;;  %2832 = vmatprep.subr.bf16.mxu0 %v4051_v61  ;;  %v3907_v26 = vpop.f32.mrf.mxu0  ;;  %v4079_v61 = vld [vmem:[%s5822_s2 + $0x68] ss:$40 sps:$4 sm:$0xff]  }
 0x111   : > { %1606 = vmatmul.mubr.bf16.gmra.mxu0 %v4574_v7  ;;  %1636 = vmatmul.mubr.bf16.gmra.mxu1 %v4576_v8  ;;  %v1397_v34 = vmax.f32 %v1331_v28, 0.0  ;;  %v1342_v45 = vadd.f32 %v3907_v26, %v4454_v37  ;;  %v4058_v28 = vld [vmem:[%s5822_s2 + $0x200] ss:$40 sps:$4 sm:$0xff]  }
 0x112   : > { %1645 = vmatprep.mubr.bf16.mxu1 %v5827_v32  ;;  %1998 = vmatprep.mubr.bf16.mxu0 %v5827_v32  ;;  %v1333_v24 = vpop.f32.mrf.mxu0 }
 0x113   : > { %2409 = vmatprep.subr.bf16.mxu1 %v4042_v9  ;;  %v1334_v29 = vadd.f32 %v4454_v37, %v1333_v24  ;;  %v1400_v53 = vmax.f32 %v1342_v45, 0.0  ;;  %v4082_v9 = vld [vmem:[%s5822_s2 + $0x18] ss:$40 sps:$4 sm:$0xff]   ;;  %v4096_v45 = vld [vmem:[%s5822_s2 + $0x24] ss:$40 sps:$4 sm:$0xff]  }
 0x114   : > { %2410 = vmatpush1.bf16.msra.mxu1 %v4040_v11  ;;  %v3910_v31 = vpop.f32.mrf.mxu0 }
 0x115   : > { %2411 = vmatprep.subr.bf16.mxu1 %v4045_v12  ;;  %v1398_v35 = vmax.f32 %v1334_v29, 0.0  ;;  %v4665_v58 = vpack.c.bf16 %v1400_v53, %v1399_v52  ;;  %v1355_v11 = vadd.f32 %v3910_v31, %v4454_v37  ;;  %v4066_v29 = vld [vmem:[%s5822_s2 + $0x1b4] ss:$40 sps:$4 sm:$0xff]   ;;  %v4072_v31 = vld [vmem:[%s5822_s2 + $0x164] ss:$40 sps:$4 sm:$0xff]  }
 0x116   : > { %v1346_v38 = vpop.f32.mrf.mxu0 }
 0x117   : > { %v4647_v46 = vpack.c.bf16 %v1398_v35, %v1397_v34  ;;  %5835 = vst [vmem:[#allocation10_spill] sm:$0xff] %v4665_v58  ;;  %v1347_v59 = vadd.f32 %v4454_v37, %v1346_v38  ;;  %v1403_v15 = vmax.f32 %v1355_v11, 0.0  ;;  %v4087_v34 = vld [vmem:[%s5822_s2 + $0x114] ss:$40 sps:$4 sm:$0xff]   ;;  %v4085_v35 = vld [vmem:[%s5822_s2 + $0x110] ss:$40 sps:$4 sm:$0xff]  }
 0x118   : > { %2412 = vmatpush1.bf16.msra.mxu1 %v4043_v16  ;;  %v3911_v48 = vpop.f32.mrf.mxu0  ;;  %v4088_v38 = vld [vmem:[%s5822_s2 + $0xc0] ss:$40 sps:$4 sm:$0xff]  }
 0x119   : > { %1646 = vmatmul.mubr.bf16.gmra.mxu1 %v4598_v18  ;;  %1999 = vmatmul.mubr.bf16.vlgmr.msra.gmra.mxu0 %v4462_v51  ;;  %v1401_v4 = vmax.f32 %v1347_v59, 0.0  ;;  %v1358_v12 = vadd.f32 %v3911_v48, %v4454_v37 }
 0x11a   : > { %1655 = vmatprep.mubr.bf16.mxu1 %v5827_v32  ;;  %2008 = vmatprep.mubr.bf16.mxu0 %v5827_v32  ;;  %v1349_v55 = vpop.f32.mrf.mxu0 }
 0x11b   : > { %2413 = vmatprep.subr.bf16.mxu1 %v4048_v5  ;;  %2833 = vmatpush1.bf16.msra.mxu0 %v4049_v39  ;;  %v1350_v60 = vadd.f32 %v4454_v37, %v1349_v55  ;;  %v1404_v16 = vmax.f32 %v1358_v12, 0.0 }
 0x11c   : > { %2414 = vmatpush1.bf16.msra.mxu1 %v4046_v20  ;;  %2834 = vmatprep.subr.bf16.mxu0 %v4057_v22  ;;  %v3914_v62 = vpop.f32.mrf.mxu0 }
 0x11d   : > { %3265 = vmatprep.subr.bf16.mxu1 %v4054_v49  ;;  %v1402_v6 = vmax.f32 %v1350_v60, 0.0  ;;  %v4690_v17 = vpack.c.bf16 %v1404_v16, %v1403_v15  ;;  %v1371_v22 = vadd.f32 %v3914_v62, %v4454_v37  ;;  %v1441_v60 = vld [vmem:[%s5823_s3] sm:$0x3] }
 0x11e   : > { %v1362_v10 = vpop.f32.mrf.mxu0 }
 0x11f   : > { %2835 = vmatpush1.bf16.msra.mxu0 %v4055_v23  ;;  %v4684_v13 = vpack.c.bf16 %v1402_v6, %v1401_v4  ;;  %5837 = vst [vmem:[#allocation12_spill] sm:$0xff] %v4690_v17  ;;  %v1363_v5 = vadd.f32 %v4454_v37, %v1362_v10  ;;  %v1407_v63 = vmax.f32 %v1371_v22, 0.0 }
 0x120   : > { %2836 = vmatprep.subr.bf16.mxu0 %v4063_v25  ;;  %v3915_v14 = vpop.f32.mrf.mxu0  ;;  %v4060_v25 = vld [vmem:[%s5822_s2 + $0x204] ss:$40 sps:$4 sm:$0xff]  }
 0x121   : > { %1656 = vmatmul.mubr.bf16.gmra.mxu1 %v4625_v27  ;;  %2009 = vmatmul.mubr.bf16.gmra.mxu0 %v4481_v2  ;;  %5836 = vst [vmem:[#allocation11_spill] sm:$0xff] %v4684_v13  ;;  %v1405_v26 = vmax.f32 %v1363_v5, 0.0  ;;  %v1374_v49 = vadd.f32 %v3915_v14, %v4454_v37 }
 0x122   : > { %1665 = vmatprep.mubr.bf16.mxu1 %v5827_v32  ;;  %2018 = vmatprep.mubr.bf16.mxu0 %v5827_v32  ;;  %v1365_v21 = vpop.f32.mrf.mxu0 }
 0x123   : > { %2837 = vmatpush1.bf16.msra.mxu0 %v4061_v30  ;;  %v1366_v39 = vadd.f32 %v4454_v37, %v1365_v21  ;;  %v1408_v23 = vmax.f32 %v1374_v49, 0.0  ;;  %v4052_v37 = vld [vmem:[%s5822_s2 + $0x250] ss:$40 sps:$4 sm:$0xff]  }
 0x124   : > { %2838 = vmatprep.subr.bf16.mxu0 %v4069_v33  ;;  %v4064_v30 = vld [vmem:[%s5822_s2 + $0x1b0] ss:$40 sps:$4 sm:$0xff]   ;;  %v4070_v33 = vld [vmem:[%s5822_s2 + $0x160] ss:$40 sps:$4 sm:$0xff]  }
 0x125   : > { %v1406_v20 = vmax.f32 %v1366_v39, 0.0  ;;  %v4706_v24 = vpack.c.bf16 %v1408_v23, %v1407_v63 }
 0x127   : > { %2839 = vmatpush1.bf16.msra.mxu0 %v4067_v36  ;;  %v4700_v56 = vpack.c.bf16 %v1406_v20, %v1405_v26  ;;  %v4090_v36 = vld [vmem:[%s5822_s2 + $0xc4] ss:$40 sps:$4 sm:$0xff]  }
 0x128   : > { %2840 = vmatprep.subr.bf16.mxu0 %v4075_v41  ;;  %v4093_v41 = vld [vmem:[%s5822_s2 + $0x74] ss:$40 sps:$4 sm:$0xff]  }
 0x129   : > { %1666 = vmatmul.mubr.bf16.gmra.mxu1 %v4647_v46  ;;  %2019 = vmatmul.mubr.bf16.gmra.mxu0 %v4510_v44 }
 0x12a   : > { %1675 = vmatprep.mubr.bf16.mxu1 %v5827_v32  ;;  %2028 = vmatprep.mubr.bf16.mxu0 %v5827_v32 }
 0x12b   : > { %2841 = vmatpush1.bf16.msra.mxu0 %v4073_v47  ;;  %v4094_v47 = vld [vmem:[%s5822_s2 + $0x20] ss:$40 sps:$4 sm:$0xff]  }
 0x12c   : > { %2842 = vmatprep.subr.bf16.mxu0 %v4078_v50 }
 0x12f   : > { %2843 = vmatpush1.bf16.msra.mxu0 %v4076_v54  ;;  %v1444_v54 = vshrl.u32 %v295_v3, 7 }
 0x130   : > { %2844 = vmatprep.subr.bf16.mxu0 %v4081_v57 }
 0x131   : > { %1676 = vmatmul.mubr.bf16.gmra.mxu1 %v4665_v58  ;;  %2029 = vmatmul.mubr.bf16.gmra.mxu0 %v4537_v40  ;;  %v4810_v59 = vsub.s32 0, %v1444_v54 }
 0x132   : > { %1685 = vmatprep.mubr.bf16.mxu1 %v5827_v32  ;;  %2038 = vmatprep.mubr.bf16.mxu0 %v5827_v32 }
 0x133   : > { %2845 = vmatpush1.bf16.msra.mxu0 %v4079_v61  ;;  %v4815_v61 = vsub.s32 1, %v1444_v54  ;;  %v4820_v4 = vrot.slane %v1441_v60, %v4810_v59 }
 0x134   : > { %2846 = vmatprep.subr.bf16.mxu0 %v4084_v0 }
 0x135   : > { %v4823_v6 = vrot.slane %v1441_v60, %v4815_v61 }
 0x137   : > { %2847 = vmatpush1.bf16.msra.mxu0 %v4082_v9 }
 0x139   : > { %1686 = vmatmul.mubr.bf16.gmra.mxu1 %v4684_v13  ;;  %2039 = vmatmul.mubr.bf16.gmra.mxu0 %v4574_v7 }
 0x13a   : > { %1695 = vmatprep.mubr.bf16.mxu1 %v5827_v32  ;;  %2048 = vmatprep.mubr.bf16.mxu0 %v5827_v32 }
 0x141   : > { %1696 = vmatmul.mubr.bf16.gmra.mxu1 %v4690_v17  ;;  %2049 = vmatmul.mubr.bf16.gmra.mxu0 %v4501_v19 }
 0x142   : > { %1705 = vmatprep.mubr.bf16.mxu1 %v5827_v32  ;;  %2058 = vmatprep.mubr.bf16.mxu0 %v5827_v32 }
 0x149   : > { %1706 = vmatmul.mubr.bf16.gmra.mxu1 %v4700_v56  ;;  %2059 = vmatmul.mubr.bf16.gmra.mxu0 %v4541_v43 }
 0x14a   : > { %1715 = vmatprep.mubr.bf16.mxu1 %v5827_v32  ;;  %2068 = vmatprep.mubr.bf16.mxu0 %v5827_v32 }
 0x151   : > { %1716 = vmatmul.mubr.bf16.gmra.mxu1 %v4706_v24  ;;  %2069 = vmatmul.mubr.bf16.gmra.mxu0 %v4576_v8 }
 0x152   : > { %2078 = vmatprep.mubr.bf16.mxu0 %v5827_v32  ;;  %2431 = vmatprep.mubr.bf16.mxu1 %v5827_v32 }
 0x159   : > { %2079 = vmatmul.mubr.bf16.gmra.mxu0 %v4598_v18  ;;  %2432 = vmatmul.mubr.bf16.vlgmr.msra.gmra.mxu1 %v4462_v51 }
 0x15a   : > { %3266 = vmatpush1.bf16.msra.mxu1 %v4052_v37  ;;  %2088 = vmatprep.mubr.bf16.mxu0 %v5827_v32 }
 0x15b   : > { %2441 = vmatprep.mubr.bf16.mxu1 %v5827_v32  ;;  %3267 = vmatprep.subr.bf16.mxu1 %v4060_v25 }
 0x15e   : > { %3268 = vmatpush1.bf16.msra.mxu1 %v4058_v28 }
 0x15f   : > { %3269 = vmatprep.subr.bf16.mxu1 %v4066_v29 }
 0x161   : > { %2089 = vmatmul.mubr.bf16.gmra.mxu0 %v4625_v27  ;;  %2442 = vmatmul.mubr.bf16.gmra.mxu1 %v4481_v2 }
 0x162   : > { %2098 = vmatprep.mubr.bf16.mxu0 %v5827_v32  ;;  %2451 = vmatprep.mubr.bf16.mxu1 %v5827_v32 }
 0x163   : > { %3270 = vmatpush1.bf16.msra.mxu1 %v4064_v30 }
 0x164   : > { %3271 = vmatprep.subr.bf16.mxu1 %v4072_v31 }
 0x167   : > { %3272 = vmatpush1.bf16.msra.mxu1 %v4070_v33 }
 0x168   : > { %3273 = vmatprep.subr.bf16.mxu1 %v4087_v34 }
 0x169   : > { %2099 = vmatmul.mubr.bf16.gmra.mxu0 %v4647_v46  ;;  %2452 = vmatmul.mubr.bf16.gmra.mxu1 %v4510_v44 }
 0x16a   : > { %2108 = vmatprep.mubr.bf16.mxu0 %v5827_v32  ;;  %2461 = vmatprep.mubr.bf16.mxu1 %v5827_v32 }
 0x16b   : > { %3274 = vmatpush1.bf16.msra.mxu1 %v4085_v35 }
 0x16c   : > { %3275 = vmatprep.subr.bf16.mxu1 %v4090_v36 }
 0x16f   : > { %3276 = vmatpush1.bf16.msra.mxu1 %v4088_v38 }
 0x170   : > { %3277 = vmatprep.subr.bf16.mxu1 %v4093_v41 }
 0x171   : > { %2109 = vmatmul.mubr.bf16.gmra.mxu0 %v4665_v58  ;;  %2462 = vmatmul.mubr.bf16.gmra.mxu1 %v4537_v40 }
 0x172   : > { %2118 = vmatprep.mubr.bf16.mxu0 %v5827_v32  ;;  %2471 = vmatprep.mubr.bf16.mxu1 %v5827_v32 }
 0x173   : > { %3278 = vmatpush1.bf16.msra.mxu1 %v4091_v42 }
 0x174   : > { %3279 = vmatprep.subr.bf16.mxu1 %v4096_v45 }
 0x177   : > { %3280 = vmatpush1.bf16.msra.mxu1 %v4094_v47 }
 0x179   : > { %2119 = vmatmul.mubr.bf16.gmra.mxu0 %v4684_v13  ;;  %2472 = vmatmul.mubr.bf16.gmra.mxu1 %v4574_v7 }
 0x17a   : > { %2128 = vmatprep.mubr.bf16.mxu0 %v5827_v32  ;;  %2481 = vmatprep.mubr.bf16.mxu1 %v5827_v32 }
 0x181   : > { %2129 = vmatmul.mubr.bf16.gmra.mxu0 %v4690_v17  ;;  %2482 = vmatmul.mubr.bf16.gmra.mxu1 %v4501_v19 }
 0x182   : > { %2138 = vmatprep.mubr.bf16.mxu0 %v5827_v32  ;;  %2491 = vmatprep.mubr.bf16.mxu1 %v5827_v32 }
 0x189   : > { %2139 = vmatmul.mubr.bf16.gmra.mxu0 %v4700_v56  ;;  %2492 = vmatmul.mubr.bf16.gmra.mxu1 %v4541_v43 }
 0x18a   : > { %2148 = vmatprep.mubr.bf16.mxu0 %v5827_v32  ;;  %2501 = vmatprep.mubr.bf16.mxu1 %v5827_v32 }
 0x191   : > { %2149 = vmatmul.mubr.bf16.gmra.mxu0 %v4706_v24  ;;  %2502 = vmatmul.mubr.bf16.gmra.mxu1 %v4576_v8 }
 0x192   : > { %2511 = vmatprep.mubr.bf16.mxu1 %v5827_v32  ;;  %2864 = vmatprep.mubr.bf16.mxu0 %v5827_v32 }
 0x199   : > { %2512 = vmatmul.mubr.bf16.gmra.mxu1 %v4598_v18  ;;  %2865 = vmatmul.mubr.bf16.vlgmr.msra.gmra.mxu0 %v4462_v51 }
 0x19a   : > { %2521 = vmatprep.mubr.bf16.mxu1 %v5827_v32  ;;  %2874 = vmatprep.mubr.bf16.mxu0 %v5827_v32 }
 0x1a1   : > { %2522 = vmatmul.mubr.bf16.gmra.mxu1 %v4625_v27  ;;  %2875 = vmatmul.mubr.bf16.gmra.mxu0 %v4481_v2 }
 0x1a2   : > { %2531 = vmatprep.mubr.bf16.mxu1 %v5827_v32  ;;  %2884 = vmatprep.mubr.bf16.mxu0 %v5827_v32 }
 0x1a9   : > { %2532 = vmatmul.mubr.bf16.gmra.mxu1 %v4647_v46  ;;  %2885 = vmatmul.mubr.bf16.gmra.mxu0 %v4510_v44 }
 0x1aa   : > { %2541 = vmatprep.mubr.bf16.mxu1 %v5827_v32  ;;  %2894 = vmatprep.mubr.bf16.mxu0 %v5827_v32 }
 0x1b1   : > { %v1567_v48 = vpop.f32.mrf.mxu0  ;;  %2542 = vmatmul.mubr.bf16.gmra.mxu1 %v4665_v58  ;;  %2895 = vmatmul.mubr.bf16.gmra.mxu0 %v4537_v40 }
 0x1b2   : > { %2551 = vmatprep.mubr.bf16.mxu1 %v5827_v32  ;;  %2904 = vmatprep.mubr.bf16.mxu0 %v5827_v32  ;;  %v1568_v16 = vadd.f32 %v1567_v48, %v4820_v4 }
 0x1b3   : > { %v1569_v50 = vpop.f32.mrf.mxu0 }
 0x1b4   : > { %v1570_v5 = vadd.f32 %v1569_v50, %v4823_v6  ;;  %v1726_v25 = vmax.f32 %v1568_v16, 0.0 }
 0x1b5   : > { %v1571_v52 = vpop.f32.mrf.mxu0 }
 0x1b6   : > { %v1572_v11 = vadd.f32 %v1571_v52, %v4820_v4  ;;  %v1727_v30 = vmax.f32 %v1570_v5, 0.0 }
 0x1b7   : > { %v1573_v53 = vpop.f32.mrf.mxu0 }
 0x1b8   : > { %v1574_v12 = vadd.f32 %v1573_v53, %v4823_v6  ;;  %v1728_v20 = vmax.f32 %v1572_v11, 0.0 }
 0x1b9   : > { %v1577_v55 = vpop.f32.mrf.mxu0  ;;  %2552 = vmatmul.mubr.bf16.gmra.mxu1 %v4684_v13  ;;  %2905 = vmatmul.mubr.bf16.gmra.mxu0 %v4574_v7 }
 0x1ba   : > { %2561 = vmatprep.mubr.bf16.mxu1 %v5827_v32  ;;  %2914 = vmatprep.mubr.bf16.mxu0 %v5827_v32  ;;  %v1578_v21 = vadd.f32 %v1577_v55, %v4820_v4  ;;  %v1729_v49 = vmax.f32 %v1574_v12, 0.0  ;;  %v1790_v36 = vadd.f32 %v1728_v20, %v1726_v25 }
 0x1bb   : > { %v1579_v57 = vpop.f32.mrf.mxu0 }
 0x1bc   : > { %v1580_v39 = vadd.f32 %v1579_v57, %v4823_v6  ;;  %v1730_v28 = vmax.f32 %v1578_v21, 0.0  ;;  %v1821_v42 = vadd.f32 %v1729_v49, %v1727_v30 }
 0x1bd   : > { %v1581_v62 = vpop.f32.mrf.mxu0 }
 0x1be   : > { %v1582_v22 = vadd.f32 %v1581_v62, %v4820_v4  ;;  %v1731_v31 = vmax.f32 %v1580_v39, 0.0  ;;  %v1791_v52 = vadd.f32 %v1790_v36, %v1730_v28 }
 0x1bf   : > { %v1583_v3 = vpop.f32.mrf.mxu0  ;;  %v4817_v0 = vpop.f32.mrf.mxu1 }
 0x1c0   : > { %v1584_v63 = vadd.f32 %v1583_v3, %v4823_v6  ;;  %v1732_v38 = vmax.f32 %v1582_v22, 0.0  ;;  %v1822_v55 = vadd.f32 %v1821_v42, %v1731_v31  ;;  %v1618_v42 = vadd.f32 %v4817_v0, %v4820_v4 }
 0x1c1   : > { %v1587_v9 = vpop.f32.mrf.mxu0  ;;  %v4825_v10 = vpop.f32.mrf.mxu1  ;;  %2562 = vmatmul.mubr.bf16.gmra.mxu1 %v4690_v17  ;;  %2915 = vmatmul.mubr.bf16.gmra.mxu0 %v4501_v19 }
 0x1c2   : > { %2571 = vmatprep.mubr.bf16.mxu1 %v5827_v32  ;;  %2924 = vmatprep.mubr.bf16.mxu0 %v5827_v32  ;;  %v1588_v29 = vadd.f32 %v1587_v9, %v4820_v4  ;;  %v1733_v45 = vmax.f32 %v1584_v63, 0.0  ;;  %v1792_v3 = vadd.f32 %v1791_v52, %v1732_v38 }
 0x1c3   : > { %v1589_v14 = vpop.f32.mrf.mxu0  ;;  %v4833_v15 = vpop.f32.mrf.mxu1 }
 0x1c4   : > { %v1590_v33 = vadd.f32 %v1589_v14, %v4823_v6  ;;  %v1734_v53 = vmax.f32 %v1588_v29, 0.0  ;;  %v1823_v14 = vadd.f32 %v1822_v55, %v1733_v45  ;;  %v1620_v55 = vadd.f32 %v4825_v10, %v4823_v6 }
 0x1c5   : > { %v1591_v26 = vpop.f32.mrf.mxu0  ;;  %v4841_v23 = vpop.f32.mrf.mxu1 }
 0x1c6   : > { %v1592_v41 = vadd.f32 %v1591_v26, %v4820_v4  ;;  %v1735_v57 = vmax.f32 %v1590_v33, 0.0  ;;  %v1793_v39 = vadd.f32 %v1792_v3, %v1734_v53  ;;  %v1624_v10 = vadd.f32 %v4841_v23, %v4823_v6 }
 0x1c7   : > { %v1593_v37 = vpop.f32.mrf.mxu0 }
 0x1c8   : > { %v1594_v47 = vadd.f32 %v1593_v37, %v4823_v6  ;;  %v1736_v9 = vmax.f32 %v1592_v41, 0.0  ;;  %v1824_v22 = vadd.f32 %v1823_v14, %v1735_v57  ;;  %v1622_v57 = vadd.f32 %v4833_v15, %v4820_v4 }
 0x1c9   : > { %v1597_v34 = vpop.f32.mrf.mxu0  ;;  %v4845_v35 = vpop.f32.mrf.mxu1  ;;  %2572 = vmatmul.mubr.bf16.gmra.mxu1 %v4700_v56  ;;  %2925 = vmatmul.mubr.bf16.gmra.mxu0 %v4541_v43  ;;  %v1746_v14 = vmax.f32 %v1618_v42, 0.0 }
 0x1ca   : > { %2581 = vmatprep.mubr.bf16.mxu1 %v5827_v32  ;;  %2934 = vmatprep.mubr.bf16.mxu0 %v5827_v32  ;;  %v1598_v54 = vadd.f32 %v1597_v34, %v4820_v4  ;;  %v1737_v16 = vmax.f32 %v1594_v47, 0.0  ;;  %v1794_v37 = vadd.f32 %v1793_v39, %v1736_v9 }
 0x1cb   : > { %v1599_v48 = vpop.f32.mrf.mxu0  ;;  %v4853_v50 = vpop.f32.mrf.mxu1 }
 0x1cc   : > { %v1600_v11 = vadd.f32 %v1599_v48, %v4823_v6  ;;  %v1738_v26 = vmax.f32 %v1598_v54, 0.0  ;;  %v1825_v30 = vadd.f32 %v1824_v22, %v1737_v16  ;;  %v1630_v23 = vadd.f32 %v4853_v50, %v4823_v6 }
 0x1cd   : > { %v1601_v60 = vpop.f32.mrf.mxu0  ;;  %v4856_v62 = vpop.f32.mrf.mxu1 }
 0x1ce   : > { %v1602_v12 = vadd.f32 %v1601_v60, %v4820_v4  ;;  %v1739_v25 = vmax.f32 %v1600_v11, 0.0  ;;  %v1795_v34 = vadd.f32 %v1794_v37, %v1738_v26  ;;  %v1748_v37 = vmax.f32 %v1622_v57, 0.0 }
 0x1cf   : > { %v1603_v21 = vpop.f32.mrf.mxu0  ;;  %v4860_v5 = vpop.f32.mrf.mxu1 }
 0x1d0   : > { %v1604_v20 = vadd.f32 %v1603_v21, %v4823_v6  ;;  %v1740_v28 = vmax.f32 %v1602_v12, 0.0  ;;  %v1826_v48 = vadd.f32 %v1825_v30, %v1739_v25  ;;  %v1628_v25 = vadd.f32 %v4845_v35, %v4820_v4 }
 0x1d1   : > { %v1607_v49 = vpop.f32.mrf.mxu0  ;;  %v4863_v63 = vpop.f32.mrf.mxu1  ;;  %2582 = vmatmul.mubr.bf16.gmra.mxu1 %v4706_v24  ;;  %2935 = vmatmul.mubr.bf16.gmra.mxu0 %v4576_v8  ;;  %v1751_v35 = vmax.f32 %v1630_v23, 0.0 }
 0x1d2   : > { %v1608_v29 = vadd.f32 %v1607_v49, %v4820_v4  ;;  %2944 = vmatprep.mubr.bf16.mxu0 %v5827_v32  ;;  %3297 = vmatprep.mubr.bf16.mxu1 %v5827_v32  ;;  %v1741_v36 = vmax.f32 %v1604_v20, 0.0  ;;  %v1796_v52 = vadd.f32 %v1795_v34, %v1740_v28  ;;  %v1747_v20 = vmax.f32 %v1620_v55, 0.0 }
 0x1d3   : > { %v1609_v31 = vpop.f32.mrf.mxu0  ;;  %v4870_v33 = vpop.f32.mrf.mxu1  ;;  %v1750_v42 = vmax.f32 %v1628_v25, 0.0 }
 0x1d4   : > { %v1742_v38 = vmax.f32 %v1608_v29, 0.0  ;;  %v1610_v41 = vadd.f32 %v1609_v31, %v4823_v6  ;;  %v1827_v9 = vadd.f32 %v1826_v48, %v1741_v36  ;;  %v1749_v31 = vmax.f32 %v1624_v10, 0.0 }
 0x1d5   : > { %v1611_v45 = vpop.f32.mrf.mxu0  ;;  %v4875_v47 = vpop.f32.mrf.mxu1 }
 0x1d6   : > { %v1743_v53 = vmax.f32 %v1610_v41, 0.0  ;;  %v1612_v54 = vadd.f32 %v1611_v45, %v4820_v4  ;;  %v1797_v11 = vadd.f32 %v1796_v52, %v1742_v38  ;;  %v1632_v45 = vadd.f32 %v4856_v62, %v4820_v4 }
 0x1d7   : > { %v1613_v60 = vpop.f32.mrf.mxu0  ;;  %v1643_v3 = vpop.f32.mrf.mxu1  ;;  %v1634_v52 = vadd.f32 %v4860_v5, %v4823_v6  ;;  %v1638_v5 = vadd.f32 %v4863_v63, %v4820_v4 }
 0x1d8   : > { %v1744_v12 = vmax.f32 %v1612_v54, 0.0  ;;  %v1614_v0 = vadd.f32 %v1613_v60, %v4823_v6  ;;  %v1828_v15 = vadd.f32 %v1827_v9, %v1743_v53  ;;  %v1752_v62 = vmax.f32 %v1632_v45, 0.0 }
 0x1d9   : > { %v4883_v16 = vpop.f32.mrf.mxu1  ;;  %v4885_v21 = vpop.f32.mrf.mxu0  ;;  %2945 = vmatmul.mubr.bf16.gmra.mxu0 %v4598_v18  ;;  %3298 = vmatmul.mubr.bf16.vlgmr.msra.gmra.mxu1 %v4462_v51  ;;  %v1753_v9 = vmax.f32 %v1634_v52, 0.0 }
 0x1da   : > { %v1798_v39 = vadd.f32 %v1797_v11, %v1744_v12  ;;  %v1745_v26 = vmax.f32 %v1614_v0, 0.0  ;;  %2954 = vmatprep.mubr.bf16.mxu0 %v5827_v32  ;;  %3307 = vmatprep.mubr.bf16.mxu1 %v5827_v32  ;;  %v1640_v11 = vadd.f32 %v4870_v33, %v4823_v6 }
 0x1db   : > { %v1649_v22 = vpop.f32.mrf.mxu1  ;;  %v4893_v49 = vpop.f32.mrf.mxu0 }
 0x1dc   : > { %v1799_v28 = vadd.f32 %v1798_v39, %v1746_v14  ;;  %v1829_v51 = vadd.f32 %v1828_v15, %v1745_v26  ;;  %v1754_v39 = vmax.f32 %v1638_v5, 0.0  ;;  %v1642_v26 = vadd.f32 %v4875_v47, %v4820_v4 }
 0x1dd   : > { %v1651_v29 = vpop.f32.mrf.mxu1  ;;  %v4899_v30 = vpop.f32.mrf.mxu0 }
 0x1de   : > { %v1800_v34 = vadd.f32 %v1799_v28, %v1748_v37  ;;  %v1830_v36 = vadd.f32 %v1829_v51, %v1747_v20  ;;  %v1755_v20 = vmax.f32 %v1640_v11, 0.0  ;;  %v1644_v37 = vadd.f32 %v1643_v3, %v4823_v6 }
 0x1df   : > { %v1653_v38 = vpop.f32.mrf.mxu1  ;;  %v4901_v41 = vpop.f32.mrf.mxu0  ;;  %v1756_v47 = vmax.f32 %v1642_v26, 0.0  ;;  %v1648_v3 = vadd.f32 %v4883_v16, %v4820_v4 }
 0x1e0   : > { %v1831_v48 = vadd.f32 %v1830_v36, %v1749_v31  ;;  %v1801_v54 = vadd.f32 %v1800_v34, %v1750_v42  ;;  %v1757_v31 = vmax.f32 %v1644_v37, 0.0  ;;  %v1650_v34 = vadd.f32 %v1649_v22, %v4823_v6 }
 0x1e1   : > { %v1657_v53 = vpop.f32.mrf.mxu1  ;;  %v4907_v50 = vpop.f32.mrf.mxu0  ;;  %2955 = vmatmul.mubr.bf16.gmra.mxu0 %v4625_v27  ;;  %3308 = vmatmul.mubr.bf16.gmra.mxu1 %v4481_v2  ;;  %v1758_v52 = vmax.f32 %v1648_v3, 0.0 }
 0x1e2   : > { %2964 = vmatprep.mubr.bf16.mxu0 %v5827_v32  ;;  %v1832_v55 = vadd.f32 %v1831_v48, %v1751_v35  ;;  %3317 = vmatprep.mubr.bf16.mxu1 %v5827_v32  ;;  %v1802_v2 = vadd.f32 %v1801_v54, %v1752_v62  ;;  %v1652_v54 = vadd.f32 %v1651_v29, %v4820_v4 }
 0x1e3   : > { %v1659_v57 = vpop.f32.mrf.mxu1  ;;  %v4912_v60 = vpop.f32.mrf.mxu0  ;;  %v1654_v62 = vadd.f32 %v1653_v38, %v4823_v6 }
 0x1e4   : > { %v1833_v14 = vadd.f32 %v1832_v55, %v1753_v9  ;;  %v1803_v33 = vadd.f32 %v1802_v2, %v1754_v39  ;;  %v1759_v55 = vmax.f32 %v1650_v34, 0.0  ;;  %v1760_v29 = vmax.f32 %v1652_v54, 0.0 }
 0x1e5   : > { %v1661_v12 = vpop.f32.mrf.mxu1  ;;  %v4919_v0 = vpop.f32.mrf.mxu0  ;;  %v1761_v38 = vmax.f32 %v1654_v62, 0.0  ;;  %v1660_v39 = vadd.f32 %v1659_v57, %v4823_v6 }
 0x1e6   : > { %v1834_v28 = vadd.f32 %v1833_v14, %v1755_v20  ;;  %v1658_v14 = vadd.f32 %v1657_v53, %v4820_v4  ;;  %v1662_v3 = vadd.f32 %v1661_v12, %v4820_v4 }
 0x1e7   : > { %v1663_v10 = vpop.f32.mrf.mxu1  ;;  %v4921_v15 = vpop.f32.mrf.mxu0 }
 0x1e8   : > { %v1835_v45 = vadd.f32 %v1834_v28, %v1757_v31  ;;  %v1763_v31 = vmax.f32 %v1660_v39, 0.0  ;;  %v1664_v34 = vadd.f32 %v1663_v10, %v4823_v6  ;;  %v1764_v12 = vmax.f32 %v1662_v3, 0.0 }
 0x1e9   : > { %v1667_v63 = vpop.f32.mrf.mxu1  ;;  %v4926_v25 = vpop.f32.mrf.mxu0  ;;  %2965 = vmatmul.mubr.bf16.gmra.mxu0 %v4647_v46  ;;  %3318 = vmatmul.mubr.bf16.gmra.mxu1 %v4510_v44  ;;  %v1804_v44 = vadd.f32 %v1803_v33, %v1756_v47  ;;  %v1762_v47 = vmax.f32 %v1658_v14, 0.0 }
 0x1ea   : > { %2974 = vmatprep.mubr.bf16.mxu0 %v5827_v32  ;;  %3327 = vmatprep.mubr.bf16.mxu1 %v5827_v32  ;;  %v1836_v22 = vadd.f32 %v1835_v45, %v1759_v55  ;;  %v1668_v55 = vadd.f32 %v1667_v63, %v4820_v4  ;;  %v1765_v10 = vmax.f32 %v1664_v34, 0.0 }
 0x1eb   : > { %v1669_v51 = vpop.f32.mrf.mxu1  ;;  %v4932_v23 = vpop.f32.mrf.mxu0  ;;  %v1805_v16 = vadd.f32 %v1804_v44, %v1758_v52 }
 0x1ec   : > { %v1670_v62 = vadd.f32 %v1669_v51, %v4823_v6 }
 0x1ed   : > { %v1671_v36 = vpop.f32.mrf.mxu1  ;;  %v4937_v42 = vpop.f32.mrf.mxu0  ;;  %v1806_v37 = vadd.f32 %v1805_v16, %v1760_v29 }
 0x1ee   : > { %v1767_v3 = vmax.f32 %v1670_v62, 0.0 }
 0x1ef   : > { %v1673_v48 = vpop.f32.mrf.mxu1  ;;  %v4939_v35 = vpop.f32.mrf.mxu0  ;;  %v1807_v53 = vadd.f32 %v1806_v37, %v1762_v47 }
 0x1f1   : > { %v1677_v5 = vpop.f32.mrf.mxu1  ;;  %v4943_v9 = vpop.f32.mrf.mxu0  ;;  %2975 = vmatmul.mubr.bf16.gmra.mxu0 %v4665_v58  ;;  %3328 = vmatmul.mubr.bf16.gmra.mxu1 %v4537_v40  ;;  %v1837_v40 = vadd.f32 %v1836_v22, %v1761_v38  ;;  %v1808_v29 = vadd.f32 %v1807_v53, %v1764_v12  ;;  %v1674_v38 = vadd.f32 %v1673_v48, %v4823_v6 }
 0x1f2   : > { %2984 = vmatprep.mubr.bf16.mxu0 %v5827_v32  ;;  %3337 = vmatprep.mubr.bf16.mxu1 %v5827_v32  ;;  %v1678_v47 = vadd.f32 %v1677_v5, %v4820_v4 }
 0x1f3   : > { %v1679_v11 = vpop.f32.mrf.mxu1  ;;  %v4949_v2 = vpop.f32.mrf.mxu0  ;;  %v1838_v57 = vadd.f32 %v1837_v40, %v1763_v31  ;;  %v1766_v40 = vmax.f32 %v1668_v55, 0.0  ;;  %v1769_v5 = vmax.f32 %v1674_v38, 0.0 }
 0x1f4   : > { %v1680_v63 = vadd.f32 %v1679_v11, %v4823_v6  ;;  %v1770_v55 = vmax.f32 %v1678_v47, 0.0 }
 0x1f5   : > { %v1681_v26 = vpop.f32.mrf.mxu1  ;;  %v4953_v20 = vpop.f32.mrf.mxu0  ;;  %v1839_v14 = vadd.f32 %v1838_v57, %v1765_v10 }
 0x1f6   : > { %v1682_v48 = vadd.f32 %v1681_v26, %v4820_v4  ;;  %v1771_v62 = vmax.f32 %v1680_v63, 0.0 }
 0x1f7   : > { %v1683_v33 = vpop.f32.mrf.mxu1  ;;  %v4955_v28 = vpop.f32.mrf.mxu0  ;;  %v1840_v53 = vadd.f32 %v1839_v14, %v1767_v3 }
 0x1f8   : > { %v1684_v57 = vadd.f32 %v1683_v33, %v4823_v6 }
 0x1f9   : > { %v1687_v44 = vpop.f32.mrf.mxu1  ;;  %v4959_v45 = vpop.f32.mrf.mxu0  ;;  %2985 = vmatmul.mubr.bf16.gmra.mxu0 %v4684_v13  ;;  %3338 = vmatmul.mubr.bf16.gmra.mxu1 %v4574_v7  ;;  %v1672_v7 = vadd.f32 %v1671_v36, %v4820_v4  ;;  %v1809_v36 = vadd.f32 %v1808_v29, %v1766_v40  ;;  %v1772_v40 = vmax.f32 %v1682_v48, 0.0  ;;  %v1841_v14 = vadd.f32 %v1840_v53, %v1769_v5 }
 0x1fa   : > { %2994 = vmatprep.mubr.bf16.mxu0 %v5827_v32  ;;  %3347 = vmatprep.mubr.bf16.mxu1 %v5827_v32  ;;  %v1688_v10 = vadd.f32 %v1687_v44, %v4820_v4  ;;  %v1773_v38 = vmax.f32 %v1684_v57, 0.0  ;;  %v5838_v48 = vmov 0  }
 0x1fb   : > { %v1689_v52 = vpop.f32.mrf.mxu1  ;;  %v4965_v54 = vpop.f32.mrf.mxu0  ;;  %v1768_v34 = vmax.f32 %v1672_v7, 0.0  ;;  %v1842_v63 = vadd.f32 %v1841_v14, %v1771_v62 }
 0x1fd   : > { %v1691_v16 = vpop.f32.mrf.mxu1  ;;  %v4969_v22 = vpop.f32.mrf.mxu0  ;;  %v1810_v26 = vadd.f32 %v1809_v36, %v1768_v34 }
 0x1ff   : > { %v1693_v39 = vpop.f32.mrf.mxu1  ;;  %v4973_v37 = vpop.f32.mrf.mxu0  ;;  %v1811_v47 = vadd.f32 %v1810_v26, %v1770_v55 }
 0x200   : > { %v1694_v33 = vadd.f32 %v1693_v39, %v4823_v6 }
 0x201   : > { %v1697_v31 = vpop.f32.mrf.mxu1  ;;  %v4977_v51 = vpop.f32.mrf.mxu0  ;;  %2995 = vmatmul.mubr.bf16.gmra.mxu0 %v4690_v17  ;;  %3348 = vmatmul.mubr.bf16.gmra.mxu1 %v4501_v19  ;;  %v1690_v19 = vadd.f32 %v1689_v52, %v4823_v6  ;;  %v1774_v17 = vmax.f32 %v1688_v10, 0.0 }
 0x202   : > { %3004 = vmatprep.mubr.bf16.mxu0 %v5827_v32  ;;  %3357 = vmatprep.mubr.bf16.mxu1 %v5827_v32  ;;  %v1692_v32 = vadd.f32 %v1691_v16, %v4820_v4  ;;  %v1698_v44 = vadd.f32 %v1697_v31, %v4820_v4  ;;  %v1812_v16 = vadd.f32 %v1811_v47, %v1772_v40  ;;  %v1777_v53 = vmax.f32 %v1694_v33, 0.0 }
 0x203   : > { %v1699_v11 = vpop.f32.mrf.mxu1  ;;  %v4985_v12 = vpop.f32.mrf.mxu0  ;;  %v1775_v52 = vmax.f32 %v1690_v19, 0.0  ;;  %v1843_v31 = vadd.f32 %v1842_v63, %v1773_v38 }
 0x204   : > { %v1700_v13 = vadd.f32 %v1699_v11, %v4823_v6  ;;  %v1776_v39 = vmax.f32 %v1692_v32, 0.0  ;;  %v1813_v55 = vadd.f32 %v1812_v16, %v1774_v17  ;;  %v1778_v10 = vmax.f32 %v1698_v44, 0.0 }
 0x205   : > { %v1701_v29 = vpop.f32.mrf.mxu1  ;;  %v4989_v7 = vpop.f32.mrf.mxu0 }
 0x206   : > { %v1702_v34 = vadd.f32 %v1701_v29, %v4820_v4  ;;  %v1779_v19 = vmax.f32 %v1700_v13, 0.0  ;;  %v1814_v29 = vadd.f32 %v1813_v55, %v1776_v39 }
 0x207   : > { %v1703_v3 = vpop.f32.mrf.mxu1  ;;  %v4993_v1 = vpop.f32.mrf.mxu0 }
 0x208   : > { %v1704_v5 = vadd.f32 %v1703_v3, %v4823_v6  ;;  %v1780_v40 = vmax.f32 %v1702_v34, 0.0  ;;  %v1815_v17 = vadd.f32 %v1814_v29, %v1778_v10 }
 0x209   : > { %v1707_v58 = vpop.f32.mrf.mxu1  ;;  %v4997_v36 = vpop.f32.mrf.mxu0  ;;  %3005 = vmatmul.mubr.bf16.gmra.mxu0 %v4700_v56  ;;  %3358 = vmatmul.mubr.bf16.gmra.mxu1 %v4541_v43  ;;  %v1844_v43 = vadd.f32 %v1843_v31, %v1775_v52 }
 0x20a   : > { %3014 = vmatprep.mubr.bf16.mxu0 %v5838_v48  ;;  %3367 = vmatprep.mubr.bf16.mxu1 %v5838_v48  ;;  %v1708_v62 = vadd.f32 %v1707_v58, %v4820_v4  ;;  %v1781_v3 = vmax.f32 %v1704_v5, 0.0  ;;  %v1874_v58 = vld [vmem:[%s5823_s3 + $0x2] sm:$0x3]  ;;  %v1816_v34 = vadd.f32 %v1815_v17, %v1780_v40 }
 0x20b   : > { %v1709_v57 = vpop.f32.mrf.mxu1  ;;  %v5005_v11 = vpop.f32.mrf.mxu0  ;;  %v1845_v33 = vadd.f32 %v1844_v43, %v1777_v53  ;;  %v5031_v29 = vrot.slane %v1874_v58, %v4815_v61 }
 0x20c   : > { %v1710_v14 = vadd.f32 %v1709_v57, %v4823_v6  ;;  %v1782_v13 = vmax.f32 %v1708_v62, 0.0  ;;  %v5025_v57 = vrot.slane %v1874_v58, %v4810_v59 }
 0x20d   : > { %v1711_v32 = vpop.f32.mrf.mxu1  ;;  %v5008_v26 = vpop.f32.mrf.mxu0  ;;  %v1846_v52 = vadd.f32 %v1845_v33, %v1779_v19 }
 0x20e   : > { %v1712_v38 = vadd.f32 %v1711_v32, %v4820_v4  ;;  %v1783_v31 = vmax.f32 %v1710_v14, 0.0  ;;  %v1817_v43 = vadd.f32 %v1816_v34, %v1782_v13  ;;  %v2005_v40 = vadd.f32 %v4899_v30, %v5025_v57 }
 0x20f   : > { %v1713_v47 = vpop.f32.mrf.mxu1  ;;  %v5012_v63 = vpop.f32.mrf.mxu0  ;;  %v1847_v55 = vadd.f32 %v1846_v52, %v1781_v3  ;;  %v2001_v13 = vadd.f32 %v4885_v21, %v5025_v57  ;;  %v2011_v58 = vadd.f32 %v4907_v50, %v5025_v57  ;;  %v2013_v21 = vadd.f32 %v4912_v60, %v5031_v29 }
 0x210   : > { %v1714_v44 = vadd.f32 %v1713_v47, %v4823_v6  ;;  %v1784_v53 = vmax.f32 %v1712_v38, 0.0 }
 0x211   : > { %v1717_v16 = vpop.f32.mrf.mxu1  ;;  %v5018_v39 = vpop.f32.mrf.mxu0  ;;  %3015 = vmatmul.mubr.bf16.gmra.mxu0 %v4706_v24  ;;  %3368 = vmatmul.mubr.bf16.gmra.mxu1 %v4576_v8  ;;  %v1848_v33 = vadd.f32 %v1847_v55, %v1783_v31 }
 0x212   : > { %v1718_v5 = vadd.f32 %v1717_v16, %v4820_v4  ;;  %3377 = vmatprep.mubr.bf16.mxu1 %v5838_v48  ;;  %v1785_v19 = vmax.f32 %v1714_v44, 0.0  ;;  %v1818_v3 = vadd.f32 %v1817_v43, %v1784_v53  ;;  %v2007_v44 = vadd.f32 %v4901_v41, %v5031_v29 }
 0x213   : > { %v1719_v10 = vpop.f32.mrf.mxu1  ;;  %v5027_v62 = vpop.f32.mrf.mxu0  ;;  %v2161_v53 = vmax.f32 %v2005_v40, 0.0  ;;  %v2017_v43 = vadd.f32 %v4921_v15, %v5031_v29  ;;  %v2163_v40 = vmax.f32 %v2011_v58, 0.0 }
 0x214   : > { %v1786_v32 = vmax.f32 %v1718_v5, 0.0  ;;  %v1720_v8 = vadd.f32 %v1719_v10, %v4823_v6  ;;  %v1849_v16 = vadd.f32 %v1848_v33, %v1785_v19  ;;  %v2162_v60 = vmax.f32 %v2007_v44, 0.0 }
 0x215   : > { %v1721_v14 = vpop.f32.mrf.mxu1  ;;  %v5036_v38 = vpop.f32.mrf.mxu0  ;;  %v2164_v33 = vmax.f32 %v2013_v21, 0.0 }
 0x216   : > { %v1787_v47 = vmax.f32 %v1720_v8, 0.0  ;;  %v1722_v17 = vadd.f32 %v1721_v14, %v4820_v4  ;;  %v1819_v34 = vadd.f32 %v1818_v3, %v1786_v32  ;;  %v2003_v4 = vadd.f32 %v4893_v49, %v5031_v29 }
 0x217   : > { %v1723_v52 = vpop.f32.mrf.mxu1  ;;  %v5045_v30 = vpop.f32.mrf.mxu0  ;;  %v2159_v8 = vmax.f32 %v2001_v13, 0.0  ;;  %v2023_v3 = vadd.f32 %v4932_v23, %v5031_v29  ;;  %v2025_v13 = vadd.f32 %v4937_v42, %v5025_v57  ;;  %v2033_v42 = vadd.f32 %v4949_v2, %v5031_v29 }
 0x218   : > { %v1788_v5 = vmax.f32 %v1722_v17, 0.0  ;;  %v1724_v31 = vadd.f32 %v1723_v52, %v4823_v6  ;;  %v2015_v6 = vadd.f32 %v4919_v0, %v5025_v57  ;;  %v1850_v49 = vadd.f32 %v1849_v16, %v1787_v47 }
 0x219   : > { %v5057_v41 = vpop.f32.mrf.mxu0  ;;  %v5059_v50 = vpop.f32.mrf.mxu1  ;;  %3378 = vmatmul.mubr.bf16.gmra.mxu1 %v4598_v18  ;;  %v2021_v18 = vadd.f32 %v4926_v25, %v5025_v57  ;;  %v2160_v14 = vmax.f32 %v2003_v4, 0.0  ;;  %v2223_v17 = vadd.f32 %v2161_v53, %v2159_v8  ;;  %v2166_v52 = vmax.f32 %v2017_v43, 0.0 }
 0x21a   : > { %v1820_v55 = vadd.f32 %v1819_v34, %v1788_v5  ;;  %v1789_v10 = vmax.f32 %v1724_v31, 0.0  ;;  %3387 = vmatprep.mubr.bf16.mxu1 %v5838_v48  ;;  %v2165_v44 = vmax.f32 %v2015_v6, 0.0  ;;  %v2027_v25 = vadd.f32 %v4939_v35, %v5031_v29 }
 0x21b   : > { %v5067_v19 = vpop.f32.mrf.mxu0  ;;  %v5069_v32 = vpop.f32.mrf.mxu1  ;;  %v2254_v58 = vadd.f32 %v2162_v60, %v2160_v14  ;;  %v2224_v23 = vadd.f32 %v2223_v17, %v2163_v40  ;;  %v2167_v5 = vmax.f32 %v2021_v18, 0.0  ;;  %v2031_v31 = vadd.f32 %v4943_v9, %v5025_v57 }
 0x21c   : > { %3603 = vst [vmem:[%s5055_s10] sm:$0xff] %v1820_v55  ;;  %v1851_v0 = vadd.f32 %v1850_v49, %v1789_v10  ;;  %v2168_v53 = vmax.f32 %v2023_v3, 0.0  ;;  %v2169_v49 = vmax.f32 %v2025_v13, 0.0  ;;  %v2035_v55 = vadd.f32 %v4953_v20, %v5025_v57 }
 0x21d   : > { %v5076_v47 = vpop.f32.mrf.mxu0  ;;  %v5078_v15 = vpop.f32.mrf.mxu1  ;;  %v2255_v4 = vadd.f32 %v2254_v58, %v2164_v33  ;;  %v2225_v35 = vadd.f32 %v2224_v23, %v2165_v44  ;;  %v2170_v9 = vmax.f32 %v2027_v25, 0.0  ;;  %v2037_v60 = vadd.f32 %v4955_v28, %v5031_v29 }
 0x21e   : > { %3604 = vst [vmem:[%s5055_s10 + $0x8] sm:$0xff] %v1851_v0  ;;  %v2171_v40 = vmax.f32 %v2031_v31, 0.0  ;;  %v2172_v0 = vmax.f32 %v2033_v42, 0.0  ;;  %v2043_v20 = vadd.f32 %v4965_v54, %v5031_v29  ;;  %v2173_v28 = vmax.f32 %v2035_v55, 0.0 }
 0x21f   : > { %v5085_v16 = vpop.f32.mrf.mxu0  ;;  %v5087_v34 = vpop.f32.mrf.mxu1  ;;  %v2256_v10 = vadd.f32 %v2255_v4, %v2166_v52  ;;  %v2226_v8 = vadd.f32 %v2225_v35, %v2167_v5  ;;  %v2045_v17 = vadd.f32 %v4969_v22, %v5025_v57  ;;  %v2174_v13 = vmax.f32 %v2037_v60, 0.0 }
 0x220   : > { %v2047_v58 = vadd.f32 %v4973_v37, %v5031_v29  ;;  %v2051_v23 = vadd.f32 %v4977_v51, %v5025_v57  ;;  %v2176_v31 = vmax.f32 %v2043_v20, 0.0  ;;  %v2053_v4 = vadd.f32 %v4985_v12, %v5031_v29 }
 0x221   : > { %v5093_v21 = vpop.f32.mrf.mxu0  ;;  %v5095_v6 = vpop.f32.mrf.mxu1  ;;  %3388 = vmatmul.mubr.bf16.gmra.mxu1 %v4625_v27  ;;  %v2041_v27 = vadd.f32 %v4959_v45, %v5025_v57  ;;  %v2257_v18 = vadd.f32 %v2256_v10, %v2168_v53  ;;  %v2227_v3 = vadd.f32 %v2226_v8, %v2169_v49  ;;  %v2177_v42 = vmax.f32 %v2045_v17, 0.0 }
 0x222   : > { %3397 = vmatprep.mubr.bf16.mxu1 %v5838_v48  ;;  %v2055_v35 = vadd.f32 %v4989_v7, %v5025_v57  ;;  %v2178_v51 = vmax.f32 %v2047_v58, 0.0  ;;  %v2057_v55 = vadd.f32 %v4993_v1, %v5031_v29  ;;  %v2179_v60 = vmax.f32 %v2051_v23, 0.0 }
 0x223   : > { %v5103_v43 = vpop.f32.mrf.mxu0  ;;  %v5105_v2 = vpop.f32.mrf.mxu1  ;;  %v2258_v44 = vadd.f32 %v2257_v18, %v2170_v9  ;;  %v2228_v25 = vadd.f32 %v2227_v3, %v2171_v40  ;;  %v2175_v54 = vmax.f32 %v2041_v27, 0.0  ;;  %v2180_v40 = vmax.f32 %v2053_v4, 0.0 }
 0x224   : > { %v2063_v7 = vadd.f32 %v5005_v11, %v5031_v29  ;;  %v2181_v1 = vmax.f32 %v2055_v35, 0.0  ;;  %v2065_v20 = vadd.f32 %v5008_v26, %v5025_v57  ;;  %v2067_v17 = vadd.f32 %v5012_v63, %v5031_v29 }
 0x225   : > { %v5111_v14 = vpop.f32.mrf.mxu0  ;;  %v5113_v33 = vpop.f32.mrf.mxu1  ;;  %v2259_v5 = vadd.f32 %v2258_v44, %v2172_v0  ;;  %v2229_v37 = vadd.f32 %v2228_v25, %v2173_v28  ;;  %v2182_v28 = vmax.f32 %v2057_v55, 0.0  ;;  %v2071_v58 = vadd.f32 %v5018_v39, %v5025_v57 }
 0x226   : > { %v2073_v23 = vadd.f32 %v5027_v62, %v5031_v29  ;;  %v2185_v4 = vmax.f32 %v2065_v20, 0.0  ;;  %v2186_v39 = vmax.f32 %v2067_v17, 0.0  ;;  %v2077_v35 = vadd.f32 %v5045_v30, %v5031_v29 }
 0x227   : > { %v5119_v45 = vpop.f32.mrf.mxu0  ;;  %v5121_v52 = vpop.f32.mrf.mxu1  ;;  %v2260_v49 = vadd.f32 %v2259_v5, %v2174_v13  ;;  %v2230_v9 = vadd.f32 %v2229_v37, %v2175_v54  ;;  %v2184_v54 = vmax.f32 %v2063_v7, 0.0  ;;  %v2075_v37 = vadd.f32 %v5036_v38, %v5025_v57 }
 0x228   : > { %v2187_v55 = vmax.f32 %v2071_v58, 0.0  ;;  %v2083_v38 = vadd.f32 %v5067_v19, %v5031_v29  ;;  %v2085_v30 = vadd.f32 %v5076_v47, %v5025_v57  ;;  %v2190_v20 = vmax.f32 %v2077_v35, 0.0 }
 0x229   : > { %v5127_v22 = vpop.f32.mrf.mxu0  ;;  %v5129_v53 = vpop.f32.mrf.mxu1  ;;  %3398 = vmatmul.mubr.bf16.gmra.mxu1 %v4647_v46  ;;  %v2061_v46 = vadd.f32 %v4997_v36, %v5025_v57  ;;  %v2261_v8 = vadd.f32 %v2260_v49, %v2176_v31  ;;  %v2231_v0 = vadd.f32 %v2230_v9, %v2177_v42  ;;  %v5839_v31 = vld [vmem:[#allocation10_spill] sm:$0xff]  ;;  %v2081_v9 = vadd.f32 %v5057_v41, %v5025_v57 }
 0x22a   : > { %3407 = vmatprep.mubr.bf16.mxu1 %v5838_v48  ;;  %v2091_v19 = vadd.f32 %v5093_v21, %v5025_v57  ;;  %v2192_v58 = vmax.f32 %v2083_v38, 0.0  ;;  %v2097_v21 = vadd.f32 %v5119_v45, %v5031_v29 }
 0x22b   : > { %v5137_v10 = vpop.f32.mrf.mxu0  ;;  %v5139_v12 = vpop.f32.mrf.mxu1  ;;  %v2262_v3 = vadd.f32 %v2261_v8, %v2178_v51  ;;  %v2232_v13 = vadd.f32 %v2231_v0, %v2179_v60  ;;  %v2183_v11 = vmax.f32 %v2061_v46, 0.0  ;;  %v2188_v46 = vmax.f32 %v2073_v23, 0.0  ;;  %v5840_v23 = vld [vmem:[#allocation11_spill] sm:$0xff] }
 0x22c   : > { %v2189_v0 = vmax.f32 %v2075_v37, 0.0  ;;  %v2195_v35 = vmax.f32 %v2091_v19, 0.0 }
 0x22d   : > { %v5145_v27 = vpop.f32.mrf.mxu0  ;;  %v5147_v18 = vpop.f32.mrf.mxu1  ;;  %v2263_v25 = vadd.f32 %v2262_v3, %v2180_v40  ;;  %v2233_v63 = vadd.f32 %v2232_v13, %v2181_v1  ;;  %v2087_v3 = vadd.f32 %v5085_v16, %v5031_v29  ;;  %v2191_v13 = vmax.f32 %v2081_v9, 0.0 }
 0x22e   : > { %v2193_v16 = vmax.f32 %v2085_v30, 0.0  ;;  %v2105_v45 = vadd.f32 %v5145_v27, %v5025_v57  ;;  %v2198_v30 = vmax.f32 %v2097_v21, 0.0  ;;  %v5841_v27 = vld [vmem:[#allocation12_spill] sm:$0xff] }
 0x22f   : > { %v5153_v36 = vpop.f32.mrf.mxu0  ;;  %v5155_v44 = vpop.f32.mrf.mxu1  ;;  %v2264_v42 = vadd.f32 %v2263_v25, %v2182_v28  ;;  %v2234_v51 = vadd.f32 %v2233_v63, %v2183_v11  ;;  %v2093_v25 = vadd.f32 %v5103_v43, %v5031_v29  ;;  %v2095_v63 = vadd.f32 %v5111_v14, %v5025_v57 }
 0x230   : > { %v2194_v37 = vmax.f32 %v2087_v3, 0.0  ;;  %v2103_v14 = vadd.f32 %v5137_v10, %v5031_v29 }
 0x231   : > { %v5161_v26 = vpop.f32.mrf.mxu0  ;;  %v5163_v5 = vpop.f32.mrf.mxu1  ;;  %3408 = vmatmul.mubr.bf16.gmra.mxu1 %v5839_v31  ;;  %v2265_v60 = vadd.f32 %v2264_v42, %v2184_v54  ;;  %v2235_v7 = vadd.f32 %v2234_v51, %v2185_v4  ;;  %v2101_v51 = vadd.f32 %v5127_v22, %v5025_v57  ;;  %v2196_v9 = vmax.f32 %v2093_v25, 0.0 }
 0x232   : > { %3417 = vmatprep.mubr.bf16.mxu1 %v5838_v48  ;;  %v2111_v10 = vadd.f32 %v5161_v26, %v5025_v57  ;;  %v2200_v19 = vmax.f32 %v2103_v14, 0.0 }
 0x233   : > { %v2112_v49 = vpop.f32.mrf.mxu0  ;;  %v5171_v62 = vpop.f32.mrf.mxu1  ;;  %v2266_v1 = vadd.f32 %v2265_v60, %v2186_v39  ;;  %v2236_v17 = vadd.f32 %v2235_v7, %v2187_v55  ;;  %v2197_v7 = vmax.f32 %v2095_v63, 0.0 }
 0x235   : > { %v2114_v8 = vpop.f32.mrf.mxu0  ;;  %v5177_v40 = vpop.f32.mrf.mxu1  ;;  %v2267_v11 = vadd.f32 %v2266_v1, %v2188_v46  ;;  %v2237_v31 = vadd.f32 %v2236_v17, %v2189_v0  ;;  %v2107_v1 = vadd.f32 %v5153_v36, %v5031_v29  ;;  %v2199_v17 = vmax.f32 %v2101_v51, 0.0 }
 0x236   : > { %v2115_v36 = vadd.f32 %v2114_v8, %v5025_v57 }
 0x237   : > { %v2116_v28 = vpop.f32.mrf.mxu0  ;;  %v5183_v41 = vpop.f32.mrf.mxu1  ;;  %v2268_v4 = vadd.f32 %v2267_v11, %v2190_v20  ;;  %v2238_v43 = vadd.f32 %v2237_v31, %v2191_v13  ;;  %v2113_v11 = vadd.f32 %v2112_v49, %v5031_v29  ;;  %v2201_v31 = vmax.f32 %v2105_v45, 0.0 }
 0x238   : > { %v2202_v63 = vmax.f32 %v2107_v1, 0.0  ;;  %v2203_v49 = vmax.f32 %v2111_v10, 0.0 }
 0x239   : > { %v2120_v54 = vpop.f32.mrf.mxu0  ;;  %v5189_v47 = vpop.f32.mrf.mxu1  ;;  %3418 = vmatmul.mubr.bf16.gmra.mxu1 %v5840_v23  ;;  %v2269_v55 = vadd.f32 %v2268_v4, %v2192_v58  ;;  %v2239_v38 = vadd.f32 %v2238_v43, %v2193_v16  ;;  %v2117_v4 = vadd.f32 %v2116_v28, %v5031_v29  ;;  %v2204_v51 = vmax.f32 %v2113_v11, 0.0 }
 0x23a   : > { %3427 = vmatprep.mubr.bf16.mxu1 %v5838_v48  ;;  %v2121_v43 = vadd.f32 %v2120_v54, %v5025_v57 }
 0x23b   : > { %v2122_v42 = vpop.f32.mrf.mxu0  ;;  %v5197_v39 = vpop.f32.mrf.mxu1  ;;  %v2270_v0 = vadd.f32 %v2269_v55, %v2194_v37  ;;  %v2240_v3 = vadd.f32 %v2239_v38, %v2195_v35  ;;  %v2205_v38 = vmax.f32 %v2115_v36, 0.0  ;;  %v2206_v28 = vmax.f32 %v2117_v4, 0.0 }
 0x23c   : > { %v2123_v55 = vadd.f32 %v2122_v42, %v5031_v29  ;;  %v2207_v54 = vmax.f32 %v2121_v43, 0.0 }
 0x23d   : > { %v2124_v60 = vpop.f32.mrf.mxu0  ;;  %v5203_v46 = vpop.f32.mrf.mxu1  ;;  %v2271_v13 = vadd.f32 %v2270_v0, %v2196_v9  ;;  %v2241_v23 = vadd.f32 %v2240_v3, %v2197_v7 }
 0x23e   : > { %v2125_v7 = vadd.f32 %v2124_v60, %v5025_v57  ;;  %v2208_v42 = vmax.f32 %v2123_v55, 0.0 }
 0x23f   : > { %v2126_v20 = vpop.f32.mrf.mxu0  ;;  %v5209_v22 = vpop.f32.mrf.mxu1  ;;  %v2272_v16 = vadd.f32 %v2271_v13, %v2198_v30  ;;  %v2242_v21 = vadd.f32 %v2241_v23, %v2199_v17 }
 0x240   : > { %v2127_v0 = vadd.f32 %v2126_v20, %v5031_v29 }
 0x241   : > { %v2130_v58 = vpop.f32.mrf.mxu0  ;;  %v5214_v25 = vpop.f32.mrf.mxu1  ;;  %3428 = vmatmul.mubr.bf16.gmra.mxu1 %v5841_v27  ;;  %v2273_v35 = vadd.f32 %v2272_v16, %v2200_v19  ;;  %v2243_v8 = vadd.f32 %v2242_v21, %v2201_v31  ;;  %v2209_v27 = vmax.f32 %v2125_v7, 0.0 }
 0x242   : > { %3437 = vmatprep.mubr.bf16.mxu1 %v5838_v48  ;;  %v2131_v17 = vadd.f32 %v2130_v58, %v5025_v57  ;;  %v2210_v31 = vmax.f32 %v2127_v0, 0.0 }
 0x243   : > { %v2132_v26 = vpop.f32.mrf.mxu0  ;;  %v5220_v37 = vpop.f32.mrf.mxu1  ;;  %v2274_v45 = vadd.f32 %v2273_v35, %v2202_v63  ;;  %v2244_v3 = vadd.f32 %v2243_v8, %v2203_v49 }
 0x244   : > { %v2133_v13 = vadd.f32 %v2132_v26, %v5031_v29  ;;  %v2211_v4 = vmax.f32 %v2131_v17, 0.0 }
 0x245   : > { %v2134_v9 = vpop.f32.mrf.mxu0  ;;  %v5224_v14 = vpop.f32.mrf.mxu1  ;;  %v2275_v10 = vadd.f32 %v2274_v45, %v2204_v51  ;;  %v2245_v60 = vadd.f32 %v2244_v3, %v2205_v38  ;;  %v2307_v45 = vld [vmem:[%s5823_s3 + $0x4] sm:$0x3] }
 0x246   : > { %v2135_v20 = vadd.f32 %v2134_v9, %v5025_v57  ;;  %v2212_v49 = vmax.f32 %v2133_v13, 0.0 }
 0x247   : > { %v2136_v30 = vpop.f32.mrf.mxu0  ;;  %v5228_v1 = vpop.f32.mrf.mxu1  ;;  %v2276_v23 = vadd.f32 %v2275_v10, %v2206_v28  ;;  %v2246_v63 = vadd.f32 %v2245_v60, %v2207_v54  ;;  %v5256_v60 = vrot.slane %v2307_v45, %v4810_v59 }
 0x248   : > { %v2137_v36 = vadd.f32 %v2136_v30, %v5031_v29  ;;  %v2213_v51 = vmax.f32 %v2135_v20, 0.0 }
 0x249   : > { %v2140_v19 = vpop.f32.mrf.mxu0  ;;  %v5232_v11 = vpop.f32.mrf.mxu1  ;;  %3438 = vmatmul.mubr.bf16.gmra.mxu1 %v4700_v56  ;;  %v2277_v21 = vadd.f32 %v2276_v23, %v2208_v42  ;;  %v2247_v35 = vadd.f32 %v2246_v63, %v2209_v27 }
 0x24a   : > { %3447 = vmatprep.mubr.bf16.mxu1 %v5838_v48  ;;  %v2141_v26 = vadd.f32 %v2140_v19, %v5025_v57  ;;  %v2214_v8 = vmax.f32 %v2137_v36, 0.0 }
 0x24b   : > { %v2142_v58 = vpop.f32.mrf.mxu0  ;;  %v5238_v16 = vpop.f32.mrf.mxu1  ;;  %v2278_v9 = vadd.f32 %v2277_v21, %v2210_v31  ;;  %v2248_v28 = vadd.f32 %v2247_v35, %v2211_v4  ;;  %v5262_v4 = vrot.slane %v2307_v45, %v4815_v61 }
 0x24c   : > { %v2143_v48 = vadd.f32 %v2142_v58, %v5031_v29  ;;  %v2215_v0 = vmax.f32 %v2141_v26, 0.0 }
 0x24d   : > { %v2144_v56 = vpop.f32.mrf.mxu0  ;;  %v5241_v43 = vpop.f32.mrf.mxu1  ;;  %v2279_v3 = vadd.f32 %v2278_v9, %v2212_v49  ;;  %v2249_v10 = vadd.f32 %v2248_v28, %v2213_v51  ;;  %v2444_v9 = vadd.f32 %v5095_v6, %v5256_v60  ;;  %v2448_v6 = vadd.f32 %v5113_v33, %v5256_v60 }
 0x24e   : > { %v2145_v55 = vadd.f32 %v2144_v56, %v5025_v57  ;;  %v2216_v42 = vmax.f32 %v2143_v48, 0.0  ;;  %v2434_v48 = vadd.f32 %v5059_v50, %v5256_v60  ;;  %v2446_v50 = vadd.f32 %v5105_v2, %v5262_v4 }
 0x24f   : > { %v2146_v38 = vpop.f32.mrf.mxu0  ;;  %v5245_v7 = vpop.f32.mrf.mxu1  ;;  %v2280_v27 = vadd.f32 %v2279_v3, %v2214_v8  ;;  %v2250_v31 = vadd.f32 %v2249_v10, %v2215_v0 }
 0x250   : > { %v2147_v30 = vadd.f32 %v2146_v38, %v5031_v29  ;;  %v2217_v13 = vmax.f32 %v2145_v55, 0.0  ;;  %v2440_v55 = vadd.f32 %v5087_v34, %v5262_v4  ;;  %v2592_v2 = vmax.f32 %v2434_v48, 0.0 }
 0x251   : > { %v2150_v54 = vpop.f32.mrf.mxu0  ;;  %v5251_v17 = vpop.f32.mrf.mxu1  ;;  %3448 = vmatmul.mubr.bf16.gmra.mxu1 %v4706_v24  ;;  %v2438_v24 = vadd.f32 %v5078_v15, %v5256_v60  ;;  %v2281_v49 = vadd.f32 %v2280_v27, %v2216_v42  ;;  %v2596_v27 = vmax.f32 %v2444_v9, 0.0  ;;  %v2464_v9 = vadd.f32 %v5163_v5, %v5256_v60 }
 0x252   : > { %v2151_v19 = vadd.f32 %v2150_v54, %v5025_v57  ;;  %v2218_v36 = vmax.f32 %v2147_v30, 0.0  ;;  %v2251_v56 = vadd.f32 %v2250_v31, %v2217_v13  ;;  %v2595_v13 = vmax.f32 %v2440_v55, 0.0 }
 0x253   : > { %v2152_v20 = vpop.f32.mrf.mxu0  ;;  %v5258_v23 = vpop.f32.mrf.mxu1  ;;  %v2594_v30 = vmax.f32 %v2438_v24, 0.0 }
 0x254   : > { %v2219_v58 = vmax.f32 %v2151_v19, 0.0  ;;  %v2153_v63 = vadd.f32 %v2152_v20, %v5031_v29  ;;  %v2282_v15 = vadd.f32 %v2281_v49, %v2218_v36  ;;  %v2454_v20 = vadd.f32 %v5129_v53, %v5256_v60 }
 0x255   : > { %v2154_v26 = vpop.f32.mrf.mxu0  ;;  %v5266_v21 = vpop.f32.mrf.mxu1  ;;  %v2597_v36 = vmax.f32 %v2446_v50, 0.0  ;;  %v2656_v24 = vadd.f32 %v2594_v30, %v2592_v2  ;;  %v2458_v49 = vadd.f32 %v5147_v18, %v5256_v60  ;;  %v2460_v53 = vadd.f32 %v5155_v44, %v5262_v4 }
 0x256   : > { %v2220_v35 = vmax.f32 %v2153_v63, 0.0  ;;  %v2155_v51 = vadd.f32 %v2154_v26, %v5025_v57  ;;  %v2252_v45 = vadd.f32 %v2251_v56, %v2219_v58  ;;  %v2436_v57 = vadd.f32 %v5069_v32, %v5262_v4 }
 0x257   : > { %v2156_v8 = vpop.f32.mrf.mxu0  ;;  %v5275_v38 = vpop.f32.mrf.mxu1  ;;  %v2456_v58 = vadd.f32 %v5139_v12, %v5262_v4  ;;  %v2598_v26 = vmax.f32 %v2448_v6, 0.0  ;;  %v2657_v12 = vadd.f32 %v2656_v24, %v2596_v27  ;;  %v2600_v55 = vmax.f32 %v2454_v20, 0.0 }
 0x258   : > { %v2221_v28 = vmax.f32 %v2155_v51, 0.0  ;;  %v2157_v0 = vadd.f32 %v2156_v8, %v5031_v29  ;;  %v2283_v54 = vadd.f32 %v2282_v15, %v2220_v35  ;;  %v2450_v29 = vadd.f32 %v5121_v52, %v5262_v4 }
 0x259   : > { %v5282_v34 = vpop.f32.mrf.mxu1  ;;  %v5284_v3 = vpop.f32.mrf.mxu0  ;;  %v2593_v33 = vmax.f32 %v2436_v57, 0.0  ;;  %v2601_v15 = vmax.f32 %v2456_v58, 0.0  ;;  %v2466_v18 = vadd.f32 %v5171_v62, %v5262_v4  ;;  %v2602_v44 = vmax.f32 %v2458_v49, 0.0 }
 0x25a   : > { %v2253_v10 = vadd.f32 %v2252_v45, %v2221_v28  ;;  %v2222_v42 = vmax.f32 %v2157_v0, 0.0  ;;  %v2599_v35 = vmax.f32 %v2450_v29, 0.0  ;;  %v2658_v0 = vadd.f32 %v2657_v12, %v2598_v26 }
 0x25b   : > { %v5290_v32 = vpop.f32.mrf.mxu1  ;;  %v5292_v19 = vpop.f32.mrf.mxu0  ;;  %v2687_v56 = vadd.f32 %v2595_v13, %v2593_v33  ;;  %v2468_v57 = vadd.f32 %v5177_v40, %v5256_v60  ;;  %v2603_v50 = vmax.f32 %v2460_v53, 0.0  ;;  %v2470_v6 = vadd.f32 %v5183_v41, %v5262_v4 }
 0x25c   : > { %3605 = vst [vmem:[%s5055_s10 + $0x10] sm:$0xff] %v2253_v10  ;;  %v2284_v31 = vadd.f32 %v2283_v54, %v2222_v42  ;;  %v2659_v10 = vadd.f32 %v2658_v0, %v2600_v55  ;;  %v2604_v62 = vmax.f32 %v2464_v9, 0.0  ;;  %v2474_v42 = vadd.f32 %v5189_v47, %v5256_v60 }
 0x25d   : > { %v5299_v63 = vpop.f32.mrf.mxu1  ;;  %v5301_v52 = vpop.f32.mrf.mxu0  ;;  %v2688_v8 = vadd.f32 %v2687_v56, %v2597_v36  ;;  %v2605_v29 = vmax.f32 %v2466_v18, 0.0  ;;  %v2476_v2 = vadd.f32 %v5197_v39, %v5262_v4  ;;  %v2606_v41 = vmax.f32 %v2468_v57, 0.0 }
 0x25e   : > { %3606 = vst [vmem:[%s5055_s10 + $0x18] sm:$0xff] %v2284_v31  ;;  %v2660_v20 = vadd.f32 %v2659_v10, %v2602_v44  ;;  %v2478_v31 = vadd.f32 %v5203_v46, %v5256_v60  ;;  %v2607_v36 = vmax.f32 %v2470_v6, 0.0  ;;  %v2480_v58 = vadd.f32 %v5209_v22, %v5262_v4 }
 0x25f   : > { %v5308_v51 = vpop.f32.mrf.mxu1  ;;  %v5310_v48 = vpop.f32.mrf.mxu0  ;;  %v2689_v30 = vadd.f32 %v2688_v8, %v2599_v35  ;;  %v2608_v39 = vmax.f32 %v2474_v42, 0.0  ;;  %v2484_v49 = vadd.f32 %v5214_v25, %v5256_v60  ;;  %v2609_v35 = vmax.f32 %v2476_v2, 0.0 }
 0x260   : > { %v2661_v26 = vadd.f32 %v2660_v20, %v2604_v62  ;;  %v2486_v53 = vadd.f32 %v5220_v37, %v5262_v4  ;;  %v2610_v22 = vmax.f32 %v2478_v31, 0.0  ;;  %v2488_v9 = vadd.f32 %v5224_v14, %v5256_v60 }
 0x261   : > { %v5316_v45 = vpop.f32.mrf.mxu1  ;;  %v5318_v28 = vpop.f32.mrf.mxu0  ;;  %v2690_v13 = vadd.f32 %v2689_v30, %v2601_v15  ;;  %v2611_v15 = vmax.f32 %v2480_v58, 0.0  ;;  %v2490_v18 = vadd.f32 %v5228_v1, %v5262_v4  ;;  %v2612_v37 = vmax.f32 %v2484_v49, 0.0 }
 0x262   : > { %v2662_v55 = vadd.f32 %v2661_v26, %v2606_v41  ;;  %v2494_v57 = vadd.f32 %v5232_v11, %v5256_v60  ;;  %v2496_v6 = vadd.f32 %v5238_v16, %v5262_v4  ;;  %v2614_v1 = vmax.f32 %v2488_v9, 0.0 }
 0x263   : > { %v5324_v5 = vpop.f32.mrf.mxu1  ;;  %v5326_v54 = vpop.f32.mrf.mxu0  ;;  %v2691_v33 = vadd.f32 %v2690_v13, %v2603_v50  ;;  %v2613_v50 = vmax.f32 %v2486_v53, 0.0  ;;  %v2498_v42 = vadd.f32 %v5241_v43, %v5256_v60  ;;  %v2500_v2 = vadd.f32 %v5245_v7, %v5262_v4 }
 0x264   : > { %v2663_v44 = vadd.f32 %v2662_v55, %v2608_v39  ;;  %v2616_v16 = vmax.f32 %v2494_v57, 0.0  ;;  %v2504_v31 = vadd.f32 %v5251_v17, %v5256_v60  ;;  %v2506_v58 = vadd.f32 %v5258_v23, %v5262_v4 }
 0x265   : > { %v5332_v40 = vpop.f32.mrf.mxu1  ;;  %v5334_v27 = vpop.f32.mrf.mxu0  ;;  %v2692_v56 = vadd.f32 %v2691_v33, %v2605_v29  ;;  %v2615_v29 = vmax.f32 %v2490_v18, 0.0  ;;  %v2618_v49 = vmax.f32 %v2498_v42, 0.0  ;;  %v2508_v7 = vadd.f32 %v5266_v21, %v5256_v60 }
 0x266   : > { %v2664_v62 = vadd.f32 %v2663_v44, %v2610_v22  ;;  %v2510_v53 = vadd.f32 %v5275_v38, %v5262_v4  ;;  %v2620_v9 = vmax.f32 %v2504_v31, 0.0  ;;  %v2514_v23 = vadd.f32 %v5282_v34, %v5256_v60 }
 0x267   : > { %v5340_v47 = vpop.f32.mrf.mxu1  ;;  %v5342_v24 = vpop.f32.mrf.mxu0  ;;  %v2693_v8 = vadd.f32 %v2692_v56, %v2607_v36  ;;  %v2617_v36 = vmax.f32 %v2496_v6, 0.0  ;;  %v2516_v18 = vadd.f32 %v5290_v32, %v5262_v4  ;;  %v2622_v57 = vmax.f32 %v2508_v7, 0.0 }
 0x268   : > { %v2665_v41 = vadd.f32 %v2664_v62, %v2612_v37  ;;  %v2518_v38 = vadd.f32 %v5299_v63, %v5256_v60  ;;  %v2520_v6 = vadd.f32 %v5308_v51, %v5262_v4  ;;  %v2624_v42 = vmax.f32 %v2514_v23, 0.0 }
 0x269   : > { %v5348_v46 = vpop.f32.mrf.mxu1  ;;  %v5350_v12 = vpop.f32.mrf.mxu0  ;;  %v2694_v30 = vadd.f32 %v2693_v8, %v2609_v35  ;;  %v2619_v35 = vmax.f32 %v2500_v2, 0.0  ;;  %v2524_v32 = vadd.f32 %v5316_v45, %v5256_v60  ;;  %v2526_v2 = vadd.f32 %v5324_v5, %v5262_v4 }
 0x26a   : > { %v2666_v39 = vadd.f32 %v2665_v41, %v2614_v1  ;;  %v2626_v31 = vmax.f32 %v2518_v38, 0.0  ;;  %v2528_v51 = vadd.f32 %v5332_v40, %v5256_v60  ;;  %v2534_v5 = vadd.f32 %v5348_v46, %v5256_v60 }
 0x26b   : > { %v5356_v25 = vpop.f32.mrf.mxu1  ;;  %v5358_v0 = vpop.f32.mrf.mxu0  ;;  %v2695_v13 = vadd.f32 %v2694_v30, %v2611_v15  ;;  %v2621_v15 = vmax.f32 %v2506_v58, 0.0  ;;  %v2530_v58 = vadd.f32 %v5340_v47, %v5262_v4  ;;  %v2628_v7 = vmax.f32 %v2524_v32, 0.0 }
 0x26c   : > { %v2667_v22 = vadd.f32 %v2666_v39, %v2616_v16  ;;  %v2630_v23 = vmax.f32 %v2528_v51, 0.0  ;;  %v2632_v38 = vmax.f32 %v2534_v5, 0.0 }
 0x26d   : > { %v5364_v14 = vpop.f32.mrf.mxu1  ;;  %v5366_v10 = vpop.f32.mrf.mxu0  ;;  %v2696_v33 = vadd.f32 %v2695_v13, %v2613_v50  ;;  %v2623_v50 = vmax.f32 %v2510_v53, 0.0  ;;  %v2536_v53 = vadd.f32 %v5356_v25, %v5262_v4 }
 0x26e   : > { %v2668_v37 = vadd.f32 %v2667_v22, %v2618_v49  ;;  %v2538_v47 = vadd.f32 %v5364_v14, %v5256_v60 }
 0x26f   : > { %v5372_v11 = vpop.f32.mrf.mxu1  ;;  %v5374_v20 = vpop.f32.mrf.mxu0  ;;  %v2697_v56 = vadd.f32 %v2696_v33, %v2615_v29  ;;  %v2625_v29 = vmax.f32 %v2516_v18, 0.0 }
 0x270   : > { %v2669_v1 = vadd.f32 %v2668_v37, %v2620_v9  ;;  %v2540_v18 = vadd.f32 %v5372_v11, %v5262_v4  ;;  %v2634_v32 = vmax.f32 %v2538_v47, 0.0 }
 0x271   : > { %v2543_v43 = vpop.f32.mrf.mxu1  ;;  %v5380_v26 = vpop.f32.mrf.mxu0  ;;  %v2698_v8 = vadd.f32 %v2697_v56, %v2617_v36  ;;  %v2627_v36 = vmax.f32 %v2520_v6, 0.0 }
 0x272   : > { %v2670_v16 = vadd.f32 %v2669_v1, %v2622_v57  ;;  %v2544_v25 = vadd.f32 %v2543_v43, %v5256_v60  ;;  %v2635_v11 = vmax.f32 %v2540_v18, 0.0 }
 0x273   : > { %v2545_v55 = vpop.f32.mrf.mxu1  ;;  %v5386_v17 = vpop.f32.mrf.mxu0  ;;  %v2699_v30 = vadd.f32 %v2698_v8, %v2619_v35  ;;  %v2629_v35 = vmax.f32 %v2526_v2, 0.0 }
 0x274   : > { %v2671_v49 = vadd.f32 %v2670_v16, %v2624_v42  ;;  %v2546_v6 = vadd.f32 %v2545_v55, %v5262_v4  ;;  %v2636_v43 = vmax.f32 %v2544_v25, 0.0 }
 0x275   : > { %v2547_v44 = vpop.f32.mrf.mxu1  ;;  %v5392_v21 = vpop.f32.mrf.mxu0  ;;  %v2700_v13 = vadd.f32 %v2699_v30, %v2621_v15  ;;  %v2631_v15 = vmax.f32 %v2530_v58, 0.0 }
 0x276   : > { %v2672_v9 = vadd.f32 %v2671_v49, %v2626_v31  ;;  %v2637_v55 = vmax.f32 %v2546_v6, 0.0 }
 0x277   : > { %v2549_v62 = vpop.f32.mrf.mxu1  ;;  %v5398_v34 = vpop.f32.mrf.mxu0  ;;  %v2701_v33 = vadd.f32 %v2700_v13, %v2623_v50  ;;  %v2633_v50 = vmax.f32 %v2536_v53, 0.0  ;;  %v2548_v13 = vadd.f32 %v2547_v44, %v5256_v60 }
 0x278   : > { %v2673_v57 = vadd.f32 %v2672_v9, %v2628_v7  ;;  %v2550_v2 = vadd.f32 %v2549_v62, %v5262_v4 }
 0x279   : > { %v2553_v41 = vpop.f32.mrf.mxu1  ;;  %v5404_v63 = vpop.f32.mrf.mxu0  ;;  %v2702_v56 = vadd.f32 %v2701_v33, %v2625_v29  ;;  %v2638_v44 = vmax.f32 %v2548_v13, 0.0 }
 0x27a   : > { %v2674_v14 = vadd.f32 %v2673_v57, %v2630_v23  ;;  %v2554_v33 = vadd.f32 %v2553_v41, %v5256_v60  ;;  %v2639_v62 = vmax.f32 %v2550_v2, 0.0 }
 0x27b   : > { %v2555_v39 = vpop.f32.mrf.mxu1  ;;  %v5410_v45 = vpop.f32.mrf.mxu0  ;;  %v2703_v8 = vadd.f32 %v2702_v56, %v2627_v36 }
 0x27c   : > { %v2675_v51 = vadd.f32 %v2674_v14, %v2632_v38  ;;  %v2556_v58 = vadd.f32 %v2555_v39, %v5262_v4  ;;  %v2640_v41 = vmax.f32 %v2554_v33, 0.0 }
 0x27d   : > { %v2557_v22 = vpop.f32.mrf.mxu1  ;;  %v5416_v40 = vpop.f32.mrf.mxu0  ;;  %v2704_v30 = vadd.f32 %v2703_v8, %v2629_v35 }
 0x27e   : > { %v2676_v5 = vadd.f32 %v2675_v51, %v2634_v32  ;;  %v2558_v56 = vadd.f32 %v2557_v22, %v5256_v60  ;;  %v2641_v39 = vmax.f32 %v2556_v58, 0.0 }
 0x27f   : > { %v2559_v37 = vpop.f32.mrf.mxu1  ;;  %v5422_v46 = vpop.f32.mrf.mxu0  ;;  %v2705_v29 = vadd.f32 %v2704_v30, %v2631_v15 }
 0x280   : > { %v2560_v53 = vadd.f32 %v2559_v37, %v5262_v4  ;;  %v2677_v47 = vadd.f32 %v2676_v5, %v2636_v43  ;;  %v2642_v22 = vmax.f32 %v2558_v56, 0.0  ;;  %v2740_v56 = vld [vmem:[%s5823_s3 + $0x6] sm:$0x3] }
 0x281   : > { %v2563_v1 = vpop.f32.mrf.mxu1  ;;  %v5426_v42 = vpop.f32.mrf.mxu0  ;;  %v2706_v36 = vadd.f32 %v2705_v29, %v2633_v50 }
 0x282   : > { %v2564_v8 = vadd.f32 %v2563_v1, %v5256_v60  ;;  %v2678_v25 = vadd.f32 %v2677_v47, %v2638_v44  ;;  %v2643_v37 = vmax.f32 %v2560_v53, 0.0 }
 0x283   : > { %v2565_v16 = vpop.f32.mrf.mxu1  ;;  %v5430_v31 = vpop.f32.mrf.mxu0  ;;  %v2707_v35 = vadd.f32 %v2706_v36, %v2635_v11 }
 0x284   : > { %v2566_v18 = vadd.f32 %v2565_v16, %v5262_v4  ;;  %v2679_v13 = vadd.f32 %v2678_v25, %v2640_v41  ;;  %v2644_v1 = vmax.f32 %v2564_v8, 0.0 }
 0x285   : > { %v2567_v49 = vpop.f32.mrf.mxu1  ;;  %v5434_v7 = vpop.f32.mrf.mxu0  ;;  %v2708_v15 = vadd.f32 %v2707_v35, %v2637_v55 }
 0x286   : > { %v2568_v30 = vadd.f32 %v2567_v49, %v5256_v60  ;;  %v2645_v2 = vmax.f32 %v2566_v18, 0.0  ;;  %v2680_v43 = vadd.f32 %v2679_v13, %v2642_v22  ;;  %v5469_v13 = vrot.slane %v2740_v56, %v4815_v61 }
 0x287   : > { %v2569_v9 = vpop.f32.mrf.mxu1  ;;  %v5438_v23 = vpop.f32.mrf.mxu0  ;;  %v2709_v50 = vadd.f32 %v2708_v15, %v2639_v62 }
 0x288   : > { %v2570_v6 = vadd.f32 %v2569_v9, %v5262_v4  ;;  %v2646_v33 = vmax.f32 %v2568_v30, 0.0  ;;  %v2681_v35 = vadd.f32 %v2680_v43, %v2644_v1 }
 0x289   : > { %v2573_v57 = vpop.f32.mrf.mxu1  ;;  %v5442_v38 = vpop.f32.mrf.mxu0  ;;  %v2710_v11 = vadd.f32 %v2709_v50, %v2641_v39 }
 0x28a   : > { %v2574_v29 = vadd.f32 %v2573_v57, %v5256_v60  ;;  %v2647_v49 = vmax.f32 %v2570_v6, 0.0  ;;  %v2682_v8 = vadd.f32 %v2681_v35, %v2646_v33  ;;  %v5463_v57 = vrot.slane %v2740_v56, %v4810_v59 }
 0x28b   : > { %v2575_v14 = vpop.f32.mrf.mxu1  ;;  %v5446_v32 = vpop.f32.mrf.mxu0  ;;  %v2711_v58 = vadd.f32 %v2710_v11, %v2643_v37 }
 0x28c   : > { %v2576_v36 = vadd.f32 %v2575_v14, %v5262_v4  ;;  %v2648_v62 = vmax.f32 %v2574_v29, 0.0  ;;  %v2871_v1 = vadd.f32 %v5301_v52, %v5463_v57 }
 0x28d   : > { %v2577_v16 = vpop.f32.mrf.mxu1  ;;  %v5449_v51 = vpop.f32.mrf.mxu0  ;;  %v2712_v9 = vadd.f32 %v2711_v58, %v2645_v2  ;;  %v2877_v58 = vadd.f32 %v5318_v28, %v5463_v57  ;;  %v2881_v28 = vadd.f32 %v5334_v27, %v5463_v57 }
 0x28e   : > { %v2578_v55 = vadd.f32 %v2577_v16, %v5256_v60  ;;  %v2649_v15 = vmax.f32 %v2576_v36, 0.0  ;;  %v2683_v50 = vadd.f32 %v2682_v8, %v2648_v62  ;;  %v2867_v36 = vadd.f32 %v5284_v3, %v5463_v57 }
 0x28f   : > { %v2579_v5 = vpop.f32.mrf.mxu1  ;;  %v5453_v44 = vpop.f32.mrf.mxu0  ;;  %v2713_v25 = vadd.f32 %v2712_v9, %v2647_v49  ;;  %v2879_v3 = vadd.f32 %v5326_v54, %v5469_v13 }
 0x290   : > { %v2580_v53 = vadd.f32 %v2579_v5, %v5262_v4  ;;  %v2650_v39 = vmax.f32 %v2578_v55, 0.0  ;;  %v2873_v55 = vadd.f32 %v5310_v48, %v5469_v13  ;;  %v3025_v54 = vmax.f32 %v2867_v36, 0.0 }
 0x291   : > { %v2583_v47 = vpop.f32.mrf.mxu1  ;;  %v5459_v41 = vpop.f32.mrf.mxu0  ;;  %v2714_v2 = vadd.f32 %v2713_v25, %v2649_v15  ;;  %v3029_v25 = vmax.f32 %v2877_v58, 0.0  ;;  %v2897_v58 = vadd.f32 %v5380_v26, %v5463_v57 }
 0x292   : > { %v2584_v18 = vadd.f32 %v2583_v47, %v5256_v60  ;;  %v2651_v37 = vmax.f32 %v2580_v53, 0.0  ;;  %v2684_v16 = vadd.f32 %v2683_v50, %v2650_v39  ;;  %v3027_v53 = vmax.f32 %v2871_v1, 0.0 }
 0x293   : > { %v2585_v22 = vpop.f32.mrf.mxu1  ;;  %v5465_v30 = vpop.f32.mrf.mxu0  ;;  %v3028_v39 = vmax.f32 %v2873_v55, 0.0 }
 0x294   : > { %v2652_v6 = vmax.f32 %v2584_v18, 0.0  ;;  %v2586_v14 = vadd.f32 %v2585_v22, %v5262_v4  ;;  %v2715_v52 = vadd.f32 %v2714_v2, %v2651_v37  ;;  %v2887_v22 = vadd.f32 %v5350_v12, %v5463_v57 }
 0x295   : > { %v2587_v29 = vpop.f32.mrf.mxu1  ;;  %v5473_v11 = vpop.f32.mrf.mxu0  ;;  %v3030_v37 = vmax.f32 %v2879_v3, 0.0  ;;  %v3089_v1 = vadd.f32 %v3027_v53, %v3025_v54  ;;  %v2891_v2 = vadd.f32 %v5366_v10, %v5463_v57  ;;  %v2893_v12 = vadd.f32 %v5374_v20, %v5469_v13 }
 0x296   : > { %v2653_v43 = vmax.f32 %v2586_v14, 0.0  ;;  %v2588_v33 = vadd.f32 %v2587_v29, %v5256_v60  ;;  %v2685_v56 = vadd.f32 %v2684_v16, %v2652_v6  ;;  %v2869_v60 = vadd.f32 %v5292_v19, %v5469_v13 }
 0x297   : > { %v2589_v49 = vpop.f32.mrf.mxu1  ;;  %v5482_v5 = vpop.f32.mrf.mxu0  ;;  %v2889_v6 = vadd.f32 %v5358_v0, %v5469_v13  ;;  %v3031_v29 = vmax.f32 %v2881_v28, 0.0  ;;  %v3090_v0 = vadd.f32 %v3089_v1, %v3029_v25  ;;  %v3033_v55 = vmax.f32 %v2887_v22, 0.0 }
 0x298   : > { %v2654_v35 = vmax.f32 %v2588_v33, 0.0  ;;  %v2590_v62 = vadd.f32 %v2589_v49, %v5262_v4  ;;  %v2716_v47 = vadd.f32 %v2715_v52, %v2653_v43  ;;  %v2883_v4 = vadd.f32 %v5342_v24, %v5469_v13 }
 0x299   : > { %v5489_v48 = vpop.f32.mrf.mxu0  ;;  %v5491_v9 = vpop.f32.mrf.mxu1  ;;  %v3026_v27 = vmax.f32 %v2869_v60, 0.0  ;;  %v3034_v52 = vmax.f32 %v2889_v6, 0.0  ;;  %v2899_v10 = vadd.f32 %v5386_v17, %v5469_v13  ;;  %v3035_v20 = vmax.f32 %v2891_v2, 0.0 }
 0x29a   : > { %v2686_v8 = vadd.f32 %v2685_v56, %v2654_v35  ;;  %v2655_v15 = vmax.f32 %v2590_v62, 0.0  ;;  %v3032_v43 = vmax.f32 %v2883_v4, 0.0  ;;  %v3091_v62 = vadd.f32 %v3090_v0, %v3031_v29 }
 0x29b   : > { %v5497_v19 = vpop.f32.mrf.mxu0  ;;  %v5499_v18 = vpop.f32.mrf.mxu1  ;;  %v3120_v16 = vadd.f32 %v3028_v39, %v3026_v27  ;;  %v2901_v60 = vadd.f32 %v5392_v21, %v5463_v57  ;;  %v3036_v3 = vmax.f32 %v2893_v12, 0.0  ;;  %v2903_v28 = vadd.f32 %v5398_v34, %v5469_v13 }
 0x29c   : > { %3607 = vst [vmem:[%s5055_s10 + $0x20] sm:$0xff] %v2686_v8  ;;  %v2717_v50 = vadd.f32 %v2716_v47, %v2655_v15  ;;  %v3092_v8 = vadd.f32 %v3091_v62, %v3033_v55  ;;  %v3037_v17 = vmax.f32 %v2897_v58, 0.0  ;;  %v2907_v15 = vadd.f32 %v5404_v63, %v5463_v57 }
 0x29d   : > { %v5506_v14 = vpop.f32.mrf.mxu0  ;;  %v5508_v24 = vpop.f32.mrf.mxu1  ;;  %v3121_v49 = vadd.f32 %v3120_v16, %v3030_v37  ;;  %v3038_v4 = vmax.f32 %v2899_v10, 0.0  ;;  %v2909_v54 = vadd.f32 %v5410_v45, %v5469_v13  ;;  %v3039_v34 = vmax.f32 %v2901_v60, 0.0 }
 0x29e   : > { %3608 = vst [vmem:[%s5055_s10 + $0x28] sm:$0xff] %v2717_v50  ;;  %v3093_v22 = vadd.f32 %v3092_v8, %v3035_v20  ;;  %v2911_v50 = vadd.f32 %v5416_v40, %v5463_v57  ;;  %v3040_v37 = vmax.f32 %v2903_v28, 0.0  ;;  %v2913_v6 = vadd.f32 %v5422_v46, %v5469_v13 }
 0x29f   : > { %v5515_v33 = vpop.f32.mrf.mxu0  ;;  %v5517_v36 = vpop.f32.mrf.mxu1  ;;  %v3122_v53 = vadd.f32 %v3121_v49, %v3032_v43  ;;  %v3041_v45 = vmax.f32 %v2907_v15, 0.0  ;;  %v2917_v2 = vadd.f32 %v5426_v42, %v5463_v57  ;;  %v3042_v43 = vmax.f32 %v2909_v54, 0.0 }
 0x2a0   : > { %v3094_v29 = vadd.f32 %v3093_v22, %v3037_v17  ;;  %v2919_v12 = vadd.f32 %v5430_v31, %v5469_v13  ;;  %v3043_v46 = vmax.f32 %v2911_v50, 0.0  ;;  %v2921_v58 = vadd.f32 %v5434_v7, %v5463_v57 }
 0x2a1   : > { %v5523_v56 = vpop.f32.mrf.mxu0  ;;  %v5525_v35 = vpop.f32.mrf.mxu1  ;;  %v3123_v39 = vadd.f32 %v3122_v53, %v3034_v52  ;;  %v3044_v52 = vmax.f32 %v2913_v6, 0.0  ;;  %v2923_v10 = vadd.f32 %v5438_v23, %v5469_v13  ;;  %v3045_v31 = vmax.f32 %v2917_v2, 0.0 }
 0x2a2   : > { %v3095_v55 = vadd.f32 %v3094_v29, %v3039_v34  ;;  %v2927_v60 = vadd.f32 %v5442_v38, %v5463_v57  ;;  %v2929_v28 = vadd.f32 %v5446_v32, %v5469_v13  ;;  %v3047_v23 = vmax.f32 %v2921_v58, 0.0 }
 0x2a3   : > { %v5531_v26 = vpop.f32.mrf.mxu0  ;;  %v5533_v47 = vpop.f32.mrf.mxu1  ;;  %v3124_v27 = vadd.f32 %v3123_v39, %v3036_v3  ;;  %v3046_v3 = vmax.f32 %v2919_v12, 0.0  ;;  %v2931_v15 = vadd.f32 %v5449_v51, %v5463_v57  ;;  %v2933_v54 = vadd.f32 %v5453_v44, %v5469_v13 }
 0x2a4   : > { %v3096_v20 = vadd.f32 %v3095_v55, %v3041_v45  ;;  %v3049_v32 = vmax.f32 %v2927_v60, 0.0  ;;  %v2937_v50 = vadd.f32 %v5459_v41, %v5463_v57  ;;  %v2939_v6 = vadd.f32 %v5465_v30, %v5469_v13 }
 0x2a5   : > { %v5539_v21 = vpop.f32.mrf.mxu0  ;;  %v5541_v25 = vpop.f32.mrf.mxu1  ;;  %v3125_v16 = vadd.f32 %v3124_v27, %v3038_v4  ;;  %v3048_v4 = vmax.f32 %v2923_v10, 0.0  ;;  %v3051_v2 = vmax.f32 %v2931_v15, 0.0  ;;  %v2941_v44 = vadd.f32 %v5473_v11, %v5463_v57 }
 0x2a6   : > { %v3097_v17 = vadd.f32 %v3096_v20, %v3043_v46  ;;  %v2943_v12 = vadd.f32 %v5482_v5, %v5469_v13  ;;  %v3053_v58 = vmax.f32 %v2937_v50, 0.0  ;;  %v2947_v30 = vadd.f32 %v5489_v48, %v5463_v57 }
 0x2a7   : > { %v5547_v63 = vpop.f32.mrf.mxu0  ;;  %v5549_v1 = vpop.f32.mrf.mxu1  ;;  %v3126_v49 = vadd.f32 %v3125_v16, %v3040_v37  ;;  %v3050_v37 = vmax.f32 %v2929_v28, 0.0  ;;  %v2949_v10 = vadd.f32 %v5497_v19, %v5469_v13  ;;  %v3055_v60 = vmax.f32 %v2941_v44, 0.0 }
 0x2a8   : > { %v3098_v34 = vadd.f32 %v3097_v17, %v3045_v31  ;;  %v2951_v5 = vadd.f32 %v5506_v14, %v5463_v57  ;;  %v2953_v28 = vadd.f32 %v5515_v33, %v5469_v13  ;;  %v3057_v15 = vmax.f32 %v2947_v30, 0.0 }
 0x2a9   : > { %v5555_v40 = vpop.f32.mrf.mxu0  ;;  %v5557_v0 = vpop.f32.mrf.mxu1  ;;  %v3127_v53 = vadd.f32 %v3126_v49, %v3042_v43  ;;  %v3052_v43 = vmax.f32 %v2933_v54, 0.0  ;;  %v2957_v19 = vadd.f32 %v5523_v56, %v5463_v57  ;;  %v2959_v54 = vadd.f32 %v5531_v26, %v5469_v13 }
 0x2aa   : > { %v3099_v45 = vadd.f32 %v3098_v34, %v3047_v23  ;;  %v3059_v50 = vmax.f32 %v2951_v5, 0.0  ;;  %v2961_v33 = vadd.f32 %v5539_v21, %v5463_v57  ;;  %v2967_v26 = vadd.f32 %v5555_v40, %v5463_v57 }
 0x2ab   : > { %v5563_v42 = vpop.f32.mrf.mxu0  ;;  %v5565_v62 = vpop.f32.mrf.mxu1  ;;  %v3128_v39 = vadd.f32 %v3127_v53, %v3044_v52  ;;  %v3054_v52 = vmax.f32 %v2939_v6, 0.0  ;;  %v2963_v6 = vadd.f32 %v5547_v63, %v5469_v13  ;;  %v3061_v44 = vmax.f32 %v2957_v19, 0.0 }
 0x2ac   : > { %v3100_v46 = vadd.f32 %v3099_v45, %v3049_v32  ;;  %v3063_v30 = vmax.f32 %v2961_v33, 0.0  ;;  %v3065_v5 = vmax.f32 %v2967_v26, 0.0 }
 0x2ad   : > { %v5571_v7 = vpop.f32.mrf.mxu0  ;;  %v5573_v8 = vpop.f32.mrf.mxu1  ;;  %v3129_v27 = vadd.f32 %v3128_v39, %v3046_v3  ;;  %v3056_v3 = vmax.f32 %v2943_v12, 0.0  ;;  %v2969_v12 = vadd.f32 %v5563_v42, %v5469_v13 }
 0x2ae   : > { %v3101_v31 = vadd.f32 %v3100_v46, %v3051_v2  ;;  %v2971_v63 = vadd.f32 %v5571_v7, %v5463_v57 }
 0x2af   : > { %v5579_v38 = vpop.f32.mrf.mxu0  ;;  %v5581_v22 = vpop.f32.mrf.mxu1  ;;  %v3130_v16 = vadd.f32 %v3129_v27, %v3048_v4  ;;  %v3058_v4 = vmax.f32 %v2949_v10, 0.0 }
 0x2b0   : > { %v3102_v23 = vadd.f32 %v3101_v31, %v3053_v58  ;;  %v2973_v10 = vadd.f32 %v5579_v38, %v5469_v13  ;;  %v3067_v19 = vmax.f32 %v2971_v63, 0.0 }
 0x2b1   : > { %v2976_v51 = vpop.f32.mrf.mxu0  ;;  %v5587_v29 = vpop.f32.mrf.mxu1  ;;  %v3131_v49 = vadd.f32 %v3130_v16, %v3050_v37  ;;  %v3060_v37 = vmax.f32 %v2953_v28, 0.0 }
 0x2b2   : > { %v3103_v32 = vadd.f32 %v3102_v23, %v3055_v60  ;;  %v2977_v42 = vadd.f32 %v2976_v51, %v5463_v57  ;;  %v3068_v38 = vmax.f32 %v2973_v10, 0.0 }
 0x2b3   : > { %v2978_v55 = vpop.f32.mrf.mxu0  ;;  %v5593_v41 = vpop.f32.mrf.mxu1  ;;  %v3132_v53 = vadd.f32 %v3131_v49, %v3052_v43  ;;  %v3062_v43 = vmax.f32 %v2959_v54, 0.0 }
 0x2b4   : > { %v3104_v2 = vadd.f32 %v3103_v32, %v3057_v15  ;;  %v2979_v28 = vadd.f32 %v2978_v55, %v5469_v13  ;;  %v3069_v51 = vmax.f32 %v2977_v42, 0.0 }
 0x2b5   : > { %v2980_v20 = vpop.f32.mrf.mxu0  ;;  %v5599_v11 = vpop.f32.mrf.mxu1  ;;  %v3133_v39 = vadd.f32 %v3132_v53, %v3054_v52  ;;  %v3064_v52 = vmax.f32 %v2963_v6, 0.0 }
 0x2b6   : > { %v3105_v58 = vadd.f32 %v3104_v2, %v3059_v50  ;;  %v3070_v55 = vmax.f32 %v2979_v28, 0.0 }
 0x2b7   : > { %v2982_v17 = vpop.f32.mrf.mxu0  ;;  %v5605_v48 = vpop.f32.mrf.mxu1  ;;  %v3134_v27 = vadd.f32 %v3133_v39, %v3056_v3  ;;  %v3066_v3 = vmax.f32 %v2969_v12, 0.0  ;;  %v2981_v39 = vadd.f32 %v2980_v20, %v5463_v57 }
 0x2b8   : > { %v3106_v60 = vadd.f32 %v3105_v58, %v3061_v44  ;;  %v2983_v54 = vadd.f32 %v2982_v17, %v5469_v13 }
 0x2b9   : > { %v2986_v34 = vpop.f32.mrf.mxu0  ;;  %v5611_v14 = vpop.f32.mrf.mxu1  ;;  %v3135_v16 = vadd.f32 %v3134_v27, %v3058_v4  ;;  %v3071_v20 = vmax.f32 %v2981_v39, 0.0 }
 0x2ba   : > { %v3107_v7 = vadd.f32 %v3106_v60, %v3063_v30  ;;  %v2987_v27 = vadd.f32 %v2986_v34, %v5463_v57  ;;  %v3072_v17 = vmax.f32 %v2983_v54, 0.0 }
 0x2bb   : > { %v2988_v45 = vpop.f32.mrf.mxu0  ;;  %v5617_v56 = vpop.f32.mrf.mxu1  ;;  %v3136_v49 = vadd.f32 %v3135_v16, %v3060_v37 }
 0x2bc   : > { %v3108_v33 = vadd.f32 %v3107_v7, %v3065_v5  ;;  %v2989_v6 = vadd.f32 %v2988_v45, %v5469_v13  ;;  %v3073_v34 = vmax.f32 %v2987_v27, 0.0 }
 0x2bd   : > { %v2990_v46 = vpop.f32.mrf.mxu0  ;;  %v5623_v21 = vpop.f32.mrf.mxu1  ;;  %v3137_v53 = vadd.f32 %v3136_v49, %v3062_v43 }
 0x2be   : > { %v3109_v26 = vadd.f32 %v3108_v33, %v3067_v19  ;;  %v2991_v16 = vadd.f32 %v2990_v46, %v5463_v57  ;;  %v3074_v45 = vmax.f32 %v2989_v6, 0.0 }
 0x2bf   : > { %v2992_v31 = vpop.f32.mrf.mxu0  ;;  %v5629_v40 = vpop.f32.mrf.mxu1  ;;  %v3138_v4 = vadd.f32 %v3137_v53, %v3064_v52 }
 0x2c0   : > { %v2993_v12 = vadd.f32 %v2992_v31, %v5469_v13  ;;  %v3110_v63 = vadd.f32 %v3109_v26, %v3069_v51  ;;  %v3075_v46 = vmax.f32 %v2991_v16, 0.0  ;;  %v3173_v16 = vld [vmem:[%s5823_s3 + $0x8] sm:$0x3] }
 0x2c1   : > { %v2996_v23 = vpop.f32.mrf.mxu0  ;;  %v5633_v15 = vpop.f32.mrf.mxu1  ;;  %v3139_v37 = vadd.f32 %v3138_v4, %v3066_v3 }
 0x2c2   : > { %v2997_v49 = vadd.f32 %v2996_v23, %v5463_v57  ;;  %v3111_v42 = vadd.f32 %v3110_v63, %v3071_v20  ;;  %v3076_v31 = vmax.f32 %v2993_v12, 0.0 }
 0x2c3   : > { %v2998_v32 = vpop.f32.mrf.mxu0  ;;  %v5637_v50 = vpop.f32.mrf.mxu1  ;;  %v3140_v43 = vadd.f32 %v3139_v37, %v3068_v38 }
 0x2c4   : > { %v2999_v10 = vadd.f32 %v2998_v32, %v5469_v13  ;;  %v3112_v39 = vadd.f32 %v3111_v42, %v3073_v34  ;;  %v3077_v23 = vmax.f32 %v2997_v49, 0.0 }
 0x2c5   : > { %v3000_v2 = vpop.f32.mrf.mxu0  ;;  %v5641_v44 = vpop.f32.mrf.mxu1  ;;  %v3141_v52 = vadd.f32 %v3140_v43, %v3070_v55 }
 0x2c6   : > { %v3001_v53 = vadd.f32 %v3000_v2, %v5463_v57  ;;  %v3078_v54 = vmax.f32 %v2999_v10, 0.0  ;;  %v3113_v51 = vadd.f32 %v3112_v39, %v3075_v46  ;;  %v5676_v39 = vrot.slane %v3173_v16, %v4815_v61 }
 0x2c7   : > { %v3002_v58 = vpop.f32.mrf.mxu0  ;;  %v5645_v30 = vpop.f32.mrf.mxu1  ;;  %v3142_v3 = vadd.f32 %v3141_v52, %v3072_v17 }
 0x2c8   : > { %v3003_v28 = vadd.f32 %v3002_v58, %v5469_v13  ;;  %v3079_v27 = vmax.f32 %v3001_v53, 0.0  ;;  %v3114_v43 = vadd.f32 %v3113_v51, %v3077_v23 }
 0x2c9   : > { %v3006_v60 = vpop.f32.mrf.mxu0  ;;  %v5649_v5 = vpop.f32.mrf.mxu1  ;;  %v3143_v38 = vadd.f32 %v3142_v3, %v3074_v45 }
 0x2ca   : > { %v3007_v4 = vadd.f32 %v3006_v60, %v5463_v57  ;;  %v3080_v2 = vmax.f32 %v3003_v28, 0.0  ;;  %v3115_v49 = vadd.f32 %v3114_v43, %v3079_v27  ;;  %v5670_v60 = vrot.slane %v3173_v16, %v4810_v59 }
 0x2cb   : > { %v3008_v7 = vpop.f32.mrf.mxu0  ;;  %v5653_v19 = vpop.f32.mrf.mxu1  ;;  %v3144_v6 = vadd.f32 %v3143_v38, %v3076_v31 }
 0x2cc   : > { %v3009_v37 = vadd.f32 %v3008_v7, %v5469_v13  ;;  %v3081_v17 = vmax.f32 %v3007_v4, 0.0  ;;  %v3304_v23 = vadd.f32 %v5508_v24, %v5670_v60  ;;  %v3300_v27 = vadd.f32 %v5491_v9, %v5670_v60 }
 0x2cd   : > { %v3010_v32 = vpop.f32.mrf.mxu0  ;;  %v5656_v33 = vpop.f32.mrf.mxu1  ;;  %v3145_v58 = vadd.f32 %v3144_v6, %v3078_v54  ;;  %v3310_v61 = vadd.f32 %v5525_v35, %v5670_v60  ;;  %v3312_v9 = vadd.f32 %v5533_v47, %v5676_v39  ;;  %v3314_v35 = vadd.f32 %v5541_v25, %v5670_v60 }
 0x2ce   : > { %v3011_v55 = vadd.f32 %v3010_v32, %v5463_v57  ;;  %v3082_v52 = vmax.f32 %v3009_v37, 0.0  ;;  %v3116_v3 = vadd.f32 %v3115_v49, %v3081_v17  ;;  %v3306_v37 = vadd.f32 %v5517_v36, %v5676_v39 }
 0x2cf   : > { %v3012_v26 = vpop.f32.mrf.mxu0  ;;  %v5660_v20 = vpop.f32.mrf.mxu1  ;;  %v3146_v42 = vadd.f32 %v3145_v58, %v3080_v2  ;;  %v3460_v43 = vmax.f32 %v3304_v23, 0.0  ;;  %v3320_v47 = vadd.f32 %v5557_v0, %v5670_v60  ;;  %v3322_v25 = vadd.f32 %v5565_v62, %v5676_v39 }
 0x2d0   : > { %v3013_v12 = vadd.f32 %v3012_v26, %v5469_v13  ;;  %v3083_v45 = vmax.f32 %v3011_v55, 0.0  ;;  %v3326_v0 = vadd.f32 %v5581_v22, %v5676_v39  ;;  %v3330_v62 = vadd.f32 %v5587_v29, %v5670_v60 }
 0x2d1   : > { %v3016_v63 = vpop.f32.mrf.mxu0  ;;  %v5666_v34 = vpop.f32.mrf.mxu1  ;;  %v3147_v59 = vadd.f32 %v3146_v42, %v3082_v52  ;;  %v3462_v52 = vmax.f32 %v3310_v61, 0.0  ;;  %v3463_v42 = vmax.f32 %v3312_v9, 0.0  ;;  %v3334_v61 = vadd.f32 %v5599_v11, %v5670_v60 }
 0x2d2   : > { %v3017_v10 = vadd.f32 %v3016_v63, %v5463_v57  ;;  %v3084_v31 = vmax.f32 %v3013_v12, 0.0  ;;  %v3117_v54 = vadd.f32 %v3116_v3, %v3083_v45  ;;  %v3461_v63 = vmax.f32 %v3306_v37, 0.0 }
 0x2d3   : > { %v3018_v46 = vpop.f32.mrf.mxu0  ;;  %v5672_v53 = vpop.f32.mrf.mxu1 }
 0x2d4   : > { %v3085_v28 = vmax.f32 %v3017_v10, 0.0  ;;  %v3019_v7 = vadd.f32 %v3018_v46, %v5469_v13  ;;  %v3148_v24 = vadd.f32 %v3147_v59, %v3084_v31  ;;  %v3464_v31 = vmax.f32 %v3314_v35, 0.0 }
 0x2d5   : > { %v3020_v4 = vpop.f32.mrf.mxu0  ;;  %v5680_v38 = vpop.f32.mrf.mxu1  ;;  %v3466_v59 = vmax.f32 %v3320_v47, 0.0  ;;  %v3472_v35 = vmax.f32 %v3334_v61, 0.0  ;;  %v3352_v47 = vadd.f32 %v5637_v50, %v5676_v39 }
 0x2d6   : > { %v3086_v32 = vmax.f32 %v3019_v7, 0.0  ;;  %v3021_v51 = vadd.f32 %v3020_v4, %v5463_v57  ;;  %v3118_v2 = vadd.f32 %v3117_v54, %v3085_v28  ;;  %v3302_v57 = vadd.f32 %v5499_v18, %v5676_v39 }
 0x2d7   : > { %v3022_v55 = vpop.f32.mrf.mxu0  ;;  %v5689_v6 = vpop.f32.mrf.mxu1  ;;  %v3458_v18 = vmax.f32 %v3300_v27, 0.0  ;;  %v3479_v50 = vmax.f32 %v3352_v47, 0.0 }
 0x2d8   : > { %v3087_v26 = vmax.f32 %v3021_v51, 0.0  ;;  %v3023_v16 = vadd.f32 %v3022_v55, %v5469_v13  ;;  %v3149_v17 = vadd.f32 %v3148_v24, %v3086_v32  ;;  %v3316_v13 = vadd.f32 %v5549_v1, %v5676_v39 }
 0x2d9   : > { %v5696_v36 = vpop.f32.mrf.mxu1  ;;  %v3459_v10 = vmax.f32 %v3302_v57, 0.0  ;;  %v3522_v3 = vadd.f32 %v3460_v43, %v3458_v18  ;;  %v3324_v1 = vadd.f32 %v5573_v8, %v5670_v60  ;;  %v3467_v32 = vmax.f32 %v3322_v25, 0.0 }
 0x2da   : > { %v3119_v12 = vadd.f32 %v3118_v2, %v3087_v26  ;;  %v3088_v58 = vmax.f32 %v3023_v16, 0.0  ;;  %v3465_v7 = vmax.f32 %v3316_v13, 0.0  ;;  %v3332_v51 = vadd.f32 %v5593_v41, %v5676_v39 }
 0x2db   : > { %v5702_v49 = vpop.f32.mrf.mxu1  ;;  %v3553_v28 = vadd.f32 %v3461_v63, %v3459_v10  ;;  %v3523_v4 = vadd.f32 %v3522_v3, %v3462_v52  ;;  %v3468_v37 = vmax.f32 %v3324_v1, 0.0  ;;  %v3469_v55 = vmax.f32 %v3326_v0, 0.0 }
 0x2dc   : > { %3609 = vst [vmem:[%s5055_s10 + $0x30] sm:$0xff] %v3119_v12  ;;  %v3150_v45 = vadd.f32 %v3149_v17, %v3088_v58  ;;  %v3336_v24 = vadd.f32 %v5605_v48, %v5676_v39  ;;  %v3470_v26 = vmax.f32 %v3330_v62, 0.0  ;;  %v3340_v16 = vadd.f32 %v5611_v14, %v5670_v60 }
 0x2dd   : > { %v5709_v46 = vpop.f32.mrf.mxu1  ;;  %v3554_v54 = vadd.f32 %v3553_v28, %v3463_v42  ;;  %v3524_v8 = vadd.f32 %v3523_v4, %v3464_v31  ;;  %v3471_v57 = vmax.f32 %v3332_v51, 0.0  ;;  %v3342_v43 = vadd.f32 %v5617_v56, %v5676_v39 }
 0x2de   : > { %3610 = vst [vmem:[%s5055_s10 + $0x38] sm:$0xff] %v3150_v45  ;;  %v3344_v17 = vadd.f32 %v5623_v21, %v5670_v60  ;;  %v3473_v12 = vmax.f32 %v3336_v24, 0.0  ;;  %v3346_v58 = vadd.f32 %v5629_v40, %v5676_v39  ;;  %v3474_v13 = vmax.f32 %v3340_v16, 0.0 }
 0x2df   : > { %v5716_v23 = vpop.f32.mrf.mxu1  ;;  %v3555_v22 = vadd.f32 %v3554_v54, %v3465_v7  ;;  %v3525_v29 = vadd.f32 %v3524_v8, %v3466_v59  ;;  %v3350_v18 = vadd.f32 %v5633_v15, %v5670_v60  ;;  %v3475_v52 = vmax.f32 %v3342_v43, 0.0 }
 0x2e0   : > { %v3476_v10 = vmax.f32 %v3344_v17, 0.0  ;;  %v3354_v42 = vadd.f32 %v5641_v44, %v5670_v60  ;;  %v3477_v25 = vmax.f32 %v3346_v58, 0.0  ;;  %v3356_v3 = vadd.f32 %v5645_v30, %v5676_v39 }
 0x2e1   : > { %v5722_v27 = vpop.f32.mrf.mxu1  ;;  %v3556_v41 = vadd.f32 %v3555_v22, %v3467_v32  ;;  %v3526_v11 = vadd.f32 %v3525_v29, %v3468_v37  ;;  %v3478_v15 = vmax.f32 %v3350_v18, 0.0  ;;  %v3360_v28 = vadd.f32 %v5649_v5, %v5670_v60 }
 0x2e2   : > { %v3362_v0 = vadd.f32 %v5653_v19, %v5676_v39  ;;  %v3480_v62 = vmax.f32 %v3354_v42, 0.0  ;;  %v3364_v44 = vadd.f32 %v5656_v33, %v5670_v60  ;;  %v3481_v32 = vmax.f32 %v3356_v3, 0.0 }
 0x2e3   : > { %v5728_v2 = vpop.f32.mrf.mxu1  ;;  %v3557_v48 = vadd.f32 %v3556_v41, %v3469_v55  ;;  %v3527_v14 = vadd.f32 %v3526_v11, %v3470_v26  ;;  %v3366_v30 = vadd.f32 %v5660_v20, %v5676_v39  ;;  %v3482_v37 = vmax.f32 %v3360_v28, 0.0 }
 0x2e4   : > { %v3370_v5 = vadd.f32 %v5666_v34, %v5670_v60  ;;  %v3483_v22 = vmax.f32 %v3362_v0, 0.0  ;;  %v3372_v19 = vadd.f32 %v5672_v53, %v5676_v39  ;;  %v3484_v29 = vmax.f32 %v3364_v44, 0.0 }
 0x2e5   : > { %v5734_v9 = vpop.f32.mrf.mxu1  ;;  %v3558_v56 = vadd.f32 %v3557_v48, %v3471_v57  ;;  %v3528_v21 = vadd.f32 %v3527_v14, %v3472_v35  ;;  %v3374_v33 = vadd.f32 %v5680_v38, %v5670_v60  ;;  %v3485_v16 = vmax.f32 %v3366_v30, 0.0 }
 0x2e6   : > { %v3376_v20 = vadd.f32 %v5689_v6, %v5676_v39  ;;  %v3486_v43 = vmax.f32 %v3370_v5, 0.0  ;;  %v3380_v34 = vadd.f32 %v5696_v36, %v5670_v60  ;;  %v3487_v35 = vmax.f32 %v3372_v19, 0.0 }
 0x2e7   : > { %v5740_v63 = vpop.f32.mrf.mxu1  ;;  %v3559_v40 = vadd.f32 %v3558_v56, %v3473_v12  ;;  %v3529_v1 = vadd.f32 %v3528_v21, %v3474_v13  ;;  %v3382_v53 = vadd.f32 %v5702_v49, %v5676_v39  ;;  %v3488_v12 = vmax.f32 %v3374_v33, 0.0 }
 0x2e8   : > { %v3384_v38 = vadd.f32 %v5709_v46, %v5670_v60  ;;  %v3489_v14 = vmax.f32 %v3376_v20, 0.0  ;;  %v3386_v6 = vadd.f32 %v5716_v23, %v5676_v39  ;;  %v3490_v56 = vmax.f32 %v3380_v34, 0.0 }
 0x2e9   : > { %v5746_v45 = vpop.f32.mrf.mxu1  ;;  %v3560_v7 = vadd.f32 %v3559_v40, %v3475_v52  ;;  %v3530_v59 = vadd.f32 %v3529_v1, %v3476_v10  ;;  %v3390_v36 = vadd.f32 %v5722_v27, %v5670_v60  ;;  %v3491_v47 = vmax.f32 %v3382_v53, 0.0 }
 0x2ea   : > { %v3392_v49 = vadd.f32 %v5728_v2, %v5676_v39  ;;  %v3492_v42 = vmax.f32 %v3384_v38, 0.0  ;;  %v3394_v46 = vadd.f32 %v5734_v9, %v5670_v60  ;;  %v3396_v23 = vadd.f32 %v5740_v63, %v5676_v39 }
 0x2eb   : > { %v3401_v31 = vpop.f32.mrf.mxu1  ;;  %v3561_v54 = vadd.f32 %v3560_v7, %v3477_v25  ;;  %v3531_v8 = vadd.f32 %v3530_v59, %v3478_v15  ;;  %v3493_v25 = vmax.f32 %v3386_v6, 0.0  ;;  %v3494_v15 = vmax.f32 %v3390_v36, 0.0 }
 0x2ec   : > { %v3400_v27 = vadd.f32 %v5746_v45, %v5670_v60  ;;  %v3495_v7 = vmax.f32 %v3392_v49, 0.0  ;;  %v3402_v2 = vadd.f32 %v3401_v31, %v5676_v39  ;;  %v3496_v59 = vmax.f32 %v3394_v46, 0.0 }
 0x2ed   : > { %v3403_v4 = vpop.f32.mrf.mxu1  ;;  %v3562_v61 = vadd.f32 %v3561_v54, %v3479_v50  ;;  %v3532_v24 = vadd.f32 %v3531_v8, %v3480_v62  ;;  %v3497_v44 = vmax.f32 %v3396_v23, 0.0 }
 0x2ee   : > { %v3404_v9 = vadd.f32 %v3403_v4, %v5670_v60  ;;  %v3498_v30 = vmax.f32 %v3400_v27, 0.0  ;;  %v3499_v45 = vmax.f32 %v3402_v2, 0.0 }
 0x2ef   : > { %v3405_v51 = vpop.f32.mrf.mxu1  ;;  %v3563_v26 = vadd.f32 %v3562_v61, %v3481_v32  ;;  %v3533_v57 = vadd.f32 %v3532_v24, %v3482_v37 }
 0x2f0   : > { %v3406_v54 = vadd.f32 %v3405_v51, %v5676_v39 }
 0x2f1   : > { %v3409_v55 = vpop.f32.mrf.mxu1  ;;  %v3564_v11 = vadd.f32 %v3563_v26, %v3483_v22  ;;  %v3534_v48 = vadd.f32 %v3533_v57, %v3484_v29  ;;  %v3500_v22 = vmax.f32 %v3404_v9, 0.0 }
 0x2f2   : > { %v3410_v8 = vadd.f32 %v3409_v55, %v5670_v60  ;;  %v3501_v4 = vmax.f32 %v3406_v54, 0.0 }
 0x2f3   : > { %v3411_v41 = vpop.f32.mrf.mxu1  ;;  %v3565_v58 = vadd.f32 %v3564_v11, %v3485_v16  ;;  %v3535_v18 = vadd.f32 %v3534_v48, %v3486_v43 }
 0x2f4   : > { %v3412_v5 = vadd.f32 %v3411_v41, %v5676_v39  ;;  %v3502_v26 = vmax.f32 %v3410_v8, 0.0 }
 0x2f5   : > { %v3413_v17 = vpop.f32.mrf.mxu1  ;;  %v3566_v52 = vadd.f32 %v3565_v58, %v3487_v35  ;;  %v3536_v10 = vadd.f32 %v3535_v18, %v3488_v12 }
 0x2f6   : > { %v3414_v19 = vadd.f32 %v3413_v17, %v5670_v60  ;;  %v3503_v55 = vmax.f32 %v3412_v5, 0.0 }
 0x2f7   : > { %v3415_v13 = vpop.f32.mrf.mxu1  ;;  %v3567_v40 = vadd.f32 %v3566_v52, %v3489_v14  ;;  %v3537_v1 = vadd.f32 %v3536_v10, %v3490_v56 }
 0x2f8   : > { %v3416_v29 = vadd.f32 %v3415_v13, %v5676_v39  ;;  %v3504_v34 = vmax.f32 %v3414_v19, 0.0 }
 0x2f9   : > { %v3419_v21 = vpop.f32.mrf.mxu1  ;;  %v3568_v28 = vadd.f32 %v3567_v40, %v3491_v47  ;;  %v3538_v0 = vadd.f32 %v3537_v1, %v3492_v42 }
 0x2fa   : > { %v3420_v16 = vadd.f32 %v3419_v21, %v5670_v60  ;;  %v3505_v53 = vmax.f32 %v3416_v29, 0.0 }
 0x2fb   : > { %v3421_v3 = vpop.f32.mrf.mxu1  ;;  %v3569_v62 = vadd.f32 %v3568_v28, %v3493_v25  ;;  %v3539_v32 = vadd.f32 %v3538_v0, %v3494_v15 }
 0x2fc   : > { %v3422_v57 = vadd.f32 %v3421_v3, %v5676_v39  ;;  %v3506_v38 = vmax.f32 %v3420_v16, 0.0 }
 0x2fd   : > { %v3423_v50 = vpop.f32.mrf.mxu1  ;;  %v3570_v37 = vadd.f32 %v3569_v62, %v3495_v7  ;;  %v3540_v31 = vadd.f32 %v3539_v32, %v3496_v59 }
 0x2fe   : > { %v3424_v11 = vadd.f32 %v3423_v50, %v5670_v60  ;;  %v3507_v6 = vmax.f32 %v3422_v57, 0.0 }
 0x2ff   : > { %v3425_v63 = vpop.f32.mrf.mxu1  ;;  %v3571_v24 = vadd.f32 %v3570_v37, %v3497_v44  ;;  %v3541_v51 = vadd.f32 %v3540_v31, %v3498_v30 }
 0x300   : > { %v3426_v17 = vadd.f32 %v3425_v63, %v5676_v39  ;;  %v3508_v36 = vmax.f32 %v3424_v11, 0.0 }
 0x301   : > { %v3429_v61 = vpop.f32.mrf.mxu1  ;;  %v3572_v20 = vadd.f32 %v3571_v24, %v3499_v45  ;;  %v3542_v41 = vadd.f32 %v3541_v51, %v3500_v22 }
 0x302   : > { %v3430_v58 = vadd.f32 %v3429_v61, %v5670_v60  ;;  %v3509_v49 = vmax.f32 %v3426_v17, 0.0 }
 0x303   : > { %v3431_v33 = vpop.f32.mrf.mxu1  ;;  %v3573_v35 = vadd.f32 %v3572_v20, %v3501_v4  ;;  %v3543_v12 = vadd.f32 %v3542_v41, %v3502_v26 }
 0x304   : > { %v3432_v13 = vadd.f32 %v3431_v33, %v5676_v39  ;;  %v3510_v46 = vmax.f32 %v3430_v58, 0.0 }
 0x305   : > { %v3433_v43 = vpop.f32.mrf.mxu1  ;;  %v3574_v14 = vadd.f32 %v3573_v35, %v3503_v55  ;;  %v3544_v56 = vadd.f32 %v3543_v12, %v3504_v34 }
 0x306   : > { %v3434_v52 = vadd.f32 %v3433_v43, %v5670_v60  ;;  %v3511_v23 = vmax.f32 %v3432_v13, 0.0 }
 0x307   : > { %v3435_v48 = vpop.f32.mrf.mxu1  ;;  %v3575_v47 = vadd.f32 %v3574_v14, %v3505_v53  ;;  %v3545_v42 = vadd.f32 %v3544_v56, %v3506_v38 }
 0x308   : > { %v3436_v21 = vadd.f32 %v3435_v48, %v5676_v39  ;;  %v3512_v15 = vmax.f32 %v3434_v52, 0.0 }
 0x309   : > { %v3439_v18 = vpop.f32.mrf.mxu1  ;;  %v3576_v25 = vadd.f32 %v3575_v47, %v3507_v6  ;;  %v3546_v1 = vadd.f32 %v3545_v42, %v3508_v36 }
 0x30a   : > { %v3440_v40 = vadd.f32 %v3439_v18, %v5670_v60  ;;  %v3513_v2 = vmax.f32 %v3436_v21, 0.0 }
 0x30b   : > { %v3441_v10 = vpop.f32.mrf.mxu1  ;;  %v3577_v7 = vadd.f32 %v3576_v25, %v3509_v49  ;;  %v3547_v0 = vadd.f32 %v3546_v1, %v3510_v46 }
 0x30c   : > { %v3442_v27 = vadd.f32 %v3441_v10, %v5676_v39  ;;  %v3514_v59 = vmax.f32 %v3440_v40, 0.0 }
 0x30d   : > { %v3443_v3 = vpop.f32.mrf.mxu1  ;;  %v3578_v62 = vadd.f32 %v3577_v7, %v3511_v23  ;;  %v3548_v54 = vadd.f32 %v3547_v0, %v3512_v15 }
 0x30e   : > { %v3444_v28 = vadd.f32 %v3443_v3, %v5670_v60  ;;  %v3515_v63 = vmax.f32 %v3442_v27, 0.0 }
 0x30f   : > { %v3445_v50 = vpop.f32.mrf.mxu1  ;;  %v3579_v8 = vadd.f32 %v3578_v62, %v3513_v2  ;;  %v3549_v45 = vadd.f32 %v3548_v54, %v3514_v59 }
 0x310   : > { %v3446_v9 = vadd.f32 %v3445_v50, %v5676_v39  ;;  %v3516_v32 = vmax.f32 %v3444_v28, 0.0 }
 0x311   : > { %v3449_v44 = vpop.f32.mrf.mxu1  ;;  %v3580_v19 = vadd.f32 %v3579_v8, %v3515_v63 }
 0x312   : > { %v3450_v30 = vadd.f32 %v3449_v44, %v5670_v60  ;;  %v3517_v5 = vmax.f32 %v3446_v9, 0.0  ;;  %v3550_v24 = vadd.f32 %v3549_v45, %v3516_v32 }
 0x313   : > { %v3451_v37 = vpop.f32.mrf.mxu1 }
 0x314   : > { %v3518_v61 = vmax.f32 %v3450_v30, 0.0  ;;  %v3452_v31 = vadd.f32 %v3451_v37, %v5676_v39  ;;  %v3581_v51 = vadd.f32 %v3580_v19, %v3517_v5 }
 0x315   : > { %v3453_v22 = vpop.f32.mrf.mxu1 }
 0x316   : > { %v3519_v4 = vmax.f32 %v3452_v31, 0.0  ;;  %v3454_v29 = vadd.f32 %v3453_v22, %v5670_v60  ;;  %v3551_v26 = vadd.f32 %v3550_v24, %v3518_v61 }
 0x317   : > { %v3455_v33 = vpop.f32.mrf.mxu1 }
 0x318   : > { %v3520_v16 = vmax.f32 %v3454_v29, 0.0  ;;  %v3456_v20 = vadd.f32 %v3455_v33, %v5676_v39  ;;  %v3582_v55 = vadd.f32 %v3581_v51, %v3519_v4 }
 0x31a   : > { %v3552_v57 = vadd.f32 %v3551_v26, %v3520_v16  ;;  %v3521_v43 = vmax.f32 %v3456_v20, 0.0 }
 0x31c   : > { %3611 = vst [vmem:[%s5055_s10 + $0x40] sm:$0xff] %v3552_v57  ;;  %v3583_v41 = vadd.f32 %v3582_v55, %v3521_v43 }
 0x31e   : > { %3612 = vst [vmem:[%s5055_s10 + $0x48] sm:$0xff] %v3583_v41 }
 0x31f PF: > { %s21_s25 = sadd.s32 1, %s4119_s25   ;;  %s5842_s23 = smov %s4115_s24 }
 0x320   : > { %p18_p5 = scmp.ge.s32.totalorder %s21_s25, 4   ;;  %s5843_s24 = smov %s5845_s5 }
 0x322   :  { %20 = sbr.rel (!%p18_p5) target bundleno = 5 (0x5), region = 140 }

</bundles_post_ra>
